<compile_context>
chip_gen: v7x
topology: tpu7x:2x2x1
jax: 0.10.0
libtpu: 0.0.40
codegen_flags: <defaults>
</compile_context>

<pallas_src>
import functools

import jax
import jax.numpy as jnp
import numpy as np
from jax.experimental import pallas as pl
from jax.experimental.pallas import tpu as pltpu

NUM_LAYERS = 4

_VMEM = pl.BlockSpec(memory_space=pltpu.MemorySpace.VMEM)


# ----------------------------------------------------------------------------
# Fused Pallas kernel: embedding-projected input -> 4 bidi RNN layers -> fc
# ----------------------------------------------------------------------------
def _myrnn_fused_kernel(x_ref, mask_ref, wx0_ref, wx_ref, wh_ref, b_ref,
                        wfc_ref, bfc_ref, logit_ref, hidden_ref,
                        *, T, B, H, L):
    """Whole MyRnn forward in one kernel.

    x_ref:    (T*B, E)    bf16, time-major embedded tokens (row = t*B + b)
    mask_ref: (T, 2B, 1)  f32, per-step validity; rows [0,B)=fwd@t=s,
                          rows [B,2B)=bwd@t=T-1-s
    wx0_ref:  (E, 2H)     bf16, layer-0 input weights  [fwd | bwd]
    wx_ref:   (L-1, 2H, 2H) bf16, layer-1..3 input weights
    wh_ref:   (L, H, 2H)  bf16, hidden weights [fwd | bwd]
    b_ref:    (L, 2, H)   f32, (b_ih + b_hh) per direction
    wfc_ref:  (H, O) bf16, bfc_ref: (1, O) f32
    logit_ref:(2L, B, O), hidden_ref:(2L, B, H)  f32 outputs (PyTorch order)
    """
    twoB = 2 * B
    row = jax.lax.broadcasted_iota(jnp.int32, (twoB, 1), 0)
    is_fwd = row < B                                   # rows [0,B) are forward

    # Hoist per-step validity masks out of every loop.
    valid = [mask_ref[s] > 0.5 for s in range(T)]      # each (2B, 1) bool

    wfc = wfc_ref[...]                                 # (H, O) bf16
    bfc = bfc_ref[...]                                 # (1, O) f32

    x_all = x_ref[...]                                 # (T*B, Din) bf16

    for l in range(L):
        wx = wx0_ref[...] if l == 0 else wx_ref[l - 1]  # (Din, 2H) bf16
        wh = wh_ref[l]                                  # (H, 2H)   bf16
        bl = b_ref[l]                                   # (2, H)    f32
        bias = jnp.where(is_fwd, bl[0:1, :], bl[1:2, :])  # (2B, H), hoisted

        # Input projections for every timestep & both directions: ONE matmul.
        zx = jnp.dot(x_all, wx, preferred_element_type=jnp.float32)  # (T*B, 2H)
        zxf = zx[:, :H]                                 # fwd columns
        zxb = zx[:, H:]                                 # bwd columns
        # Per-step pre-activation (x-part + bias), direction-stacked on rows.
        pre = [jnp.concatenate([zxf[s * B:(s + 1) * B, :],
                                zxb[(T - 1 - s) * B:(T - s) * B, :]],
                               axis=0) + bias
               for s in range(T)]                       # each (2B, H)

        h = jnp.zeros((twoB, H), jnp.float32)
        f_out = [None] * T
        b_out = [None] * T
        for s in range(T):   # fully unrolled recurrence: one MXU push / step
            zh = jnp.dot(h.astype(jnp.bfloat16), wh,
                         preferred_element_type=jnp.float32)      # (2B, 2H)
            zh = jnp.where(is_fwd, zh[:, :H], zh[:, H:])          # (2B, H)
            h_cand = jnp.tanh(pre[s] + zh)
            # packed-seq masking: freeze fwd after len, delay bwd until valid
            h = jnp.where(valid[s], h_cand, h)
            if l < L - 1:
                f_out[s] = h[:B, :]
                b_out[T - 1 - s] = h[B:, :]

        # Final hidden of this layer in PyTorch h_n order [l_fwd, l_bwd].
        hidden_ref[2 * l] = h[:B, :]
        hidden_ref[2 * l + 1] = h[B:, :]
        # fc on the final hidden states, fused into the same kernel.
        lg = jnp.dot(h.astype(jnp.bfloat16), wfc,
                     preferred_element_type=jnp.float32) + bfc     # (2B, O)
        logit_ref[2 * l] = lg[:B, :]
        logit_ref[2 * l + 1] = lg[B:, :]

        if l < L - 1:
            # Next-layer input stays on-chip: [fwd(t) | bwd(t)] per timestep.
            x_all = jnp.concatenate(
                [jnp.concatenate([f_out[t], b_out[t]], axis=1) for t in range(T)],
                axis=0).astype(jnp.bfloat16)                       # (T*B, 2H)


# ----------------------------------------------------------------------------
# Forward pass (thin XLA glue + single pallas_call)
# ----------------------------------------------------------------------------
def my_rnn_forward(params, x):
    """x: (B, T) int32 token ids, 0 = padding.  Returns (logit, hidden)."""
    B, T = x.shape
    L, H, _ = params["wh"].shape
    O = params["wfc"].shape[1]

    # length[i] = count_nonzero(x[i] != 0), as in the PyTorch forward
    lens = jnp.sum(x != 0, axis=1).astype(jnp.int32)               # (B,)

    emb = params["embedding"][x]                                   # (B, T, E)
    x_tm = jnp.transpose(emb, (1, 0, 2)).reshape(T * B, -1)        # (T*B, E)
    x_tm = x_tm.astype(jnp.bfloat16)

    # Per-step validity masks (pack_padded_sequence semantics), fwd & bwd.
    t_idx = jnp.arange(T, dtype=jnp.int32)
    fwd_m = (t_idx[:, None] < lens[None, :]).astype(jnp.float32)           # (T, B)
    bwd_m = ((T - 1 - t_idx)[:, None] < lens[None, :]).astype(jnp.float32)  # (T, B)
    mask = jnp.concatenate([fwd_m, bwd_m], axis=1)[:, :, None]             # (T, 2B, 1)

    kernel = functools.partial(_myrnn_fused_kernel, T=T, B=B, H=H, L=L)
    logit, hidden = pl.pallas_call(
        kernel,
        out_shape=(jax.ShapeDtypeStruct((2 * L, B, O), jnp.float32),
                   jax.ShapeDtypeStruct((2 * L, B, H), jnp.float32)),
        in_specs=[_VMEM] * 8,
        out_specs=(_VMEM, _VMEM),
    )(x_tm, mask, params["wx0"], params["wx"], params["wh"], params["b"],
      params["wfc"], params["bfc"])
    return logit, hidden


# ----------------------------------------------------------------------------
# Pure-JAX reference (same packed-RNN semantics) for a correctness check
# ----------------------------------------------------------------------------
def my_rnn_reference(params, x):
    B, T = x.shape
    L, H, _ = params["wh"].shape
    lens = jnp.sum(x != 0, axis=1).astype(jnp.int32)
    inp = jnp.transpose(params["embedding"][x], (1, 0, 2))         # (T, B, E)
    hiddens = []
    for l in range(L):
        wx_l = (params["wx0"] if l == 0 else params["wx"][l - 1]).astype(jnp.float32)
        wh_l = params["wh"][l].astype(jnp.float32)
        b_l = params["b"][l]
        outs = []
        for d, rev in enumerate((False, True)):
            wx_d = wx_l[:, d * H:(d + 1) * H]
            wh_d = wh_l[:, d * H:(d + 1) * H]
            b_d = b_l[d]
            h = jnp.zeros((B, H), jnp.float32)
            steps = [None] * T
            order = range(T - 1, -1, -1) if rev else range(T)
            for t in order:
                cand = jnp.tanh(inp[t] @ wx_d + h @ wh_d + b_d)
                h = jnp.where((t < lens)[:, None], cand, h)
                steps[t] = h
            outs.append(jnp.stack(steps, axis=0))
            hiddens.append(h)
        inp = jnp.concatenate(outs, axis=-1)                       # (T, B, 2H)
    hidden = jnp.stack(hiddens, axis=0)                            # (2L, B, H)
    logit = hidden @ params["wfc"].astype(jnp.float32) + params["bfc"]
    return logit, hidden


# ----------------------------------------------------------------------------
# Deterministic parameter init (shapes from MyRnn.__init__), pre-packed layout
# ----------------------------------------------------------------------------
def init_params(key, vocab_size, embed_dim, hidden_dim, output_dim, padding_id,
                num_layers=NUM_LAYERS):
    H = hidden_dim
    keys = jax.random.split(key, 8 * num_layers + 4)
    ki = iter(keys)
    bound = float(H) ** -0.5

    emb = 0.1 * jax.random.normal(next(ki), (vocab_size, embed_dim), jnp.float32)
    emb = emb.at[padding_id].set(0.0)                  # padding_idx row is zero

    wx_list, wh_list, b_list = [], [], []
    for l in range(num_layers):
        din = embed_dim if l == 0 else 2 * H
        wx_d, wh_d, b_d = [], [], []
        for _ in range(2):                             # fwd, bwd
            w_ih = jax.random.uniform(next(ki), (din, H), jnp.float32, -bound, bound)
            w_hh = jax.random.uniform(next(ki), (H, H), jnp.float32, -bound, bound)
            b_ih = jax.random.uniform(next(ki), (H,), jnp.float32, -bound, bound)
            b_hh = jax.random.uniform(next(ki), (H,), jnp.float32, -bound, bound)
            wx_d.append(w_ih)
            wh_d.append(w_hh)
            b_d.append(b_ih + b_hh)
        wx_list.append(jnp.concatenate(wx_d, axis=1))  # (din, 2H) [fwd | bwd]
        wh_list.append(jnp.concatenate(wh_d, axis=1))  # (H, 2H)
        b_list.append(jnp.stack(b_d, axis=0))          # (2, H)

    wfc = jax.random.uniform(next(ki), (H, output_dim), jnp.float32, -bound, bound)
    bfc = jax.random.uniform(next(ki), (1, output_dim), jnp.float32, -bound, bound)

    return {
        "embedding": emb,
        "wx0": wx_list[0].astype(jnp.bfloat16),                      # (E, 2H)
        "wx": jnp.stack(wx_list[1:], axis=0).astype(jnp.bfloat16),   # (L-1, 2H, 2H)
        "wh": jnp.stack(wh_list, axis=0).astype(jnp.bfloat16),       # (L, H, 2H)
        "b": jnp.stack(b_list, axis=0),                              # (L, 2, H) f32
        "wfc": wfc.astype(jnp.bfloat16),                             # (H, O)
        "bfc": bfc,                                                  # (1, O) f32
    }


# ----------------------------------------------------------------------------
if __name__ == "__main__":
    vocab_size, embed_dim, hidden_dim, output_dim, padding_id = 50, 16, 32, 4, 0
    B, T = 2, 8

    key = jax.random.PRNGKey(0)
    kp, kx = jax.random.split(key, 2)
    params = init_params(kp, vocab_size, embed_dim, hidden_dim,
                         output_dim, padding_id)

    # Deterministic padded token sequences (lengths 8 and 5, padded with 0).
    lengths = jnp.array([8, 5], dtype=jnp.int32)
    tok = jax.random.randint(kx, (B, T), 1, vocab_size)
    valid = jnp.arange(T)[None, :] < lengths[:, None]
    x = jnp.where(valid, tok, 0).astype(jnp.int32)

    fwd = jax.jit(my_rnn_forward)
    logit, hidden = fwd(params, x)
    jax.block_until_ready((logit, hidden))

    assert logit.shape == (2 * NUM_LAYERS, B, output_dim)
    assert hidden.shape == (2 * NUM_LAYERS, B, hidden_dim)

    # Correctness check against a pure-JAX f32 reference of the same packed-RNN
    # semantics (loose tolerance covers the bf16 MXU inputs in the kernel).
    ref_logit, ref_hidden = jax.jit(my_rnn_reference)(params, x)
    np.testing.assert_allclose(np.asarray(hidden), np.asarray(ref_hidden),
                               rtol=0.0, atol=5e-2)
    np.testing.assert_allclose(np.asarray(logit), np.asarray(ref_logit),
                               rtol=0.0, atol=5e-2)

    print("KERNEL_OK")
</pallas_src>

<mosaic_0001>
module attributes {stable_mosaic.version = 11 : i64} {
  func.func @_myrnn_fused_kernel(%arg0: memref<16x16xbf16, #tpu.memory_space<vmem>>, %arg1: memref<8x4x1xf32, #tpu.memory_space<vmem>>, %arg2: memref<16x64xbf16, #tpu.memory_space<vmem>>, %arg3: memref<3x64x64xbf16, #tpu.memory_space<vmem>>, %arg4: memref<4x32x64xbf16, #tpu.memory_space<vmem>>, %arg5: memref<4x2x32xf32, #tpu.memory_space<vmem>>, %arg6: memref<32x4xbf16, #tpu.memory_space<vmem>>, %arg7: memref<1x4xf32, #tpu.memory_space<vmem>>, %arg8: memref<8x2x4xf32, #tpu.memory_space<vmem>>, %arg9: memref<8x2x32xf32, #tpu.memory_space<vmem>>) attributes {dimension_semantics = [], scalar_prefetch = 0 : i64, scratch_operands = 0 : i64, tpu.core_type = #tpu.core_type<tc>} {
    %0 = tpu.iota {dimensions = array<i32: 0>} : vector<4x1xi32>
    %c2_i32 = arith.constant 2 : i32
    %1 = vector.broadcast %c2_i32 : i32 to vector<4x1xi32>
    %2 = arith.cmpi slt, %0, %1 : vector<4x1xi32>
    %c0 = arith.constant 0 : index
    %c0_0 = arith.constant 0 : index
    %c0_1 = arith.constant 0 : index
    %3 = vector.load %arg1[%c0, %c0_0, %c0_1] : memref<8x4x1xf32, #tpu.memory_space<vmem>>, vector<1x4x1xf32>
    %4 = vector.shape_cast %3 : vector<1x4x1xf32> to vector<4x1xf32>
    %cst = arith.constant 5.000000e-01 : f32
    %5 = vector.broadcast %cst : f32 to vector<4x1xf32>
    %6 = arith.cmpf ogt, %4, %5 : vector<4x1xf32>
    %c1 = arith.constant 1 : index
    %c0_2 = arith.constant 0 : index
    %c0_3 = arith.constant 0 : index
    %7 = vector.load %arg1[%c1, %c0_2, %c0_3] : memref<8x4x1xf32, #tpu.memory_space<vmem>>, vector<1x4x1xf32>
    %8 = vector.shape_cast %7 : vector<1x4x1xf32> to vector<4x1xf32>
    %cst_4 = arith.constant 5.000000e-01 : f32
    %9 = vector.broadcast %cst_4 : f32 to vector<4x1xf32>
    %10 = arith.cmpf ogt, %8, %9 : vector<4x1xf32>
    %c2 = arith.constant 2 : index
    %c0_5 = arith.constant 0 : index
    %c0_6 = arith.constant 0 : index
    %11 = vector.load %arg1[%c2, %c0_5, %c0_6] : memref<8x4x1xf32, #tpu.memory_space<vmem>>, vector<1x4x1xf32>
    %12 = vector.shape_cast %11 : vector<1x4x1xf32> to vector<4x1xf32>
    %cst_7 = arith.constant 5.000000e-01 : f32
    %13 = vector.broadcast %cst_7 : f32 to vector<4x1xf32>
    %14 = arith.cmpf ogt, %12, %13 : vector<4x1xf32>
    %c3 = arith.constant 3 : index
    %c0_8 = arith.constant 0 : index
    %c0_9 = arith.constant 0 : index
    %15 = vector.load %arg1[%c3, %c0_8, %c0_9] : memref<8x4x1xf32, #tpu.memory_space<vmem>>, vector<1x4x1xf32>
    %16 = vector.shape_cast %15 : vector<1x4x1xf32> to vector<4x1xf32>
    %cst_10 = arith.constant 5.000000e-01 : f32
    %17 = vector.broadcast %cst_10 : f32 to vector<4x1xf32>
    %18 = arith.cmpf ogt, %16, %17 : vector<4x1xf32>
    %c4 = arith.constant 4 : index
    %c0_11 = arith.constant 0 : index
    %c0_12 = arith.constant 0 : index
    %19 = vector.load %arg1[%c4, %c0_11, %c0_12] : memref<8x4x1xf32, #tpu.memory_space<vmem>>, vector<1x4x1xf32>
    %20 = vector.shape_cast %19 : vector<1x4x1xf32> to vector<4x1xf32>
    %cst_13 = arith.constant 5.000000e-01 : f32
    %21 = vector.broadcast %cst_13 : f32 to vector<4x1xf32>
    %22 = arith.cmpf ogt, %20, %21 : vector<4x1xf32>
    %c5 = arith.constant 5 : index
    %c0_14 = arith.constant 0 : index
    %c0_15 = arith.constant 0 : index
    %23 = vector.load %arg1[%c5, %c0_14, %c0_15] : memref<8x4x1xf32, #tpu.memory_space<vmem>>, vector<1x4x1xf32>
    %24 = vector.shape_cast %23 : vector<1x4x1xf32> to vector<4x1xf32>
    %cst_16 = arith.constant 5.000000e-01 : f32
    %25 = vector.broadcast %cst_16 : f32 to vector<4x1xf32>
    %26 = arith.cmpf ogt, %24, %25 : vector<4x1xf32>
    %c6 = arith.constant 6 : index
    %c0_17 = arith.constant 0 : index
    %c0_18 = arith.constant 0 : index
    %27 = vector.load %arg1[%c6, %c0_17, %c0_18] : memref<8x4x1xf32, #tpu.memory_space<vmem>>, vector<1x4x1xf32>
    %28 = vector.shape_cast %27 : vector<1x4x1xf32> to vector<4x1xf32>
    %cst_19 = arith.constant 5.000000e-01 : f32
    %29 = vector.broadcast %cst_19 : f32 to vector<4x1xf32>
    %30 = arith.cmpf ogt, %28, %29 : vector<4x1xf32>
    %c7 = arith.constant 7 : index
    %c0_20 = arith.constant 0 : index
    %c0_21 = arith.constant 0 : index
    %31 = vector.load %arg1[%c7, %c0_20, %c0_21] : memref<8x4x1xf32, #tpu.memory_space<vmem>>, vector<1x4x1xf32>
    %32 = vector.shape_cast %31 : vector<1x4x1xf32> to vector<4x1xf32>
    %cst_22 = arith.constant 5.000000e-01 : f32
    %33 = vector.broadcast %cst_22 : f32 to vector<4x1xf32>
    %34 = arith.cmpf ogt, %32, %33 : vector<4x1xf32>
    %c0_23 = arith.constant 0 : index
    %c0_24 = arith.constant 0 : index
    %35 = vector.load %arg6[%c0_23, %c0_24] : memref<32x4xbf16, #tpu.memory_space<vmem>>, vector<32x4xbf16>
    %c0_25 = arith.constant 0 : index
    %c0_26 = arith.constant 0 : index
    %36 = vector.load %arg7[%c0_25, %c0_26] : memref<1x4xf32, #tpu.memory_space<vmem>>, vector<1x4xf32>
    %c0_27 = arith.constant 0 : index
    %c0_28 = arith.constant 0 : index
    %37 = vector.load %arg0[%c0_27, %c0_28] : memref<16x16xbf16, #tpu.memory_space<vmem>>, vector<16x16xbf16>
    %c0_29 = arith.constant 0 : index
    %c0_30 = arith.constant 0 : index
    %38 = vector.load %arg2[%c0_29, %c0_30] : memref<16x64xbf16, #tpu.memory_space<vmem>>, vector<16x64xbf16>
    %c0_31 = arith.constant 0 : index
    %c0_32 = arith.constant 0 : index
    %c0_33 = arith.constant 0 : index
    %39 = vector.load %arg4[%c0_31, %c0_32, %c0_33] : memref<4x32x64xbf16, #tpu.memory_space<vmem>>, vector<1x32x64xbf16>
    %40 = vector.shape_cast %39 : vector<1x32x64xbf16> to vector<32x64xbf16>
    %c0_34 = arith.constant 0 : index
    %c0_35 = arith.constant 0 : index
    %c0_36 = arith.constant 0 : index
    %41 = vector.load %arg5[%c0_34, %c0_35, %c0_36] : memref<4x2x32xf32, #tpu.memory_space<vmem>>, vector<1x2x32xf32>
    %42 = vector.shape_cast %41 : vector<1x2x32xf32> to vector<2x32xf32>
    %43 = vector.extract_strided_slice %42 {offsets = [0, 0], sizes = [1, 32], strides = [1, 1]} : vector<2x32xf32> to vector<1x32xf32>
    %44 = vector.extract_strided_slice %42 {offsets = [1, 0], sizes = [1, 32], strides = [1, 1]} : vector<2x32xf32> to vector<1x32xf32>
    %45 = vector.shape_cast %2 : vector<4x1xi1> to vector<4x1xi1>
    %46 = vector.broadcast %45 : vector<4x1xi1> to vector<4x32xi1>
    %47 = vector.shape_cast %43 : vector<1x32xf32> to vector<1x32xf32>
    %48 = vector.broadcast %47 : vector<1x32xf32> to vector<4x32xf32>
    %49 = vector.shape_cast %44 : vector<1x32xf32> to vector<1x32xf32>
    %50 = vector.broadcast %49 : vector<1x32xf32> to vector<4x32xf32>
    %51 = arith.select %46, %48, %50 : vector<4x32xi1>, vector<4x32xf32>
    %cst_37 = arith.constant dense<0.000000e+00> : vector<16x64xf32>
    %52 = tpu.matmul %37, %38, %cst_37 {dimension_numbers = #tpu.dot_dimension_numbers<[1], [0], [0], [1], [0, 0, 1, 1], [], []>} : vector<16x16xbf16>, vector<16x64xbf16>, vector<16x64xf32> -> vector<16x64xf32>
    %53 = vector.extract_strided_slice %52 {offsets = [0, 0], sizes = [16, 32], strides = [1, 1]} : vector<16x64xf32> to vector<16x32xf32>
    %54 = vector.extract_strided_slice %52 {offsets = [0, 32], sizes = [16, 32], strides = [1, 1]} : vector<16x64xf32> to vector<16x32xf32>
    %55 = vector.extract_strided_slice %53 {offsets = [0, 0], sizes = [2, 32], strides = [1, 1]} : vector<16x32xf32> to vector<2x32xf32>
    %56 = vector.extract_strided_slice %54 {offsets = [14, 0], sizes = [2, 32], strides = [1, 1]} : vector<16x32xf32> to vector<2x32xf32>
    %57 = tpu.concatenate %55, %56 in 0 : vector<2x32xf32>, vector<2x32xf32> -> vector<4x32xf32>
    %58 = arith.addf %57, %51 : vector<4x32xf32>
    %59 = vector.extract_strided_slice %53 {offsets = [2, 0], sizes = [2, 32], strides = [1, 1]} : vector<16x32xf32> to vector<2x32xf32>
    %60 = vector.extract_strided_slice %54 {offsets = [12, 0], sizes = [2, 32], strides = [1, 1]} : vector<16x32xf32> to vector<2x32xf32>
    %61 = tpu.concatenate %59, %60 in 0 : vector<2x32xf32>, vector<2x32xf32> -> vector<4x32xf32>
    %62 = arith.addf %61, %51 : vector<4x32xf32>
    %63 = vector.extract_strided_slice %53 {offsets = [4, 0], sizes = [2, 32], strides = [1, 1]} : vector<16x32xf32> to vector<2x32xf32>
    %64 = vector.extract_strided_slice %54 {offsets = [10, 0], sizes = [2, 32], strides = [1, 1]} : vector<16x32xf32> to vector<2x32xf32>
    %65 = tpu.concatenate %63, %64 in 0 : vector<2x32xf32>, vector<2x32xf32> -> vector<4x32xf32>
    %66 = arith.addf %65, %51 : vector<4x32xf32>
    %67 = vector.extract_strided_slice %53 {offsets = [6, 0], sizes = [2, 32], strides = [1, 1]} : vector<16x32xf32> to vector<2x32xf32>
    %68 = vector.extract_strided_slice %54 {offsets = [8, 0], sizes = [2, 32], strides = [1, 1]} : vector<16x32xf32> to vector<2x32xf32>
    %69 = tpu.concatenate %67, %68 in 0 : vector<2x32xf32>, vector<2x32xf32> -> vector<4x32xf32>
    %70 = arith.addf %69, %51 : vector<4x32xf32>
    %71 = vector.extract_strided_slice %53 {offsets = [8, 0], sizes = [2, 32], strides = [1, 1]} : vector<16x32xf32> to vector<2x32xf32>
    %72 = vector.extract_strided_slice %54 {offsets = [6, 0], sizes = [2, 32], strides = [1, 1]} : vector<16x32xf32> to vector<2x32xf32>
    %73 = tpu.concatenate %71, %72 in 0 : vector<2x32xf32>, vector<2x32xf32> -> vector<4x32xf32>
    %74 = arith.addf %73, %51 : vector<4x32xf32>
    %75 = vector.extract_strided_slice %53 {offsets = [10, 0], sizes = [2, 32], strides = [1, 1]} : vector<16x32xf32> to vector<2x32xf32>
    %76 = vector.extract_strided_slice %54 {offsets = [4, 0], sizes = [2, 32], strides = [1, 1]} : vector<16x32xf32> to vector<2x32xf32>
    %77 = tpu.concatenate %75, %76 in 0 : vector<2x32xf32>, vector<2x32xf32> -> vector<4x32xf32>
    %78 = arith.addf %77, %51 : vector<4x32xf32>
    %79 = vector.extract_strided_slice %53 {offsets = [12, 0], sizes = [2, 32], strides = [1, 1]} : vector<16x32xf32> to vector<2x32xf32>
    %80 = vector.extract_strided_slice %54 {offsets = [2, 0], sizes = [2, 32], strides = [1, 1]} : vector<16x32xf32> to vector<2x32xf32>
    %81 = tpu.concatenate %79, %80 in 0 : vector<2x32xf32>, vector<2x32xf32> -> vector<4x32xf32>
    %82 = arith.addf %81, %51 : vector<4x32xf32>
    %83 = vector.extract_strided_slice %53 {offsets = [14, 0], sizes = [2, 32], strides = [1, 1]} : vector<16x32xf32> to vector<2x32xf32>
    %84 = vector.extract_strided_slice %54 {offsets = [0, 0], sizes = [2, 32], strides = [1, 1]} : vector<16x32xf32> to vector<2x32xf32>
    %85 = tpu.concatenate %83, %84 in 0 : vector<2x32xf32>, vector<2x32xf32> -> vector<4x32xf32>
    %86 = arith.addf %85, %51 : vector<4x32xf32>
    %cst_38 = arith.constant 0.000000e+00 : f32
    %87 = vector.broadcast %cst_38 : f32 to vector<4x32xf32>
    %88 = arith.truncf %87 : vector<4x32xf32> to vector<4x32xbf16>
    %cst_39 = arith.constant dense<0.000000e+00> : vector<4x64xf32>
    %89 = tpu.matmul %88, %40, %cst_39 {dimension_numbers = #tpu.dot_dimension_numbers<[1], [0], [0], [1], [0, 0, 1, 1], [], []>} : vector<4x32xbf16>, vector<32x64xbf16>, vector<4x64xf32> -> vector<4x64xf32>
    %90 = vector.extract_strided_slice %89 {offsets = [0, 0], sizes = [4, 32], strides = [1, 1]} : vector<4x64xf32> to vector<4x32xf32>
    %91 = vector.extract_strided_slice %89 {offsets = [0, 32], sizes = [4, 32], strides = [1, 1]} : vector<4x64xf32> to vector<4x32xf32>
    %92 = vector.shape_cast %2 : vector<4x1xi1> to vector<4x1xi1>
    %93 = vector.broadcast %92 : vector<4x1xi1> to vector<4x32xi1>
    %94 = arith.select %93, %90, %91 : vector<4x32xi1>, vector<4x32xf32>
    %95 = arith.addf %58, %94 : vector<4x32xf32>
    %96 = math.tanh %95 : vector<4x32xf32>
    %97 = vector.shape_cast %6 : vector<4x1xi1> to vector<4x1xi1>
    %98 = vector.broadcast %97 : vector<4x1xi1> to vector<4x32xi1>
    %99 = arith.select %98, %96, %87 : vector<4x32xi1>, vector<4x32xf32>
    %100 = vector.extract_strided_slice %99 {offsets = [0, 0], sizes = [2, 32], strides = [1, 1]} : vector<4x32xf32> to vector<2x32xf32>
    %101 = vector.extract_strided_slice %99 {offsets = [2, 0], sizes = [2, 32], strides = [1, 1]} : vector<4x32xf32> to vector<2x32xf32>
    %102 = arith.truncf %99 : vector<4x32xf32> to vector<4x32xbf16>
    %cst_40 = arith.constant dense<0.000000e+00> : vector<4x64xf32>
    %103 = tpu.matmul %102, %40, %cst_40 {dimension_numbers = #tpu.dot_dimension_numbers<[1], [0], [0], [1], [0, 0, 1, 1], [], []>} : vector<4x32xbf16>, vector<32x64xbf16>, vector<4x64xf32> -> vector<4x64xf32>
    %104 = vector.extract_strided_slice %103 {offsets = [0, 0], sizes = [4, 32], strides = [1, 1]} : vector<4x64xf32> to vector<4x32xf32>
    %105 = vector.extract_strided_slice %103 {offsets = [0, 32], sizes = [4, 32], strides = [1, 1]} : vector<4x64xf32> to vector<4x32xf32>
    %106 = vector.shape_cast %2 : vector<4x1xi1> to vector<4x1xi1>
    %107 = vector.broadcast %106 : vector<4x1xi1> to vector<4x32xi1>
    %108 = arith.select %107, %104, %105 : vector<4x32xi1>, vector<4x32xf32>
    %109 = arith.addf %62, %108 : vector<4x32xf32>
    %110 = math.tanh %109 : vector<4x32xf32>
    %111 = vector.shape_cast %10 : vector<4x1xi1> to vector<4x1xi1>
    %112 = vector.broadcast %111 : vector<4x1xi1> to vector<4x32xi1>
    %113 = arith.select %112, %110, %99 : vector<4x32xi1>, vector<4x32xf32>
    %114 = vector.extract_strided_slice %113 {offsets = [0, 0], sizes = [2, 32], strides = [1, 1]} : vector<4x32xf32> to vector<2x32xf32>
    %115 = vector.extract_strided_slice %113 {offsets = [2, 0], sizes = [2, 32], strides = [1, 1]} : vector<4x32xf32> to vector<2x32xf32>
    %116 = arith.truncf %113 : vector<4x32xf32> to vector<4x32xbf16>
    %cst_41 = arith.constant dense<0.000000e+00> : vector<4x64xf32>
    %117 = tpu.matmul %116, %40, %cst_41 {dimension_numbers = #tpu.dot_dimension_numbers<[1], [0], [0], [1], [0, 0, 1, 1], [], []>} : vector<4x32xbf16>, vector<32x64xbf16>, vector<4x64xf32> -> vector<4x64xf32>
    %118 = vector.extract_strided_slice %117 {offsets = [0, 0], sizes = [4, 32], strides = [1, 1]} : vector<4x64xf32> to vector<4x32xf32>
    %119 = vector.extract_strided_slice %117 {offsets = [0, 32], sizes = [4, 32], strides = [1, 1]} : vector<4x64xf32> to vector<4x32xf32>
    %120 = vector.shape_cast %2 : vector<4x1xi1> to vector<4x1xi1>
    %121 = vector.broadcast %120 : vector<4x1xi1> to vector<4x32xi1>
    %122 = arith.select %121, %118, %119 : vector<4x32xi1>, vector<4x32xf32>
    %123 = arith.addf %66, %122 : vector<4x32xf32>
    %124 = math.tanh %123 : vector<4x32xf32>
    %125 = vector.shape_cast %14 : vector<4x1xi1> to vector<4x1xi1>
    %126 = vector.broadcast %125 : vector<4x1xi1> to vector<4x32xi1>
    %127 = arith.select %126, %124, %113 : vector<4x32xi1>, vector<4x32xf32>
    %128 = vector.extract_strided_slice %127 {offsets = [0, 0], sizes = [2, 32], strides = [1, 1]} : vector<4x32xf32> to vector<2x32xf32>
    %129 = vector.extract_strided_slice %127 {offsets = [2, 0], sizes = [2, 32], strides = [1, 1]} : vector<4x32xf32> to vector<2x32xf32>
    %130 = arith.truncf %127 : vector<4x32xf32> to vector<4x32xbf16>
    %cst_42 = arith.constant dense<0.000000e+00> : vector<4x64xf32>
    %131 = tpu.matmul %130, %40, %cst_42 {dimension_numbers = #tpu.dot_dimension_numbers<[1], [0], [0], [1], [0, 0, 1, 1], [], []>} : vector<4x32xbf16>, vector<32x64xbf16>, vector<4x64xf32> -> vector<4x64xf32>
    %132 = vector.extract_strided_slice %131 {offsets = [0, 0], sizes = [4, 32], strides = [1, 1]} : vector<4x64xf32> to vector<4x32xf32>
    %133 = vector.extract_strided_slice %131 {offsets = [0, 32], sizes = [4, 32], strides = [1, 1]} : vector<4x64xf32> to vector<4x32xf32>
    %134 = vector.shape_cast %2 : vector<4x1xi1> to vector<4x1xi1>
    %135 = vector.broadcast %134 : vector<4x1xi1> to vector<4x32xi1>
    %136 = arith.select %135, %132, %133 : vector<4x32xi1>, vector<4x32xf32>
    %137 = arith.addf %70, %136 : vector<4x32xf32>
    %138 = math.tanh %137 : vector<4x32xf32>
    %139 = vector.shape_cast %18 : vector<4x1xi1> to vector<4x1xi1>
    %140 = vector.broadcast %139 : vector<4x1xi1> to vector<4x32xi1>
    %141 = arith.select %140, %138, %127 : vector<4x32xi1>, vector<4x32xf32>
    %142 = vector.extract_strided_slice %141 {offsets = [0, 0], sizes = [2, 32], strides = [1, 1]} : vector<4x32xf32> to vector<2x32xf32>
    %143 = vector.extract_strided_slice %141 {offsets = [2, 0], sizes = [2, 32], strides = [1, 1]} : vector<4x32xf32> to vector<2x32xf32>
    %144 = arith.truncf %141 : vector<4x32xf32> to vector<4x32xbf16>
    %cst_43 = arith.constant dense<0.000000e+00> : vector<4x64xf32>
    %145 = tpu.matmul %144, %40, %cst_43 {dimension_numbers = #tpu.dot_dimension_numbers<[1], [0], [0], [1], [0, 0, 1, 1], [], []>} : vector<4x32xbf16>, vector<32x64xbf16>, vector<4x64xf32> -> vector<4x64xf32>
    %146 = vector.extract_strided_slice %145 {offsets = [0, 0], sizes = [4, 32], strides = [1, 1]} : vector<4x64xf32> to vector<4x32xf32>
    %147 = vector.extract_strided_slice %145 {offsets = [0, 32], sizes = [4, 32], strides = [1, 1]} : vector<4x64xf32> to vector<4x32xf32>
    %148 = vector.shape_cast %2 : vector<4x1xi1> to vector<4x1xi1>
    %149 = vector.broadcast %148 : vector<4x1xi1> to vector<4x32xi1>
    %150 = arith.select %149, %146, %147 : vector<4x32xi1>, vector<4x32xf32>
    %151 = arith.addf %74, %150 : vector<4x32xf32>
    %152 = math.tanh %151 : vector<4x32xf32>
    %153 = vector.shape_cast %22 : vector<4x1xi1> to vector<4x1xi1>
    %154 = vector.broadcast %153 : vector<4x1xi1> to vector<4x32xi1>
    %155 = arith.select %154, %152, %141 : vector<4x32xi1>, vector<4x32xf32>
    %156 = vector.extract_strided_slice %155 {offsets = [0, 0], sizes = [2, 32], strides = [1, 1]} : vector<4x32xf32> to vector<2x32xf32>
    %157 = vector.extract_strided_slice %155 {offsets = [2, 0], sizes = [2, 32], strides = [1, 1]} : vector<4x32xf32> to vector<2x32xf32>
    %158 = arith.truncf %155 : vector<4x32xf32> to vector<4x32xbf16>
    %cst_44 = arith.constant dense<0.000000e+00> : vector<4x64xf32>
    %159 = tpu.matmul %158, %40, %cst_44 {dimension_numbers = #tpu.dot_dimension_numbers<[1], [0], [0], [1], [0, 0, 1, 1], [], []>} : vector<4x32xbf16>, vector<32x64xbf16>, vector<4x64xf32> -> vector<4x64xf32>
    %160 = vector.extract_strided_slice %159 {offsets = [0, 0], sizes = [4, 32], strides = [1, 1]} : vector<4x64xf32> to vector<4x32xf32>
    %161 = vector.extract_strided_slice %159 {offsets = [0, 32], sizes = [4, 32], strides = [1, 1]} : vector<4x64xf32> to vector<4x32xf32>
    %162 = vector.shape_cast %2 : vector<4x1xi1> to vector<4x1xi1>
    %163 = vector.broadcast %162 : vector<4x1xi1> to vector<4x32xi1>
    %164 = arith.select %163, %160, %161 : vector<4x32xi1>, vector<4x32xf32>
    %165 = arith.addf %78, %164 : vector<4x32xf32>
    %166 = math.tanh %165 : vector<4x32xf32>
    %167 = vector.shape_cast %26 : vector<4x1xi1> to vector<4x1xi1>
    %168 = vector.broadcast %167 : vector<4x1xi1> to vector<4x32xi1>
    %169 = arith.select %168, %166, %155 : vector<4x32xi1>, vector<4x32xf32>
    %170 = vector.extract_strided_slice %169 {offsets = [0, 0], sizes = [2, 32], strides = [1, 1]} : vector<4x32xf32> to vector<2x32xf32>
    %171 = vector.extract_strided_slice %169 {offsets = [2, 0], sizes = [2, 32], strides = [1, 1]} : vector<4x32xf32> to vector<2x32xf32>
    %172 = arith.truncf %169 : vector<4x32xf32> to vector<4x32xbf16>
    %cst_45 = arith.constant dense<0.000000e+00> : vector<4x64xf32>
    %173 = tpu.matmul %172, %40, %cst_45 {dimension_numbers = #tpu.dot_dimension_numbers<[1], [0], [0], [1], [0, 0, 1, 1], [], []>} : vector<4x32xbf16>, vector<32x64xbf16>, vector<4x64xf32> -> vector<4x64xf32>
    %174 = vector.extract_strided_slice %173 {offsets = [0, 0], sizes = [4, 32], strides = [1, 1]} : vector<4x64xf32> to vector<4x32xf32>
    %175 = vector.extract_strided_slice %173 {offsets = [0, 32], sizes = [4, 32], strides = [1, 1]} : vector<4x64xf32> to vector<4x32xf32>
    %176 = vector.shape_cast %2 : vector<4x1xi1> to vector<4x1xi1>
    %177 = vector.broadcast %176 : vector<4x1xi1> to vector<4x32xi1>
    %178 = arith.select %177, %174, %175 : vector<4x32xi1>, vector<4x32xf32>
    %179 = arith.addf %82, %178 : vector<4x32xf32>
    %180 = math.tanh %179 : vector<4x32xf32>
    %181 = vector.shape_cast %30 : vector<4x1xi1> to vector<4x1xi1>
    %182 = vector.broadcast %181 : vector<4x1xi1> to vector<4x32xi1>
    %183 = arith.select %182, %180, %169 : vector<4x32xi1>, vector<4x32xf32>
    %184 = vector.extract_strided_slice %183 {offsets = [0, 0], sizes = [2, 32], strides = [1, 1]} : vector<4x32xf32> to vector<2x32xf32>
    %185 = vector.extract_strided_slice %183 {offsets = [2, 0], sizes = [2, 32], strides = [1, 1]} : vector<4x32xf32> to vector<2x32xf32>
    %186 = arith.truncf %183 : vector<4x32xf32> to vector<4x32xbf16>
    %cst_46 = arith.constant dense<0.000000e+00> : vector<4x64xf32>
    %187 = tpu.matmul %186, %40, %cst_46 {dimension_numbers = #tpu.dot_dimension_numbers<[1], [0], [0], [1], [0, 0, 1, 1], [], []>} : vector<4x32xbf16>, vector<32x64xbf16>, vector<4x64xf32> -> vector<4x64xf32>
    %188 = vector.extract_strided_slice %187 {offsets = [0, 0], sizes = [4, 32], strides = [1, 1]} : vector<4x64xf32> to vector<4x32xf32>
    %189 = vector.extract_strided_slice %187 {offsets = [0, 32], sizes = [4, 32], strides = [1, 1]} : vector<4x64xf32> to vector<4x32xf32>
    %190 = vector.shape_cast %2 : vector<4x1xi1> to vector<4x1xi1>
    %191 = vector.broadcast %190 : vector<4x1xi1> to vector<4x32xi1>
    %192 = arith.select %191, %188, %189 : vector<4x32xi1>, vector<4x32xf32>
    %193 = arith.addf %86, %192 : vector<4x32xf32>
    %194 = math.tanh %193 : vector<4x32xf32>
    %195 = vector.shape_cast %34 : vector<4x1xi1> to vector<4x1xi1>
    %196 = vector.broadcast %195 : vector<4x1xi1> to vector<4x32xi1>
    %197 = arith.select %196, %194, %183 : vector<4x32xi1>, vector<4x32xf32>
    %198 = vector.extract_strided_slice %197 {offsets = [0, 0], sizes = [2, 32], strides = [1, 1]} : vector<4x32xf32> to vector<2x32xf32>
    %199 = vector.extract_strided_slice %197 {offsets = [2, 0], sizes = [2, 32], strides = [1, 1]} : vector<4x32xf32> to vector<2x32xf32>
    %200 = vector.extract_strided_slice %197 {offsets = [0, 0], sizes = [2, 32], strides = [1, 1]} : vector<4x32xf32> to vector<2x32xf32>
    %c0_47 = arith.constant 0 : index
    %c0_48 = arith.constant 0 : index
    %c0_49 = arith.constant 0 : index
    %201 = vector.load %arg9[%c0_47, %c0_48, %c0_49] : memref<8x2x32xf32, #tpu.memory_space<vmem>>, vector<1x2x32xf32>
    %202 = vector.shape_cast %201 : vector<1x2x32xf32> to vector<2x32xf32>
    %203 = vector.shape_cast %200 : vector<2x32xf32> to vector<1x2x32xf32>
    tpu.vector_store %arg9[%c0_47, %c0_48, %c0_49], %203 {strides = array<i32>} : memref<8x2x32xf32, #tpu.memory_space<vmem>>, vector<1x2x32xf32>,
    %204 = vector.extract_strided_slice %197 {offsets = [2, 0], sizes = [2, 32], strides = [1, 1]} : vector<4x32xf32> to vector<2x32xf32>
    %c1_50 = arith.constant 1 : index
    %c0_51 = arith.constant 0 : index
    %c0_52 = arith.constant 0 : index
    %205 = vector.load %arg9[%c1_50, %c0_51, %c0_52] : memref<8x2x32xf32, #tpu.memory_space<vmem>>, vector<1x2x32xf32>
    %206 = vector.shape_cast %205 : vector<1x2x32xf32> to vector<2x32xf32>
    %207 = vector.shape_cast %204 : vector<2x32xf32> to vector<1x2x32xf32>
    tpu.vector_store %arg9[%c1_50, %c0_51, %c0_52], %207 {strides = array<i32>} : memref<8x2x32xf32, #tpu.memory_space<vmem>>, vector<1x2x32xf32>,
    %208 = arith.truncf %197 : vector<4x32xf32> to vector<4x32xbf16>
    %cst_53 = arith.constant dense<0.000000e+00> : vector<4x4xf32>
    %209 = tpu.matmul %208, %35, %cst_53 {dimension_numbers = #tpu.dot_dimension_numbers<[1], [0], [0], [1], [0, 0, 1, 1], [], []>} : vector<4x32xbf16>, vector<32x4xbf16>, vector<4x4xf32> -> vector<4x4xf32>
    %210 = vector.broadcast %36 : vector<1x4xf32> to vector<4x4xf32>
    %211 = arith.addf %209, %210 : vector<4x4xf32>
    %212 = vector.extract_strided_slice %211 {offsets = [0, 0], sizes = [2, 4], strides = [1, 1]} : vector<4x4xf32> to vector<2x4xf32>
    %c0_54 = arith.constant 0 : index
    %c0_55 = arith.constant 0 : index
    %c0_56 = arith.constant 0 : index
    %213 = vector.load %arg8[%c0_54, %c0_55, %c0_56] : memref<8x2x4xf32, #tpu.memory_space<vmem>>, vector<1x2x4xf32>
    %214 = vector.shape_cast %213 : vector<1x2x4xf32> to vector<2x4xf32>
    %215 = vector.shape_cast %212 : vector<2x4xf32> to vector<1x2x4xf32>
    tpu.vector_store %arg8[%c0_54, %c0_55, %c0_56], %215 {strides = array<i32>} : memref<8x2x4xf32, #tpu.memory_space<vmem>>, vector<1x2x4xf32>,
    %216 = vector.extract_strided_slice %211 {offsets = [2, 0], sizes = [2, 4], strides = [1, 1]} : vector<4x4xf32> to vector<2x4xf32>
    %c1_57 = arith.constant 1 : index
    %c0_58 = arith.constant 0 : index
    %c0_59 = arith.constant 0 : index
    %217 = vector.load %arg8[%c1_57, %c0_58, %c0_59] : memref<8x2x4xf32, #tpu.memory_space<vmem>>, vector<1x2x4xf32>
    %218 = vector.shape_cast %217 : vector<1x2x4xf32> to vector<2x4xf32>
    %219 = vector.shape_cast %216 : vector<2x4xf32> to vector<1x2x4xf32>
    tpu.vector_store %arg8[%c1_57, %c0_58, %c0_59], %219 {strides = array<i32>} : memref<8x2x4xf32, #tpu.memory_space<vmem>>, vector<1x2x4xf32>,
    %220 = tpu.concatenate %100, %199 in 1 : vector<2x32xf32>, vector<2x32xf32> -> vector<2x64xf32>
    %221 = tpu.concatenate %114, %185 in 1 : vector<2x32xf32>, vector<2x32xf32> -> vector<2x64xf32>
    %222 = tpu.concatenate %128, %171 in 1 : vector<2x32xf32>, vector<2x32xf32> -> vector<2x64xf32>
    %223 = tpu.concatenate %142, %157 in 1 : vector<2x32xf32>, vector<2x32xf32> -> vector<2x64xf32>
    %224 = tpu.concatenate %156, %143 in 1 : vector<2x32xf32>, vector<2x32xf32> -> vector<2x64xf32>
    %225 = tpu.concatenate %170, %129 in 1 : vector<2x32xf32>, vector<2x32xf32> -> vector<2x64xf32>
    %226 = tpu.concatenate %184, %115 in 1 : vector<2x32xf32>, vector<2x32xf32> -> vector<2x64xf32>
    %227 = tpu.concatenate %198, %101 in 1 : vector<2x32xf32>, vector<2x32xf32> -> vector<2x64xf32>
    %228 = tpu.concatenate %220, %221, %222, %223, %224, %225, %226, %227 in 0 : vector<2x64xf32>, vector<2x64xf32>, vector<2x64xf32>, vector<2x64xf32>, vector<2x64xf32>, vector<2x64xf32>, vector<2x64xf32>, vector<2x64xf32> -> vector<16x64xf32>
    %229 = arith.truncf %228 : vector<16x64xf32> to vector<16x64xbf16>
    %c0_60 = arith.constant 0 : index
    %c0_61 = arith.constant 0 : index
    %c0_62 = arith.constant 0 : index
    %230 = vector.load %arg3[%c0_60, %c0_61, %c0_62] : memref<3x64x64xbf16, #tpu.memory_space<vmem>>, vector<1x64x64xbf16>
    %231 = vector.shape_cast %230 : vector<1x64x64xbf16> to vector<64x64xbf16>
    %c1_63 = arith.constant 1 : index
    %c0_64 = arith.constant 0 : index
    %c0_65 = arith.constant 0 : index
    %232 = vector.load %arg4[%c1_63, %c0_64, %c0_65] : memref<4x32x64xbf16, #tpu.memory_space<vmem>>, vector<1x32x64xbf16>
    %233 = vector.shape_cast %232 : vector<1x32x64xbf16> to vector<32x64xbf16>
    %c1_66 = arith.constant 1 : index
    %c0_67 = arith.constant 0 : index
    %c0_68 = arith.constant 0 : index
    %234 = vector.load %arg5[%c1_66, %c0_67, %c0_68] : memref<4x2x32xf32, #tpu.memory_space<vmem>>, vector<1x2x32xf32>
    %235 = vector.shape_cast %234 : vector<1x2x32xf32> to vector<2x32xf32>
    %236 = vector.extract_strided_slice %235 {offsets = [0, 0], sizes = [1, 32], strides = [1, 1]} : vector<2x32xf32> to vector<1x32xf32>
    %237 = vector.extract_strided_slice %235 {offsets = [1, 0], sizes = [1, 32], strides = [1, 1]} : vector<2x32xf32> to vector<1x32xf32>
    %238 = vector.shape_cast %2 : vector<4x1xi1> to vector<4x1xi1>
    %239 = vector.broadcast %238 : vector<4x1xi1> to vector<4x32xi1>
    %240 = vector.shape_cast %236 : vector<1x32xf32> to vector<1x32xf32>
    %241 = vector.broadcast %240 : vector<1x32xf32> to vector<4x32xf32>
    %242 = vector.shape_cast %237 : vector<1x32xf32> to vector<1x32xf32>
    %243 = vector.broadcast %242 : vector<1x32xf32> to vector<4x32xf32>
    %244 = arith.select %239, %241, %243 : vector<4x32xi1>, vector<4x32xf32>
    %cst_69 = arith.constant dense<0.000000e+00> : vector<16x64xf32>
    %245 = tpu.matmul %229, %231, %cst_69 {dimension_numbers = #tpu.dot_dimension_numbers<[1], [0], [0], [1], [0, 0, 1, 1], [], []>} : vector<16x64xbf16>, vector<64x64xbf16>, vector<16x64xf32> -> vector<16x64xf32>
    %246 = vector.extract_strided_slice %245 {offsets = [0, 0], sizes = [16, 32], strides = [1, 1]} : vector<16x64xf32> to vector<16x32xf32>
    %247 = vector.extract_strided_slice %245 {offsets = [0, 32], sizes = [16, 32], strides = [1, 1]} : vector<16x64xf32> to vector<16x32xf32>
    %248 = vector.extract_strided_slice %246 {offsets = [0, 0], sizes = [2, 32], strides = [1, 1]} : vector<16x32xf32> to vector<2x32xf32>
    %249 = vector.extract_strided_slice %247 {offsets = [14, 0], sizes = [2, 32], strides = [1, 1]} : vector<16x32xf32> to vector<2x32xf32>
    %250 = tpu.concatenate %248, %249 in 0 : vector<2x32xf32>, vector<2x32xf32> -> vector<4x32xf32>
    %251 = arith.addf %250, %244 : vector<4x32xf32>
    %252 = vector.extract_strided_slice %246 {offsets = [2, 0], sizes = [2, 32], strides = [1, 1]} : vector<16x32xf32> to vector<2x32xf32>
    %253 = vector.extract_strided_slice %247 {offsets = [12, 0], sizes = [2, 32], strides = [1, 1]} : vector<16x32xf32> to vector<2x32xf32>
    %254 = tpu.concatenate %252, %253 in 0 : vector<2x32xf32>, vector<2x32xf32> -> vector<4x32xf32>
    %255 = arith.addf %254, %244 : vector<4x32xf32>
    %256 = vector.extract_strided_slice %246 {offsets = [4, 0], sizes = [2, 32], strides = [1, 1]} : vector<16x32xf32> to vector<2x32xf32>
    %257 = vector.extract_strided_slice %247 {offsets = [10, 0], sizes = [2, 32], strides = [1, 1]} : vector<16x32xf32> to vector<2x32xf32>
    %258 = tpu.concatenate %256, %257 in 0 : vector<2x32xf32>, vector<2x32xf32> -> vector<4x32xf32>
    %259 = arith.addf %258, %244 : vector<4x32xf32>
    %260 = vector.extract_strided_slice %246 {offsets = [6, 0], sizes = [2, 32], strides = [1, 1]} : vector<16x32xf32> to vector<2x32xf32>
    %261 = vector.extract_strided_slice %247 {offsets = [8, 0], sizes = [2, 32], strides = [1, 1]} : vector<16x32xf32> to vector<2x32xf32>
    %262 = tpu.concatenate %260, %261 in 0 : vector<2x32xf32>, vector<2x32xf32> -> vector<4x32xf32>
    %263 = arith.addf %262, %244 : vector<4x32xf32>
    %264 = vector.extract_strided_slice %246 {offsets = [8, 0], sizes = [2, 32], strides = [1, 1]} : vector<16x32xf32> to vector<2x32xf32>
    %265 = vector.extract_strided_slice %247 {offsets = [6, 0], sizes = [2, 32], strides = [1, 1]} : vector<16x32xf32> to vector<2x32xf32>
    %266 = tpu.concatenate %264, %265 in 0 : vector<2x32xf32>, vector<2x32xf32> -> vector<4x32xf32>
    %267 = arith.addf %266, %244 : vector<4x32xf32>
    %268 = vector.extract_strided_slice %246 {offsets = [10, 0], sizes = [2, 32], strides = [1, 1]} : vector<16x32xf32> to vector<2x32xf32>
    %269 = vector.extract_strided_slice %247 {offsets = [4, 0], sizes = [2, 32], strides = [1, 1]} : vector<16x32xf32> to vector<2x32xf32>
    %270 = tpu.concatenate %268, %269 in 0 : vector<2x32xf32>, vector<2x32xf32> -> vector<4x32xf32>
    %271 = arith.addf %270, %244 : vector<4x32xf32>
    %272 = vector.extract_strided_slice %246 {offsets = [12, 0], sizes = [2, 32], strides = [1, 1]} : vector<16x32xf32> to vector<2x32xf32>
    %273 = vector.extract_strided_slice %247 {offsets = [2, 0], sizes = [2, 32], strides = [1, 1]} : vector<16x32xf32> to vector<2x32xf32>
    %274 = tpu.concatenate %272, %273 in 0 : vector<2x32xf32>, vector<2x32xf32> -> vector<4x32xf32>
    %275 = arith.addf %274, %244 : vector<4x32xf32>
    %276 = vector.extract_strided_slice %246 {offsets = [14, 0], sizes = [2, 32], strides = [1, 1]} : vector<16x32xf32> to vector<2x32xf32>
    %277 = vector.extract_strided_slice %247 {offsets = [0, 0], sizes = [2, 32], strides = [1, 1]} : vector<16x32xf32> to vector<2x32xf32>
    %278 = tpu.concatenate %276, %277 in 0 : vector<2x32xf32>, vector<2x32xf32> -> vector<4x32xf32>
    %279 = arith.addf %278, %244 : vector<4x32xf32>
    %cst_70 = arith.constant 0.000000e+00 : f32
    %280 = vector.broadcast %cst_70 : f32 to vector<4x32xf32>
    %281 = arith.truncf %280 : vector<4x32xf32> to vector<4x32xbf16>
    %cst_71 = arith.constant dense<0.000000e+00> : vector<4x64xf32>
    %282 = tpu.matmul %281, %233, %cst_71 {dimension_numbers = #tpu.dot_dimension_numbers<[1], [0], [0], [1], [0, 0, 1, 1], [], []>} : vector<4x32xbf16>, vector<32x64xbf16>, vector<4x64xf32> -> vector<4x64xf32>
    %283 = vector.extract_strided_slice %282 {offsets = [0, 0], sizes = [4, 32], strides = [1, 1]} : vector<4x64xf32> to vector<4x32xf32>
    %284 = vector.extract_strided_slice %282 {offsets = [0, 32], sizes = [4, 32], strides = [1, 1]} : vector<4x64xf32> to vector<4x32xf32>
    %285 = vector.shape_cast %2 : vector<4x1xi1> to vector<4x1xi1>
    %286 = vector.broadcast %285 : vector<4x1xi1> to vector<4x32xi1>
    %287 = arith.select %286, %283, %284 : vector<4x32xi1>, vector<4x32xf32>
    %288 = arith.addf %251, %287 : vector<4x32xf32>
    %289 = math.tanh %288 : vector<4x32xf32>
    %290 = vector.shape_cast %6 : vector<4x1xi1> to vector<4x1xi1>
    %291 = vector.broadcast %290 : vector<4x1xi1> to vector<4x32xi1>
    %292 = arith.select %291, %289, %280 : vector<4x32xi1>, vector<4x32xf32>
    %293 = vector.extract_strided_slice %292 {offsets = [0, 0], sizes = [2, 32], strides = [1, 1]} : vector<4x32xf32> to vector<2x32xf32>
    %294 = vector.extract_strided_slice %292 {offsets = [2, 0], sizes = [2, 32], strides = [1, 1]} : vector<4x32xf32> to vector<2x32xf32>
    %295 = arith.truncf %292 : vector<4x32xf32> to vector<4x32xbf16>
    %cst_72 = arith.constant dense<0.000000e+00> : vector<4x64xf32>
    %296 = tpu.matmul %295, %233, %cst_72 {dimension_numbers = #tpu.dot_dimension_numbers<[1], [0], [0], [1], [0, 0, 1, 1], [], []>} : vector<4x32xbf16>, vector<32x64xbf16>, vector<4x64xf32> -> vector<4x64xf32>
    %297 = vector.extract_strided_slice %296 {offsets = [0, 0], sizes = [4, 32], strides = [1, 1]} : vector<4x64xf32> to vector<4x32xf32>
    %298 = vector.extract_strided_slice %296 {offsets = [0, 32], sizes = [4, 32], strides = [1, 1]} : vector<4x64xf32> to vector<4x32xf32>
    %299 = vector.shape_cast %2 : vector<4x1xi1> to vector<4x1xi1>
    %300 = vector.broadcast %299 : vector<4x1xi1> to vector<4x32xi1>
    %301 = arith.select %300, %297, %298 : vector<4x32xi1>, vector<4x32xf32>
    %302 = arith.addf %255, %301 : vector<4x32xf32>
    %303 = math.tanh %302 : vector<4x32xf32>
    %304 = vector.shape_cast %10 : vector<4x1xi1> to vector<4x1xi1>
    %305 = vector.broadcast %304 : vector<4x1xi1> to vector<4x32xi1>
    %306 = arith.select %305, %303, %292 : vector<4x32xi1>, vector<4x32xf32>
    %307 = vector.extract_strided_slice %306 {offsets = [0, 0], sizes = [2, 32], strides = [1, 1]} : vector<4x32xf32> to vector<2x32xf32>
    %308 = vector.extract_strided_slice %306 {offsets = [2, 0], sizes = [2, 32], strides = [1, 1]} : vector<4x32xf32> to vector<2x32xf32>
    %309 = arith.truncf %306 : vector<4x32xf32> to vector<4x32xbf16>
    %cst_73 = arith.constant dense<0.000000e+00> : vector<4x64xf32>
    %310 = tpu.matmul %309, %233, %cst_73 {dimension_numbers = #tpu.dot_dimension_numbers<[1], [0], [0], [1], [0, 0, 1, 1], [], []>} : vector<4x32xbf16>, vector<32x64xbf16>, vector<4x64xf32> -> vector<4x64xf32>
    %311 = vector.extract_strided_slice %310 {offsets = [0, 0], sizes = [4, 32], strides = [1, 1]} : vector<4x64xf32> to vector<4x32xf32>
    %312 = vector.extract_strided_slice %310 {offsets = [0, 32], sizes = [4, 32], strides = [1, 1]} : vector<4x64xf32> to vector<4x32xf32>
    %313 = vector.shape_cast %2 : vector<4x1xi1> to vector<4x1xi1>
    %314 = vector.broadcast %313 : vector<4x1xi1> to vector<4x32xi1>
    %315 = arith.select %314, %311, %312 : vector<4x32xi1>, vector<4x32xf32>
    %316 = arith.addf %259, %315 : vector<4x32xf32>
    %317 = math.tanh %316 : vector<4x32xf32>
    %318 = vector.shape_cast %14 : vector<4x1xi1> to vector<4x1xi1>
    %319 = vector.broadcast %318 : vector<4x1xi1> to vector<4x32xi1>
    %320 = arith.select %319, %317, %306 : vector<4x32xi1>, vector<4x32xf32>
    %321 = vector.extract_strided_slice %320 {offsets = [0, 0], sizes = [2, 32], strides = [1, 1]} : vector<4x32xf32> to vector<2x32xf32>
    %322 = vector.extract_strided_slice %320 {offsets = [2, 0], sizes = [2, 32], strides = [1, 1]} : vector<4x32xf32> to vector<2x32xf32>
    %323 = arith.truncf %320 : vector<4x32xf32> to vector<4x32xbf16>
    %cst_74 = arith.constant dense<0.000000e+00> : vector<4x64xf32>
    %324 = tpu.matmul %323, %233, %cst_74 {dimension_numbers = #tpu.dot_dimension_numbers<[1], [0], [0], [1], [0, 0, 1, 1], [], []>} : vector<4x32xbf16>, vector<32x64xbf16>, vector<4x64xf32> -> vector<4x64xf32>
    %325 = vector.extract_strided_slice %324 {offsets = [0, 0], sizes = [4, 32], strides = [1, 1]} : vector<4x64xf32> to vector<4x32xf32>
    %326 = vector.extract_strided_slice %324 {offsets = [0, 32], sizes = [4, 32], strides = [1, 1]} : vector<4x64xf32> to vector<4x32xf32>
    %327 = vector.shape_cast %2 : vector<4x1xi1> to vector<4x1xi1>
    %328 = vector.broadcast %327 : vector<4x1xi1> to vector<4x32xi1>
    %329 = arith.select %328, %325, %326 : vector<4x32xi1>, vector<4x32xf32>
    %330 = arith.addf %263, %329 : vector<4x32xf32>
    %331 = math.tanh %330 : vector<4x32xf32>
    %332 = vector.shape_cast %18 : vector<4x1xi1> to vector<4x1xi1>
    %333 = vector.broadcast %332 : vector<4x1xi1> to vector<4x32xi1>
    %334 = arith.select %333, %331, %320 : vector<4x32xi1>, vector<4x32xf32>
    %335 = vector.extract_strided_slice %334 {offsets = [0, 0], sizes = [2, 32], strides = [1, 1]} : vector<4x32xf32> to vector<2x32xf32>
    %336 = vector.extract_strided_slice %334 {offsets = [2, 0], sizes = [2, 32], strides = [1, 1]} : vector<4x32xf32> to vector<2x32xf32>
    %337 = arith.truncf %334 : vector<4x32xf32> to vector<4x32xbf16>
    %cst_75 = arith.constant dense<0.000000e+00> : vector<4x64xf32>
    %338 = tpu.matmul %337, %233, %cst_75 {dimension_numbers = #tpu.dot_dimension_numbers<[1], [0], [0], [1], [0, 0, 1, 1], [], []>} : vector<4x32xbf16>, vector<32x64xbf16>, vector<4x64xf32> -> vector<4x64xf32>
    %339 = vector.extract_strided_slice %338 {offsets = [0, 0], sizes = [4, 32], strides = [1, 1]} : vector<4x64xf32> to vector<4x32xf32>
    %340 = vector.extract_strided_slice %338 {offsets = [0, 32], sizes = [4, 32], strides = [1, 1]} : vector<4x64xf32> to vector<4x32xf32>
    %341 = vector.shape_cast %2 : vector<4x1xi1> to vector<4x1xi1>
    %342 = vector.broadcast %341 : vector<4x1xi1> to vector<4x32xi1>
    %343 = arith.select %342, %339, %340 : vector<4x32xi1>, vector<4x32xf32>
    %344 = arith.addf %267, %343 : vector<4x32xf32>
    %345 = math.tanh %344 : vector<4x32xf32>
    %346 = vector.shape_cast %22 : vector<4x1xi1> to vector<4x1xi1>
    %347 = vector.broadcast %346 : vector<4x1xi1> to vector<4x32xi1>
    %348 = arith.select %347, %345, %334 : vector<4x32xi1>, vector<4x32xf32>
    %349 = vector.extract_strided_slice %348 {offsets = [0, 0], sizes = [2, 32], strides = [1, 1]} : vector<4x32xf32> to vector<2x32xf32>
    %350 = vector.extract_strided_slice %348 {offsets = [2, 0], sizes = [2, 32], strides = [1, 1]} : vector<4x32xf32> to vector<2x32xf32>
    %351 = arith.truncf %348 : vector<4x32xf32> to vector<4x32xbf16>
    %cst_76 = arith.constant dense<0.000000e+00> : vector<4x64xf32>
    %352 = tpu.matmul %351, %233, %cst_76 {dimension_numbers = #tpu.dot_dimension_numbers<[1], [0], [0], [1], [0, 0, 1, 1], [], []>} : vector<4x32xbf16>, vector<32x64xbf16>, vector<4x64xf32> -> vector<4x64xf32>
    %353 = vector.extract_strided_slice %352 {offsets = [0, 0], sizes = [4, 32], strides = [1, 1]} : vector<4x64xf32> to vector<4x32xf32>
    %354 = vector.extract_strided_slice %352 {offsets = [0, 32], sizes = [4, 32], strides = [1, 1]} : vector<4x64xf32> to vector<4x32xf32>
    %355 = vector.shape_cast %2 : vector<4x1xi1> to vector<4x1xi1>
    %356 = vector.broadcast %355 : vector<4x1xi1> to vector<4x32xi1>
    %357 = arith.select %356, %353, %354 : vector<4x32xi1>, vector<4x32xf32>
    %358 = arith.addf %271, %357 : vector<4x32xf32>
    %359 = math.tanh %358 : vector<4x32xf32>
    %360 = vector.shape_cast %26 : vector<4x1xi1> to vector<4x1xi1>
    %361 = vector.broadcast %360 : vector<4x1xi1> to vector<4x32xi1>
    %362 = arith.select %361, %359, %348 : vector<4x32xi1>, vector<4x32xf32>
    %363 = vector.extract_strided_slice %362 {offsets = [0, 0], sizes = [2, 32], strides = [1, 1]} : vector<4x32xf32> to vector<2x32xf32>
    %364 = vector.extract_strided_slice %362 {offsets = [2, 0], sizes = [2, 32], strides = [1, 1]} : vector<4x32xf32> to vector<2x32xf32>
    %365 = arith.truncf %362 : vector<4x32xf32> to vector<4x32xbf16>
    %cst_77 = arith.constant dense<0.000000e+00> : vector<4x64xf32>
    %366 = tpu.matmul %365, %233, %cst_77 {dimension_numbers = #tpu.dot_dimension_numbers<[1], [0], [0], [1], [0, 0, 1, 1], [], []>} : vector<4x32xbf16>, vector<32x64xbf16>, vector<4x64xf32> -> vector<4x64xf32>
    %367 = vector.extract_strided_slice %366 {offsets = [0, 0], sizes = [4, 32], strides = [1, 1]} : vector<4x64xf32> to vector<4x32xf32>
    %368 = vector.extract_strided_slice %366 {offsets = [0, 32], sizes = [4, 32], strides = [1, 1]} : vector<4x64xf32> to vector<4x32xf32>
    %369 = vector.shape_cast %2 : vector<4x1xi1> to vector<4x1xi1>
    %370 = vector.broadcast %369 : vector<4x1xi1> to vector<4x32xi1>
    %371 = arith.select %370, %367, %368 : vector<4x32xi1>, vector<4x32xf32>
    %372 = arith.addf %275, %371 : vector<4x32xf32>
    %373 = math.tanh %372 : vector<4x32xf32>
    %374 = vector.shape_cast %30 : vector<4x1xi1> to vector<4x1xi1>
    %375 = vector.broadcast %374 : vector<4x1xi1> to vector<4x32xi1>
    %376 = arith.select %375, %373, %362 : vector<4x32xi1>, vector<4x32xf32>
    %377 = vector.extract_strided_slice %376 {offsets = [0, 0], sizes = [2, 32], strides = [1, 1]} : vector<4x32xf32> to vector<2x32xf32>
    %378 = vector.extract_strided_slice %376 {offsets = [2, 0], sizes = [2, 32], strides = [1, 1]} : vector<4x32xf32> to vector<2x32xf32>
    %379 = arith.truncf %376 : vector<4x32xf32> to vector<4x32xbf16>
    %cst_78 = arith.constant dense<0.000000e+00> : vector<4x64xf32>
    %380 = tpu.matmul %379, %233, %cst_78 {dimension_numbers = #tpu.dot_dimension_numbers<[1], [0], [0], [1], [0, 0, 1, 1], [], []>} : vector<4x32xbf16>, vector<32x64xbf16>, vector<4x64xf32> -> vector<4x64xf32>
    %381 = vector.extract_strided_slice %380 {offsets = [0, 0], sizes = [4, 32], strides = [1, 1]} : vector<4x64xf32> to vector<4x32xf32>
    %382 = vector.extract_strided_slice %380 {offsets = [0, 32], sizes = [4, 32], strides = [1, 1]} : vector<4x64xf32> to vector<4x32xf32>
    %383 = vector.shape_cast %2 : vector<4x1xi1> to vector<4x1xi1>
    %384 = vector.broadcast %383 : vector<4x1xi1> to vector<4x32xi1>
    %385 = arith.select %384, %381, %382 : vector<4x32xi1>, vector<4x32xf32>
    %386 = arith.addf %279, %385 : vector<4x32xf32>
    %387 = math.tanh %386 : vector<4x32xf32>
    %388 = vector.shape_cast %34 : vector<4x1xi1> to vector<4x1xi1>
    %389 = vector.broadcast %388 : vector<4x1xi1> to vector<4x32xi1>
    %390 = arith.select %389, %387, %376 : vector<4x32xi1>, vector<4x32xf32>
    %391 = vector.extract_strided_slice %390 {offsets = [0, 0], sizes = [2, 32], strides = [1, 1]} : vector<4x32xf32> to vector<2x32xf32>
    %392 = vector.extract_strided_slice %390 {offsets = [2, 0], sizes = [2, 32], strides = [1, 1]} : vector<4x32xf32> to vector<2x32xf32>
    %393 = vector.extract_strided_slice %390 {offsets = [0, 0], sizes = [2, 32], strides = [1, 1]} : vector<4x32xf32> to vector<2x32xf32>
    %c2_79 = arith.constant 2 : index
    %c0_80 = arith.constant 0 : index
    %c0_81 = arith.constant 0 : index
    %394 = vector.load %arg9[%c2_79, %c0_80, %c0_81] : memref<8x2x32xf32, #tpu.memory_space<vmem>>, vector<1x2x32xf32>
    %395 = vector.shape_cast %394 : vector<1x2x32xf32> to vector<2x32xf32>
    %396 = vector.shape_cast %393 : vector<2x32xf32> to vector<1x2x32xf32>
    tpu.vector_store %arg9[%c2_79, %c0_80, %c0_81], %396 {strides = array<i32>} : memref<8x2x32xf32, #tpu.memory_space<vmem>>, vector<1x2x32xf32>,
    %397 = vector.extract_strided_slice %390 {offsets = [2, 0], sizes = [2, 32], strides = [1, 1]} : vector<4x32xf32> to vector<2x32xf32>
    %c3_82 = arith.constant 3 : index
    %c0_83 = arith.constant 0 : index
    %c0_84 = arith.constant 0 : index
    %398 = vector.load %arg9[%c3_82, %c0_83, %c0_84] : memref<8x2x32xf32, #tpu.memory_space<vmem>>, vector<1x2x32xf32>
    %399 = vector.shape_cast %398 : vector<1x2x32xf32> to vector<2x32xf32>
    %400 = vector.shape_cast %397 : vector<2x32xf32> to vector<1x2x32xf32>
    tpu.vector_store %arg9[%c3_82, %c0_83, %c0_84], %400 {strides = array<i32>} : memref<8x2x32xf32, #tpu.memory_space<vmem>>, vector<1x2x32xf32>,
    %401 = arith.truncf %390 : vector<4x32xf32> to vector<4x32xbf16>
    %cst_85 = arith.constant dense<0.000000e+00> : vector<4x4xf32>
    %402 = tpu.matmul %401, %35, %cst_85 {dimension_numbers = #tpu.dot_dimension_numbers<[1], [0], [0], [1], [0, 0, 1, 1], [], []>} : vector<4x32xbf16>, vector<32x4xbf16>, vector<4x4xf32> -> vector<4x4xf32>
    %403 = vector.broadcast %36 : vector<1x4xf32> to vector<4x4xf32>
    %404 = arith.addf %402, %403 : vector<4x4xf32>
    %405 = vector.extract_strided_slice %404 {offsets = [0, 0], sizes = [2, 4], strides = [1, 1]} : vector<4x4xf32> to vector<2x4xf32>
    %c2_86 = arith.constant 2 : index
    %c0_87 = arith.constant 0 : index
    %c0_88 = arith.constant 0 : index
    %406 = vector.load %arg8[%c2_86, %c0_87, %c0_88] : memref<8x2x4xf32, #tpu.memory_space<vmem>>, vector<1x2x4xf32>
    %407 = vector.shape_cast %406 : vector<1x2x4xf32> to vector<2x4xf32>
    %408 = vector.shape_cast %405 : vector<2x4xf32> to vector<1x2x4xf32>
    tpu.vector_store %arg8[%c2_86, %c0_87, %c0_88], %408 {strides = array<i32>} : memref<8x2x4xf32, #tpu.memory_space<vmem>>, vector<1x2x4xf32>,
    %409 = vector.extract_strided_slice %404 {offsets = [2, 0], sizes = [2, 4], strides = [1, 1]} : vector<4x4xf32> to vector<2x4xf32>
    %c3_89 = arith.constant 3 : index
    %c0_90 = arith.constant 0 : index
    %c0_91 = arith.constant 0 : index
    %410 = vector.load %arg8[%c3_89, %c0_90, %c0_91] : memref<8x2x4xf32, #tpu.memory_space<vmem>>, vector<1x2x4xf32>
    %411 = vector.shape_cast %410 : vector<1x2x4xf32> to vector<2x4xf32>
    %412 = vector.shape_cast %409 : vector<2x4xf32> to vector<1x2x4xf32>
    tpu.vector_store %arg8[%c3_89, %c0_90, %c0_91], %412 {strides = array<i32>} : memref<8x2x4xf32, #tpu.memory_space<vmem>>, vector<1x2x4xf32>,
    %413 = tpu.concatenate %293, %392 in 1 : vector<2x32xf32>, vector<2x32xf32> -> vector<2x64xf32>
    %414 = tpu.concatenate %307, %378 in 1 : vector<2x32xf32>, vector<2x32xf32> -> vector<2x64xf32>
    %415 = tpu.concatenate %321, %364 in 1 : vector<2x32xf32>, vector<2x32xf32> -> vector<2x64xf32>
    %416 = tpu.concatenate %335, %350 in 1 : vector<2x32xf32>, vector<2x32xf32> -> vector<2x64xf32>
    %417 = tpu.concatenate %349, %336 in 1 : vector<2x32xf32>, vector<2x32xf32> -> vector<2x64xf32>
    %418 = tpu.concatenate %363, %322 in 1 : vector<2x32xf32>, vector<2x32xf32> -> vector<2x64xf32>
    %419 = tpu.concatenate %377, %308 in 1 : vector<2x32xf32>, vector<2x32xf32> -> vector<2x64xf32>
    %420 = tpu.concatenate %391, %294 in 1 : vector<2x32xf32>, vector<2x32xf32> -> vector<2x64xf32>
    %421 = tpu.concatenate %413, %414, %415, %416, %417, %418, %419, %420 in 0 : vector<2x64xf32>, vector<2x64xf32>, vector<2x64xf32>, vector<2x64xf32>, vector<2x64xf32>, vector<2x64xf32>, vector<2x64xf32>, vector<2x64xf32> -> vector<16x64xf32>
    %422 = arith.truncf %421 : vector<16x64xf32> to vector<16x64xbf16>
    %c1_92 = arith.constant 1 : index
    %c0_93 = arith.constant 0 : index
    %c0_94 = arith.constant 0 : index
    %423 = vector.load %arg3[%c1_92, %c0_93, %c0_94] : memref<3x64x64xbf16, #tpu.memory_space<vmem>>, vector<1x64x64xbf16>
    %424 = vector.shape_cast %423 : vector<1x64x64xbf16> to vector<64x64xbf16>
    %c2_95 = arith.constant 2 : index
    %c0_96 = arith.constant 0 : index
    %c0_97 = arith.constant 0 : index
    %425 = vector.load %arg4[%c2_95, %c0_96, %c0_97] : memref<4x32x64xbf16, #tpu.memory_space<vmem>>, vector<1x32x64xbf16>
    %426 = vector.shape_cast %425 : vector<1x32x64xbf16> to vector<32x64xbf16>
    %c2_98 = arith.constant 2 : index
    %c0_99 = arith.constant 0 : index
    %c0_100 = arith.constant 0 : index
    %427 = vector.load %arg5[%c2_98, %c0_99, %c0_100] : memref<4x2x32xf32, #tpu.memory_space<vmem>>, vector<1x2x32xf32>
    %428 = vector.shape_cast %427 : vector<1x2x32xf32> to vector<2x32xf32>
    %429 = vector.extract_strided_slice %428 {offsets = [0, 0], sizes = [1, 32], strides = [1, 1]} : vector<2x32xf32> to vector<1x32xf32>
    %430 = vector.extract_strided_slice %428 {offsets = [1, 0], sizes = [1, 32], strides = [1, 1]} : vector<2x32xf32> to vector<1x32xf32>
    %431 = vector.shape_cast %2 : vector<4x1xi1> to vector<4x1xi1>
    %432 = vector.broadcast %431 : vector<4x1xi1> to vector<4x32xi1>
    %433 = vector.shape_cast %429 : vector<1x32xf32> to vector<1x32xf32>
    %434 = vector.broadcast %433 : vector<1x32xf32> to vector<4x32xf32>
    %435 = vector.shape_cast %430 : vector<1x32xf32> to vector<1x32xf32>
    %436 = vector.broadcast %435 : vector<1x32xf32> to vector<4x32xf32>
    %437 = arith.select %432, %434, %436 : vector<4x32xi1>, vector<4x32xf32>
    %cst_101 = arith.constant dense<0.000000e+00> : vector<16x64xf32>
    %438 = tpu.matmul %422, %424, %cst_101 {dimension_numbers = #tpu.dot_dimension_numbers<[1], [0], [0], [1], [0, 0, 1, 1], [], []>} : vector<16x64xbf16>, vector<64x64xbf16>, vector<16x64xf32> -> vector<16x64xf32>
    %439 = vector.extract_strided_slice %438 {offsets = [0, 0], sizes = [16, 32], strides = [1, 1]} : vector<16x64xf32> to vector<16x32xf32>
    %440 = vector.extract_strided_slice %438 {offsets = [0, 32], sizes = [16, 32], strides = [1, 1]} : vector<16x64xf32> to vector<16x32xf32>
    %441 = vector.extract_strided_slice %439 {offsets = [0, 0], sizes = [2, 32], strides = [1, 1]} : vector<16x32xf32> to vector<2x32xf32>
    %442 = vector.extract_strided_slice %440 {offsets = [14, 0], sizes = [2, 32], strides = [1, 1]} : vector<16x32xf32> to vector<2x32xf32>
    %443 = tpu.concatenate %441, %442 in 0 : vector<2x32xf32>, vector<2x32xf32> -> vector<4x32xf32>
    %444 = arith.addf %443, %437 : vector<4x32xf32>
    %445 = vector.extract_strided_slice %439 {offsets = [2, 0], sizes = [2, 32], strides = [1, 1]} : vector<16x32xf32> to vector<2x32xf32>
    %446 = vector.extract_strided_slice %440 {offsets = [12, 0], sizes = [2, 32], strides = [1, 1]} : vector<16x32xf32> to vector<2x32xf32>
    %447 = tpu.concatenate %445, %446 in 0 : vector<2x32xf32>, vector<2x32xf32> -> vector<4x32xf32>
    %448 = arith.addf %447, %437 : vector<4x32xf32>
    %449 = vector.extract_strided_slice %439 {offsets = [4, 0], sizes = [2, 32], strides = [1, 1]} : vector<16x32xf32> to vector<2x32xf32>
    %450 = vector.extract_strided_slice %440 {offsets = [10, 0], sizes = [2, 32], strides = [1, 1]} : vector<16x32xf32> to vector<2x32xf32>
    %451 = tpu.concatenate %449, %450 in 0 : vector<2x32xf32>, vector<2x32xf32> -> vector<4x32xf32>
    %452 = arith.addf %451, %437 : vector<4x32xf32>
    %453 = vector.extract_strided_slice %439 {offsets = [6, 0], sizes = [2, 32], strides = [1, 1]} : vector<16x32xf32> to vector<2x32xf32>
    %454 = vector.extract_strided_slice %440 {offsets = [8, 0], sizes = [2, 32], strides = [1, 1]} : vector<16x32xf32> to vector<2x32xf32>
    %455 = tpu.concatenate %453, %454 in 0 : vector<2x32xf32>, vector<2x32xf32> -> vector<4x32xf32>
    %456 = arith.addf %455, %437 : vector<4x32xf32>
    %457 = vector.extract_strided_slice %439 {offsets = [8, 0], sizes = [2, 32], strides = [1, 1]} : vector<16x32xf32> to vector<2x32xf32>
    %458 = vector.extract_strided_slice %440 {offsets = [6, 0], sizes = [2, 32], strides = [1, 1]} : vector<16x32xf32> to vector<2x32xf32>
    %459 = tpu.concatenate %457, %458 in 0 : vector<2x32xf32>, vector<2x32xf32> -> vector<4x32xf32>
    %460 = arith.addf %459, %437 : vector<4x32xf32>
    %461 = vector.extract_strided_slice %439 {offsets = [10, 0], sizes = [2, 32], strides = [1, 1]} : vector<16x32xf32> to vector<2x32xf32>
    %462 = vector.extract_strided_slice %440 {offsets = [4, 0], sizes = [2, 32], strides = [1, 1]} : vector<16x32xf32> to vector<2x32xf32>
    %463 = tpu.concatenate %461, %462 in 0 : vector<2x32xf32>, vector<2x32xf32> -> vector<4x32xf32>
    %464 = arith.addf %463, %437 : vector<4x32xf32>
    %465 = vector.extract_strided_slice %439 {offsets = [12, 0], sizes = [2, 32], strides = [1, 1]} : vector<16x32xf32> to vector<2x32xf32>
    %466 = vector.extract_strided_slice %440 {offsets = [2, 0], sizes = [2, 32], strides = [1, 1]} : vector<16x32xf32> to vector<2x32xf32>
    %467 = tpu.concatenate %465, %466 in 0 : vector<2x32xf32>, vector<2x32xf32> -> vector<4x32xf32>
    %468 = arith.addf %467, %437 : vector<4x32xf32>
    %469 = vector.extract_strided_slice %439 {offsets = [14, 0], sizes = [2, 32], strides = [1, 1]} : vector<16x32xf32> to vector<2x32xf32>
    %470 = vector.extract_strided_slice %440 {offsets = [0, 0], sizes = [2, 32], strides = [1, 1]} : vector<16x32xf32> to vector<2x32xf32>
    %471 = tpu.concatenate %469, %470 in 0 : vector<2x32xf32>, vector<2x32xf32> -> vector<4x32xf32>
    %472 = arith.addf %471, %437 : vector<4x32xf32>
    %cst_102 = arith.constant 0.000000e+00 : f32
    %473 = vector.broadcast %cst_102 : f32 to vector<4x32xf32>
    %474 = arith.truncf %473 : vector<4x32xf32> to vector<4x32xbf16>
    %cst_103 = arith.constant dense<0.000000e+00> : vector<4x64xf32>
    %475 = tpu.matmul %474, %426, %cst_103 {dimension_numbers = #tpu.dot_dimension_numbers<[1], [0], [0], [1], [0, 0, 1, 1], [], []>} : vector<4x32xbf16>, vector<32x64xbf16>, vector<4x64xf32> -> vector<4x64xf32>
    %476 = vector.extract_strided_slice %475 {offsets = [0, 0], sizes = [4, 32], strides = [1, 1]} : vector<4x64xf32> to vector<4x32xf32>
    %477 = vector.extract_strided_slice %475 {offsets = [0, 32], sizes = [4, 32], strides = [1, 1]} : vector<4x64xf32> to vector<4x32xf32>
    %478 = vector.shape_cast %2 : vector<4x1xi1> to vector<4x1xi1>
    %479 = vector.broadcast %478 : vector<4x1xi1> to vector<4x32xi1>
    %480 = arith.select %479, %476, %477 : vector<4x32xi1>, vector<4x32xf32>
    %481 = arith.addf %444, %480 : vector<4x32xf32>
    %482 = math.tanh %481 : vector<4x32xf32>
    %483 = vector.shape_cast %6 : vector<4x1xi1> to vector<4x1xi1>
    %484 = vector.broadcast %483 : vector<4x1xi1> to vector<4x32xi1>
    %485 = arith.select %484, %482, %473 : vector<4x32xi1>, vector<4x32xf32>
    %486 = vector.extract_strided_slice %485 {offsets = [0, 0], sizes = [2, 32], strides = [1, 1]} : vector<4x32xf32> to vector<2x32xf32>
    %487 = vector.extract_strided_slice %485 {offsets = [2, 0], sizes = [2, 32], strides = [1, 1]} : vector<4x32xf32> to vector<2x32xf32>
    %488 = arith.truncf %485 : vector<4x32xf32> to vector<4x32xbf16>
    %cst_104 = arith.constant dense<0.000000e+00> : vector<4x64xf32>
    %489 = tpu.matmul %488, %426, %cst_104 {dimension_numbers = #tpu.dot_dimension_numbers<[1], [0], [0], [1], [0, 0, 1, 1], [], []>} : vector<4x32xbf16>, vector<32x64xbf16>, vector<4x64xf32> -> vector<4x64xf32>
    %490 = vector.extract_strided_slice %489 {offsets = [0, 0], sizes = [4, 32], strides = [1, 1]} : vector<4x64xf32> to vector<4x32xf32>
    %491 = vector.extract_strided_slice %489 {offsets = [0, 32], sizes = [4, 32], strides = [1, 1]} : vector<4x64xf32> to vector<4x32xf32>
    %492 = vector.shape_cast %2 : vector<4x1xi1> to vector<4x1xi1>
    %493 = vector.broadcast %492 : vector<4x1xi1> to vector<4x32xi1>
    %494 = arith.select %493, %490, %491 : vector<4x32xi1>, vector<4x32xf32>
    %495 = arith.addf %448, %494 : vector<4x32xf32>
    %496 = math.tanh %495 : vector<4x32xf32>
    %497 = vector.shape_cast %10 : vector<4x1xi1> to vector<4x1xi1>
    %498 = vector.broadcast %497 : vector<4x1xi1> to vector<4x32xi1>
    %499 = arith.select %498, %496, %485 : vector<4x32xi1>, vector<4x32xf32>
    %500 = vector.extract_strided_slice %499 {offsets = [0, 0], sizes = [2, 32], strides = [1, 1]} : vector<4x32xf32> to vector<2x32xf32>
    %501 = vector.extract_strided_slice %499 {offsets = [2, 0], sizes = [2, 32], strides = [1, 1]} : vector<4x32xf32> to vector<2x32xf32>
    %502 = arith.truncf %499 : vector<4x32xf32> to vector<4x32xbf16>
    %cst_105 = arith.constant dense<0.000000e+00> : vector<4x64xf32>
    %503 = tpu.matmul %502, %426, %cst_105 {dimension_numbers = #tpu.dot_dimension_numbers<[1], [0], [0], [1], [0, 0, 1, 1], [], []>} : vector<4x32xbf16>, vector<32x64xbf16>, vector<4x64xf32> -> vector<4x64xf32>
    %504 = vector.extract_strided_slice %503 {offsets = [0, 0], sizes = [4, 32], strides = [1, 1]} : vector<4x64xf32> to vector<4x32xf32>
    %505 = vector.extract_strided_slice %503 {offsets = [0, 32], sizes = [4, 32], strides = [1, 1]} : vector<4x64xf32> to vector<4x32xf32>
    %506 = vector.shape_cast %2 : vector<4x1xi1> to vector<4x1xi1>
    %507 = vector.broadcast %506 : vector<4x1xi1> to vector<4x32xi1>
    %508 = arith.select %507, %504, %505 : vector<4x32xi1>, vector<4x32xf32>
    %509 = arith.addf %452, %508 : vector<4x32xf32>
    %510 = math.tanh %509 : vector<4x32xf32>
    %511 = vector.shape_cast %14 : vector<4x1xi1> to vector<4x1xi1>
    %512 = vector.broadcast %511 : vector<4x1xi1> to vector<4x32xi1>
    %513 = arith.select %512, %510, %499 : vector<4x32xi1>, vector<4x32xf32>
    %514 = vector.extract_strided_slice %513 {offsets = [0, 0], sizes = [2, 32], strides = [1, 1]} : vector<4x32xf32> to vector<2x32xf32>
    %515 = vector.extract_strided_slice %513 {offsets = [2, 0], sizes = [2, 32], strides = [1, 1]} : vector<4x32xf32> to vector<2x32xf32>
    %516 = arith.truncf %513 : vector<4x32xf32> to vector<4x32xbf16>
    %cst_106 = arith.constant dense<0.000000e+00> : vector<4x64xf32>
    %517 = tpu.matmul %516, %426, %cst_106 {dimension_numbers = #tpu.dot_dimension_numbers<[1], [0], [0], [1], [0, 0, 1, 1], [], []>} : vector<4x32xbf16>, vector<32x64xbf16>, vector<4x64xf32> -> vector<4x64xf32>
    %518 = vector.extract_strided_slice %517 {offsets = [0, 0], sizes = [4, 32], strides = [1, 1]} : vector<4x64xf32> to vector<4x32xf32>
    %519 = vector.extract_strided_slice %517 {offsets = [0, 32], sizes = [4, 32], strides = [1, 1]} : vector<4x64xf32> to vector<4x32xf32>
    %520 = vector.shape_cast %2 : vector<4x1xi1> to vector<4x1xi1>
    %521 = vector.broadcast %520 : vector<4x1xi1> to vector<4x32xi1>
    %522 = arith.select %521, %518, %519 : vector<4x32xi1>, vector<4x32xf32>
    %523 = arith.addf %456, %522 : vector<4x32xf32>
    %524 = math.tanh %523 : vector<4x32xf32>
    %525 = vector.shape_cast %18 : vector<4x1xi1> to vector<4x1xi1>
    %526 = vector.broadcast %525 : vector<4x1xi1> to vector<4x32xi1>
    %527 = arith.select %526, %524, %513 : vector<4x32xi1>, vector<4x32xf32>
    %528 = vector.extract_strided_slice %527 {offsets = [0, 0], sizes = [2, 32], strides = [1, 1]} : vector<4x32xf32> to vector<2x32xf32>
    %529 = vector.extract_strided_slice %527 {offsets = [2, 0], sizes = [2, 32], strides = [1, 1]} : vector<4x32xf32> to vector<2x32xf32>
    %530 = arith.truncf %527 : vector<4x32xf32> to vector<4x32xbf16>
    %cst_107 = arith.constant dense<0.000000e+00> : vector<4x64xf32>
    %531 = tpu.matmul %530, %426, %cst_107 {dimension_numbers = #tpu.dot_dimension_numbers<[1], [0], [0], [1], [0, 0, 1, 1], [], []>} : vector<4x32xbf16>, vector<32x64xbf16>, vector<4x64xf32> -> vector<4x64xf32>
    %532 = vector.extract_strided_slice %531 {offsets = [0, 0], sizes = [4, 32], strides = [1, 1]} : vector<4x64xf32> to vector<4x32xf32>
    %533 = vector.extract_strided_slice %531 {offsets = [0, 32], sizes = [4, 32], strides = [1, 1]} : vector<4x64xf32> to vector<4x32xf32>
    %534 = vector.shape_cast %2 : vector<4x1xi1> to vector<4x1xi1>
    %535 = vector.broadcast %534 : vector<4x1xi1> to vector<4x32xi1>
    %536 = arith.select %535, %532, %533 : vector<4x32xi1>, vector<4x32xf32>
    %537 = arith.addf %460, %536 : vector<4x32xf32>
    %538 = math.tanh %537 : vector<4x32xf32>
    %539 = vector.shape_cast %22 : vector<4x1xi1> to vector<4x1xi1>
    %540 = vector.broadcast %539 : vector<4x1xi1> to vector<4x32xi1>
    %541 = arith.select %540, %538, %527 : vector<4x32xi1>, vector<4x32xf32>
    %542 = vector.extract_strided_slice %541 {offsets = [0, 0], sizes = [2, 32], strides = [1, 1]} : vector<4x32xf32> to vector<2x32xf32>
    %543 = vector.extract_strided_slice %541 {offsets = [2, 0], sizes = [2, 32], strides = [1, 1]} : vector<4x32xf32> to vector<2x32xf32>
    %544 = arith.truncf %541 : vector<4x32xf32> to vector<4x32xbf16>
    %cst_108 = arith.constant dense<0.000000e+00> : vector<4x64xf32>
    %545 = tpu.matmul %544, %426, %cst_108 {dimension_numbers = #tpu.dot_dimension_numbers<[1], [0], [0], [1], [0, 0, 1, 1], [], []>} : vector<4x32xbf16>, vector<32x64xbf16>, vector<4x64xf32> -> vector<4x64xf32>
    %546 = vector.extract_strided_slice %545 {offsets = [0, 0], sizes = [4, 32], strides = [1, 1]} : vector<4x64xf32> to vector<4x32xf32>
    %547 = vector.extract_strided_slice %545 {offsets = [0, 32], sizes = [4, 32], strides = [1, 1]} : vector<4x64xf32> to vector<4x32xf32>
    %548 = vector.shape_cast %2 : vector<4x1xi1> to vector<4x1xi1>
    %549 = vector.broadcast %548 : vector<4x1xi1> to vector<4x32xi1>
    %550 = arith.select %549, %546, %547 : vector<4x32xi1>, vector<4x32xf32>
    %551 = arith.addf %464, %550 : vector<4x32xf32>
    %552 = math.tanh %551 : vector<4x32xf32>
    %553 = vector.shape_cast %26 : vector<4x1xi1> to vector<4x1xi1>
    %554 = vector.broadcast %553 : vector<4x1xi1> to vector<4x32xi1>
    %555 = arith.select %554, %552, %541 : vector<4x32xi1>, vector<4x32xf32>
    %556 = vector.extract_strided_slice %555 {offsets = [0, 0], sizes = [2, 32], strides = [1, 1]} : vector<4x32xf32> to vector<2x32xf32>
    %557 = vector.extract_strided_slice %555 {offsets = [2, 0], sizes = [2, 32], strides = [1, 1]} : vector<4x32xf32> to vector<2x32xf32>
    %558 = arith.truncf %555 : vector<4x32xf32> to vector<4x32xbf16>
    %cst_109 = arith.constant dense<0.000000e+00> : vector<4x64xf32>
    %559 = tpu.matmul %558, %426, %cst_109 {dimension_numbers = #tpu.dot_dimension_numbers<[1], [0], [0], [1], [0, 0, 1, 1], [], []>} : vector<4x32xbf16>, vector<32x64xbf16>, vector<4x64xf32> -> vector<4x64xf32>
    %560 = vector.extract_strided_slice %559 {offsets = [0, 0], sizes = [4, 32], strides = [1, 1]} : vector<4x64xf32> to vector<4x32xf32>
    %561 = vector.extract_strided_slice %559 {offsets = [0, 32], sizes = [4, 32], strides = [1, 1]} : vector<4x64xf32> to vector<4x32xf32>
    %562 = vector.shape_cast %2 : vector<4x1xi1> to vector<4x1xi1>
    %563 = vector.broadcast %562 : vector<4x1xi1> to vector<4x32xi1>
    %564 = arith.select %563, %560, %561 : vector<4x32xi1>, vector<4x32xf32>
    %565 = arith.addf %468, %564 : vector<4x32xf32>
    %566 = math.tanh %565 : vector<4x32xf32>
    %567 = vector.shape_cast %30 : vector<4x1xi1> to vector<4x1xi1>
    %568 = vector.broadcast %567 : vector<4x1xi1> to vector<4x32xi1>
    %569 = arith.select %568, %566, %555 : vector<4x32xi1>, vector<4x32xf32>
    %570 = vector.extract_strided_slice %569 {offsets = [0, 0], sizes = [2, 32], strides = [1, 1]} : vector<4x32xf32> to vector<2x32xf32>
    %571 = vector.extract_strided_slice %569 {offsets = [2, 0], sizes = [2, 32], strides = [1, 1]} : vector<4x32xf32> to vector<2x32xf32>
    %572 = arith.truncf %569 : vector<4x32xf32> to vector<4x32xbf16>
    %cst_110 = arith.constant dense<0.000000e+00> : vector<4x64xf32>
    %573 = tpu.matmul %572, %426, %cst_110 {dimension_numbers = #tpu.dot_dimension_numbers<[1], [0], [0], [1], [0, 0, 1, 1], [], []>} : vector<4x32xbf16>, vector<32x64xbf16>, vector<4x64xf32> -> vector<4x64xf32>
    %574 = vector.extract_strided_slice %573 {offsets = [0, 0], sizes = [4, 32], strides = [1, 1]} : vector<4x64xf32> to vector<4x32xf32>
    %575 = vector.extract_strided_slice %573 {offsets = [0, 32], sizes = [4, 32], strides = [1, 1]} : vector<4x64xf32> to vector<4x32xf32>
    %576 = vector.shape_cast %2 : vector<4x1xi1> to vector<4x1xi1>
    %577 = vector.broadcast %576 : vector<4x1xi1> to vector<4x32xi1>
    %578 = arith.select %577, %574, %575 : vector<4x32xi1>, vector<4x32xf32>
    %579 = arith.addf %472, %578 : vector<4x32xf32>
    %580 = math.tanh %579 : vector<4x32xf32>
    %581 = vector.shape_cast %34 : vector<4x1xi1> to vector<4x1xi1>
    %582 = vector.broadcast %581 : vector<4x1xi1> to vector<4x32xi1>
    %583 = arith.select %582, %580, %569 : vector<4x32xi1>, vector<4x32xf32>
    %584 = vector.extract_strided_slice %583 {offsets = [0, 0], sizes = [2, 32], strides = [1, 1]} : vector<4x32xf32> to vector<2x32xf32>
    %585 = vector.extract_strided_slice %583 {offsets = [2, 0], sizes = [2, 32], strides = [1, 1]} : vector<4x32xf32> to vector<2x32xf32>
    %586 = vector.extract_strided_slice %583 {offsets = [0, 0], sizes = [2, 32], strides = [1, 1]} : vector<4x32xf32> to vector<2x32xf32>
    %c4_111 = arith.constant 4 : index
    %c0_112 = arith.constant 0 : index
    %c0_113 = arith.constant 0 : index
    %587 = vector.load %arg9[%c4_111, %c0_112, %c0_113] : memref<8x2x32xf32, #tpu.memory_space<vmem>>, vector<1x2x32xf32>
    %588 = vector.shape_cast %587 : vector<1x2x32xf32> to vector<2x32xf32>
    %589 = vector.shape_cast %586 : vector<2x32xf32> to vector<1x2x32xf32>
    tpu.vector_store %arg9[%c4_111, %c0_112, %c0_113], %589 {strides = array<i32>} : memref<8x2x32xf32, #tpu.memory_space<vmem>>, vector<1x2x32xf32>,
    %590 = vector.extract_strided_slice %583 {offsets = [2, 0], sizes = [2, 32], strides = [1, 1]} : vector<4x32xf32> to vector<2x32xf32>
    %c5_114 = arith.constant 5 : index
    %c0_115 = arith.constant 0 : index
    %c0_116 = arith.constant 0 : index
    %591 = vector.load %arg9[%c5_114, %c0_115, %c0_116] : memref<8x2x32xf32, #tpu.memory_space<vmem>>, vector<1x2x32xf32>
    %592 = vector.shape_cast %591 : vector<1x2x32xf32> to vector<2x32xf32>
    %593 = vector.shape_cast %590 : vector<2x32xf32> to vector<1x2x32xf32>
    tpu.vector_store %arg9[%c5_114, %c0_115, %c0_116], %593 {strides = array<i32>} : memref<8x2x32xf32, #tpu.memory_space<vmem>>, vector<1x2x32xf32>,
    %594 = arith.truncf %583 : vector<4x32xf32> to vector<4x32xbf16>
    %cst_117 = arith.constant dense<0.000000e+00> : vector<4x4xf32>
    %595 = tpu.matmul %594, %35, %cst_117 {dimension_numbers = #tpu.dot_dimension_numbers<[1], [0], [0], [1], [0, 0, 1, 1], [], []>} : vector<4x32xbf16>, vector<32x4xbf16>, vector<4x4xf32> -> vector<4x4xf32>
    %596 = vector.broadcast %36 : vector<1x4xf32> to vector<4x4xf32>
    %597 = arith.addf %595, %596 : vector<4x4xf32>
    %598 = vector.extract_strided_slice %597 {offsets = [0, 0], sizes = [2, 4], strides = [1, 1]} : vector<4x4xf32> to vector<2x4xf32>
    %c4_118 = arith.constant 4 : index
    %c0_119 = arith.constant 0 : index
    %c0_120 = arith.constant 0 : index
    %599 = vector.load %arg8[%c4_118, %c0_119, %c0_120] : memref<8x2x4xf32, #tpu.memory_space<vmem>>, vector<1x2x4xf32>
    %600 = vector.shape_cast %599 : vector<1x2x4xf32> to vector<2x4xf32>
    %601 = vector.shape_cast %598 : vector<2x4xf32> to vector<1x2x4xf32>
    tpu.vector_store %arg8[%c4_118, %c0_119, %c0_120], %601 {strides = array<i32>} : memref<8x2x4xf32, #tpu.memory_space<vmem>>, vector<1x2x4xf32>,
    %602 = vector.extract_strided_slice %597 {offsets = [2, 0], sizes = [2, 4], strides = [1, 1]} : vector<4x4xf32> to vector<2x4xf32>
    %c5_121 = arith.constant 5 : index
    %c0_122 = arith.constant 0 : index
    %c0_123 = arith.constant 0 : index
    %603 = vector.load %arg8[%c5_121, %c0_122, %c0_123] : memref<8x2x4xf32, #tpu.memory_space<vmem>>, vector<1x2x4xf32>
    %604 = vector.shape_cast %603 : vector<1x2x4xf32> to vector<2x4xf32>
    %605 = vector.shape_cast %602 : vector<2x4xf32> to vector<1x2x4xf32>
    tpu.vector_store %arg8[%c5_121, %c0_122, %c0_123], %605 {strides = array<i32>} : memref<8x2x4xf32, #tpu.memory_space<vmem>>, vector<1x2x4xf32>,
    %606 = tpu.concatenate %486, %585 in 1 : vector<2x32xf32>, vector<2x32xf32> -> vector<2x64xf32>
    %607 = tpu.concatenate %500, %571 in 1 : vector<2x32xf32>, vector<2x32xf32> -> vector<2x64xf32>
    %608 = tpu.concatenate %514, %557 in 1 : vector<2x32xf32>, vector<2x32xf32> -> vector<2x64xf32>
    %609 = tpu.concatenate %528, %543 in 1 : vector<2x32xf32>, vector<2x32xf32> -> vector<2x64xf32>
    %610 = tpu.concatenate %542, %529 in 1 : vector<2x32xf32>, vector<2x32xf32> -> vector<2x64xf32>
    %611 = tpu.concatenate %556, %515 in 1 : vector<2x32xf32>, vector<2x32xf32> -> vector<2x64xf32>
    %612 = tpu.concatenate %570, %501 in 1 : vector<2x32xf32>, vector<2x32xf32> -> vector<2x64xf32>
    %613 = tpu.concatenate %584, %487 in 1 : vector<2x32xf32>, vector<2x32xf32> -> vector<2x64xf32>
    %614 = tpu.concatenate %606, %607, %608, %609, %610, %611, %612, %613 in 0 : vector<2x64xf32>, vector<2x64xf32>, vector<2x64xf32>, vector<2x64xf32>, vector<2x64xf32>, vector<2x64xf32>, vector<2x64xf32>, vector<2x64xf32> -> vector<16x64xf32>
    %615 = arith.truncf %614 : vector<16x64xf32> to vector<16x64xbf16>
    %c2_124 = arith.constant 2 : index
    %c0_125 = arith.constant 0 : index
    %c0_126 = arith.constant 0 : index
    %616 = vector.load %arg3[%c2_124, %c0_125, %c0_126] : memref<3x64x64xbf16, #tpu.memory_space<vmem>>, vector<1x64x64xbf16>
    %617 = vector.shape_cast %616 : vector<1x64x64xbf16> to vector<64x64xbf16>
    %c3_127 = arith.constant 3 : index
    %c0_128 = arith.constant 0 : index
    %c0_129 = arith.constant 0 : index
    %618 = vector.load %arg4[%c3_127, %c0_128, %c0_129] : memref<4x32x64xbf16, #tpu.memory_space<vmem>>, vector<1x32x64xbf16>
    %619 = vector.shape_cast %618 : vector<1x32x64xbf16> to vector<32x64xbf16>
    %c3_130 = arith.constant 3 : index
    %c0_131 = arith.constant 0 : index
    %c0_132 = arith.constant 0 : index
    %620 = vector.load %arg5[%c3_130, %c0_131, %c0_132] : memref<4x2x32xf32, #tpu.memory_space<vmem>>, vector<1x2x32xf32>
    %621 = vector.shape_cast %620 : vector<1x2x32xf32> to vector<2x32xf32>
    %622 = vector.extract_strided_slice %621 {offsets = [0, 0], sizes = [1, 32], strides = [1, 1]} : vector<2x32xf32> to vector<1x32xf32>
    %623 = vector.extract_strided_slice %621 {offsets = [1, 0], sizes = [1, 32], strides = [1, 1]} : vector<2x32xf32> to vector<1x32xf32>
    %624 = vector.shape_cast %2 : vector<4x1xi1> to vector<4x1xi1>
    %625 = vector.broadcast %624 : vector<4x1xi1> to vector<4x32xi1>
    %626 = vector.shape_cast %622 : vector<1x32xf32> to vector<1x32xf32>
    %627 = vector.broadcast %626 : vector<1x32xf32> to vector<4x32xf32>
    %628 = vector.shape_cast %623 : vector<1x32xf32> to vector<1x32xf32>
    %629 = vector.broadcast %628 : vector<1x32xf32> to vector<4x32xf32>
    %630 = arith.select %625, %627, %629 : vector<4x32xi1>, vector<4x32xf32>
    %cst_133 = arith.constant dense<0.000000e+00> : vector<16x64xf32>
    %631 = tpu.matmul %615, %617, %cst_133 {dimension_numbers = #tpu.dot_dimension_numbers<[1], [0], [0], [1], [0, 0, 1, 1], [], []>} : vector<16x64xbf16>, vector<64x64xbf16>, vector<16x64xf32> -> vector<16x64xf32>
    %632 = vector.extract_strided_slice %631 {offsets = [0, 0], sizes = [16, 32], strides = [1, 1]} : vector<16x64xf32> to vector<16x32xf32>
    %633 = vector.extract_strided_slice %631 {offsets = [0, 32], sizes = [16, 32], strides = [1, 1]} : vector<16x64xf32> to vector<16x32xf32>
    %634 = vector.extract_strided_slice %632 {offsets = [0, 0], sizes = [2, 32], strides = [1, 1]} : vector<16x32xf32> to vector<2x32xf32>
    %635 = vector.extract_strided_slice %633 {offsets = [14, 0], sizes = [2, 32], strides = [1, 1]} : vector<16x32xf32> to vector<2x32xf32>
    %636 = tpu.concatenate %634, %635 in 0 : vector<2x32xf32>, vector<2x32xf32> -> vector<4x32xf32>
    %637 = arith.addf %636, %630 : vector<4x32xf32>
    %638 = vector.extract_strided_slice %632 {offsets = [2, 0], sizes = [2, 32], strides = [1, 1]} : vector<16x32xf32> to vector<2x32xf32>
    %639 = vector.extract_strided_slice %633 {offsets = [12, 0], sizes = [2, 32], strides = [1, 1]} : vector<16x32xf32> to vector<2x32xf32>
    %640 = tpu.concatenate %638, %639 in 0 : vector<2x32xf32>, vector<2x32xf32> -> vector<4x32xf32>
    %641 = arith.addf %640, %630 : vector<4x32xf32>
    %642 = vector.extract_strided_slice %632 {offsets = [4, 0], sizes = [2, 32], strides = [1, 1]} : vector<16x32xf32> to vector<2x32xf32>
    %643 = vector.extract_strided_slice %633 {offsets = [10, 0], sizes = [2, 32], strides = [1, 1]} : vector<16x32xf32> to vector<2x32xf32>
    %644 = tpu.concatenate %642, %643 in 0 : vector<2x32xf32>, vector<2x32xf32> -> vector<4x32xf32>
    %645 = arith.addf %644, %630 : vector<4x32xf32>
    %646 = vector.extract_strided_slice %632 {offsets = [6, 0], sizes = [2, 32], strides = [1, 1]} : vector<16x32xf32> to vector<2x32xf32>
    %647 = vector.extract_strided_slice %633 {offsets = [8, 0], sizes = [2, 32], strides = [1, 1]} : vector<16x32xf32> to vector<2x32xf32>
    %648 = tpu.concatenate %646, %647 in 0 : vector<2x32xf32>, vector<2x32xf32> -> vector<4x32xf32>
    %649 = arith.addf %648, %630 : vector<4x32xf32>
    %650 = vector.extract_strided_slice %632 {offsets = [8, 0], sizes = [2, 32], strides = [1, 1]} : vector<16x32xf32> to vector<2x32xf32>
    %651 = vector.extract_strided_slice %633 {offsets = [6, 0], sizes = [2, 32], strides = [1, 1]} : vector<16x32xf32> to vector<2x32xf32>
    %652 = tpu.concatenate %650, %651 in 0 : vector<2x32xf32>, vector<2x32xf32> -> vector<4x32xf32>
    %653 = arith.addf %652, %630 : vector<4x32xf32>
    %654 = vector.extract_strided_slice %632 {offsets = [10, 0], sizes = [2, 32], strides = [1, 1]} : vector<16x32xf32> to vector<2x32xf32>
    %655 = vector.extract_strided_slice %633 {offsets = [4, 0], sizes = [2, 32], strides = [1, 1]} : vector<16x32xf32> to vector<2x32xf32>
    %656 = tpu.concatenate %654, %655 in 0 : vector<2x32xf32>, vector<2x32xf32> -> vector<4x32xf32>
    %657 = arith.addf %656, %630 : vector<4x32xf32>
    %658 = vector.extract_strided_slice %632 {offsets = [12, 0], sizes = [2, 32], strides = [1, 1]} : vector<16x32xf32> to vector<2x32xf32>
    %659 = vector.extract_strided_slice %633 {offsets = [2, 0], sizes = [2, 32], strides = [1, 1]} : vector<16x32xf32> to vector<2x32xf32>
    %660 = tpu.concatenate %658, %659 in 0 : vector<2x32xf32>, vector<2x32xf32> -> vector<4x32xf32>
    %661 = arith.addf %660, %630 : vector<4x32xf32>
    %662 = vector.extract_strided_slice %632 {offsets = [14, 0], sizes = [2, 32], strides = [1, 1]} : vector<16x32xf32> to vector<2x32xf32>
    %663 = vector.extract_strided_slice %633 {offsets = [0, 0], sizes = [2, 32], strides = [1, 1]} : vector<16x32xf32> to vector<2x32xf32>
    %664 = tpu.concatenate %662, %663 in 0 : vector<2x32xf32>, vector<2x32xf32> -> vector<4x32xf32>
    %665 = arith.addf %664, %630 : vector<4x32xf32>
    %cst_134 = arith.constant 0.000000e+00 : f32
    %666 = vector.broadcast %cst_134 : f32 to vector<4x32xf32>
    %667 = arith.truncf %666 : vector<4x32xf32> to vector<4x32xbf16>
    %cst_135 = arith.constant dense<0.000000e+00> : vector<4x64xf32>
    %668 = tpu.matmul %667, %619, %cst_135 {dimension_numbers = #tpu.dot_dimension_numbers<[1], [0], [0], [1], [0, 0, 1, 1], [], []>} : vector<4x32xbf16>, vector<32x64xbf16>, vector<4x64xf32> -> vector<4x64xf32>
    %669 = vector.extract_strided_slice %668 {offsets = [0, 0], sizes = [4, 32], strides = [1, 1]} : vector<4x64xf32> to vector<4x32xf32>
    %670 = vector.extract_strided_slice %668 {offsets = [0, 32], sizes = [4, 32], strides = [1, 1]} : vector<4x64xf32> to vector<4x32xf32>
    %671 = vector.shape_cast %2 : vector<4x1xi1> to vector<4x1xi1>
    %672 = vector.broadcast %671 : vector<4x1xi1> to vector<4x32xi1>
    %673 = arith.select %672, %669, %670 : vector<4x32xi1>, vector<4x32xf32>
    %674 = arith.addf %637, %673 : vector<4x32xf32>
    %675 = math.tanh %674 : vector<4x32xf32>
    %676 = vector.shape_cast %6 : vector<4x1xi1> to vector<4x1xi1>
    %677 = vector.broadcast %676 : vector<4x1xi1> to vector<4x32xi1>
    %678 = arith.select %677, %675, %666 : vector<4x32xi1>, vector<4x32xf32>
    %679 = arith.truncf %678 : vector<4x32xf32> to vector<4x32xbf16>
    %cst_136 = arith.constant dense<0.000000e+00> : vector<4x64xf32>
    %680 = tpu.matmul %679, %619, %cst_136 {dimension_numbers = #tpu.dot_dimension_numbers<[1], [0], [0], [1], [0, 0, 1, 1], [], []>} : vector<4x32xbf16>, vector<32x64xbf16>, vector<4x64xf32> -> vector<4x64xf32>
    %681 = vector.extract_strided_slice %680 {offsets = [0, 0], sizes = [4, 32], strides = [1, 1]} : vector<4x64xf32> to vector<4x32xf32>
    %682 = vector.extract_strided_slice %680 {offsets = [0, 32], sizes = [4, 32], strides = [1, 1]} : vector<4x64xf32> to vector<4x32xf32>
    %683 = vector.shape_cast %2 : vector<4x1xi1> to vector<4x1xi1>
    %684 = vector.broadcast %683 : vector<4x1xi1> to vector<4x32xi1>
    %685 = arith.select %684, %681, %682 : vector<4x32xi1>, vector<4x32xf32>
    %686 = arith.addf %641, %685 : vector<4x32xf32>
    %687 = math.tanh %686 : vector<4x32xf32>
    %688 = vector.shape_cast %10 : vector<4x1xi1> to vector<4x1xi1>
    %689 = vector.broadcast %688 : vector<4x1xi1> to vector<4x32xi1>
    %690 = arith.select %689, %687, %678 : vector<4x32xi1>, vector<4x32xf32>
    %691 = arith.truncf %690 : vector<4x32xf32> to vector<4x32xbf16>
    %cst_137 = arith.constant dense<0.000000e+00> : vector<4x64xf32>
    %692 = tpu.matmul %691, %619, %cst_137 {dimension_numbers = #tpu.dot_dimension_numbers<[1], [0], [0], [1], [0, 0, 1, 1], [], []>} : vector<4x32xbf16>, vector<32x64xbf16>, vector<4x64xf32> -> vector<4x64xf32>
    %693 = vector.extract_strided_slice %692 {offsets = [0, 0], sizes = [4, 32], strides = [1, 1]} : vector<4x64xf32> to vector<4x32xf32>
    %694 = vector.extract_strided_slice %692 {offsets = [0, 32], sizes = [4, 32], strides = [1, 1]} : vector<4x64xf32> to vector<4x32xf32>
    %695 = vector.shape_cast %2 : vector<4x1xi1> to vector<4x1xi1>
    %696 = vector.broadcast %695 : vector<4x1xi1> to vector<4x32xi1>
    %697 = arith.select %696, %693, %694 : vector<4x32xi1>, vector<4x32xf32>
    %698 = arith.addf %645, %697 : vector<4x32xf32>
    %699 = math.tanh %698 : vector<4x32xf32>
    %700 = vector.shape_cast %14 : vector<4x1xi1> to vector<4x1xi1>
    %701 = vector.broadcast %700 : vector<4x1xi1> to vector<4x32xi1>
    %702 = arith.select %701, %699, %690 : vector<4x32xi1>, vector<4x32xf32>
    %703 = arith.truncf %702 : vector<4x32xf32> to vector<4x32xbf16>
    %cst_138 = arith.constant dense<0.000000e+00> : vector<4x64xf32>
    %704 = tpu.matmul %703, %619, %cst_138 {dimension_numbers = #tpu.dot_dimension_numbers<[1], [0], [0], [1], [0, 0, 1, 1], [], []>} : vector<4x32xbf16>, vector<32x64xbf16>, vector<4x64xf32> -> vector<4x64xf32>
    %705 = vector.extract_strided_slice %704 {offsets = [0, 0], sizes = [4, 32], strides = [1, 1]} : vector<4x64xf32> to vector<4x32xf32>
    %706 = vector.extract_strided_slice %704 {offsets = [0, 32], sizes = [4, 32], strides = [1, 1]} : vector<4x64xf32> to vector<4x32xf32>
    %707 = vector.shape_cast %2 : vector<4x1xi1> to vector<4x1xi1>
    %708 = vector.broadcast %707 : vector<4x1xi1> to vector<4x32xi1>
    %709 = arith.select %708, %705, %706 : vector<4x32xi1>, vector<4x32xf32>
    %710 = arith.addf %649, %709 : vector<4x32xf32>
    %711 = math.tanh %710 : vector<4x32xf32>
    %712 = vector.shape_cast %18 : vector<4x1xi1> to vector<4x1xi1>
    %713 = vector.broadcast %712 : vector<4x1xi1> to vector<4x32xi1>
    %714 = arith.select %713, %711, %702 : vector<4x32xi1>, vector<4x32xf32>
    %715 = arith.truncf %714 : vector<4x32xf32> to vector<4x32xbf16>
    %cst_139 = arith.constant dense<0.000000e+00> : vector<4x64xf32>
    %716 = tpu.matmul %715, %619, %cst_139 {dimension_numbers = #tpu.dot_dimension_numbers<[1], [0], [0], [1], [0, 0, 1, 1], [], []>} : vector<4x32xbf16>, vector<32x64xbf16>, vector<4x64xf32> -> vector<4x64xf32>
    %717 = vector.extract_strided_slice %716 {offsets = [0, 0], sizes = [4, 32], strides = [1, 1]} : vector<4x64xf32> to vector<4x32xf32>
    %718 = vector.extract_strided_slice %716 {offsets = [0, 32], sizes = [4, 32], strides = [1, 1]} : vector<4x64xf32> to vector<4x32xf32>
    %719 = vector.shape_cast %2 : vector<4x1xi1> to vector<4x1xi1>
    %720 = vector.broadcast %719 : vector<4x1xi1> to vector<4x32xi1>
    %721 = arith.select %720, %717, %718 : vector<4x32xi1>, vector<4x32xf32>
    %722 = arith.addf %653, %721 : vector<4x32xf32>
    %723 = math.tanh %722 : vector<4x32xf32>
    %724 = vector.shape_cast %22 : vector<4x1xi1> to vector<4x1xi1>
    %725 = vector.broadcast %724 : vector<4x1xi1> to vector<4x32xi1>
    %726 = arith.select %725, %723, %714 : vector<4x32xi1>, vector<4x32xf32>
    %727 = arith.truncf %726 : vector<4x32xf32> to vector<4x32xbf16>
    %cst_140 = arith.constant dense<0.000000e+00> : vector<4x64xf32>
    %728 = tpu.matmul %727, %619, %cst_140 {dimension_numbers = #tpu.dot_dimension_numbers<[1], [0], [0], [1], [0, 0, 1, 1], [], []>} : vector<4x32xbf16>, vector<32x64xbf16>, vector<4x64xf32> -> vector<4x64xf32>
    %729 = vector.extract_strided_slice %728 {offsets = [0, 0], sizes = [4, 32], strides = [1, 1]} : vector<4x64xf32> to vector<4x32xf32>
    %730 = vector.extract_strided_slice %728 {offsets = [0, 32], sizes = [4, 32], strides = [1, 1]} : vector<4x64xf32> to vector<4x32xf32>
    %731 = vector.shape_cast %2 : vector<4x1xi1> to vector<4x1xi1>
    %732 = vector.broadcast %731 : vector<4x1xi1> to vector<4x32xi1>
    %733 = arith.select %732, %729, %730 : vector<4x32xi1>, vector<4x32xf32>
    %734 = arith.addf %657, %733 : vector<4x32xf32>
    %735 = math.tanh %734 : vector<4x32xf32>
    %736 = vector.shape_cast %26 : vector<4x1xi1> to vector<4x1xi1>
    %737 = vector.broadcast %736 : vector<4x1xi1> to vector<4x32xi1>
    %738 = arith.select %737, %735, %726 : vector<4x32xi1>, vector<4x32xf32>
    %739 = arith.truncf %738 : vector<4x32xf32> to vector<4x32xbf16>
    %cst_141 = arith.constant dense<0.000000e+00> : vector<4x64xf32>
    %740 = tpu.matmul %739, %619, %cst_141 {dimension_numbers = #tpu.dot_dimension_numbers<[1], [0], [0], [1], [0, 0, 1, 1], [], []>} : vector<4x32xbf16>, vector<32x64xbf16>, vector<4x64xf32> -> vector<4x64xf32>
    %741 = vector.extract_strided_slice %740 {offsets = [0, 0], sizes = [4, 32], strides = [1, 1]} : vector<4x64xf32> to vector<4x32xf32>
    %742 = vector.extract_strided_slice %740 {offsets = [0, 32], sizes = [4, 32], strides = [1, 1]} : vector<4x64xf32> to vector<4x32xf32>
    %743 = vector.shape_cast %2 : vector<4x1xi1> to vector<4x1xi1>
    %744 = vector.broadcast %743 : vector<4x1xi1> to vector<4x32xi1>
    %745 = arith.select %744, %741, %742 : vector<4x32xi1>, vector<4x32xf32>
    %746 = arith.addf %661, %745 : vector<4x32xf32>
    %747 = math.tanh %746 : vector<4x32xf32>
    %748 = vector.shape_cast %30 : vector<4x1xi1> to vector<4x1xi1>
    %749 = vector.broadcast %748 : vector<4x1xi1> to vector<4x32xi1>
    %750 = arith.select %749, %747, %738 : vector<4x32xi1>, vector<4x32xf32>
    %751 = arith.truncf %750 : vector<4x32xf32> to vector<4x32xbf16>
    %cst_142 = arith.constant dense<0.000000e+00> : vector<4x64xf32>
    %752 = tpu.matmul %751, %619, %cst_142 {dimension_numbers = #tpu.dot_dimension_numbers<[1], [0], [0], [1], [0, 0, 1, 1], [], []>} : vector<4x32xbf16>, vector<32x64xbf16>, vector<4x64xf32> -> vector<4x64xf32>
    %753 = vector.extract_strided_slice %752 {offsets = [0, 0], sizes = [4, 32], strides = [1, 1]} : vector<4x64xf32> to vector<4x32xf32>
    %754 = vector.extract_strided_slice %752 {offsets = [0, 32], sizes = [4, 32], strides = [1, 1]} : vector<4x64xf32> to vector<4x32xf32>
    %755 = vector.shape_cast %2 : vector<4x1xi1> to vector<4x1xi1>
    %756 = vector.broadcast %755 : vector<4x1xi1> to vector<4x32xi1>
    %757 = arith.select %756, %753, %754 : vector<4x32xi1>, vector<4x32xf32>
    %758 = arith.addf %665, %757 : vector<4x32xf32>
    %759 = math.tanh %758 : vector<4x32xf32>
    %760 = vector.shape_cast %34 : vector<4x1xi1> to vector<4x1xi1>
    %761 = vector.broadcast %760 : vector<4x1xi1> to vector<4x32xi1>
    %762 = arith.select %761, %759, %750 : vector<4x32xi1>, vector<4x32xf32>
    %763 = vector.extract_strided_slice %762 {offsets = [0, 0], sizes = [2, 32], strides = [1, 1]} : vector<4x32xf32> to vector<2x32xf32>
    %c6_143 = arith.constant 6 : index
    %c0_144 = arith.constant 0 : index
    %c0_145 = arith.constant 0 : index
    %764 = vector.load %arg9[%c6_143, %c0_144, %c0_145] : memref<8x2x32xf32, #tpu.memory_space<vmem>>, vector<1x2x32xf32>
    %765 = vector.shape_cast %764 : vector<1x2x32xf32> to vector<2x32xf32>
    %766 = vector.shape_cast %763 : vector<2x32xf32> to vector<1x2x32xf32>
    tpu.vector_store %arg9[%c6_143, %c0_144, %c0_145], %766 {strides = array<i32>} : memref<8x2x32xf32, #tpu.memory_space<vmem>>, vector<1x2x32xf32>,
    %767 = vector.extract_strided_slice %762 {offsets = [2, 0], sizes = [2, 32], strides = [1, 1]} : vector<4x32xf32> to vector<2x32xf32>
    %c7_146 = arith.constant 7 : index
    %c0_147 = arith.constant 0 : index
    %c0_148 = arith.constant 0 : index
    %768 = vector.load %arg9[%c7_146, %c0_147, %c0_148] : memref<8x2x32xf32, #tpu.memory_space<vmem>>, vector<1x2x32xf32>
    %769 = vector.shape_cast %768 : vector<1x2x32xf32> to vector<2x32xf32>
    %770 = vector.shape_cast %767 : vector<2x32xf32> to vector<1x2x32xf32>
    tpu.vector_store %arg9[%c7_146, %c0_147, %c0_148], %770 {strides = array<i32>} : memref<8x2x32xf32, #tpu.memory_space<vmem>>, vector<1x2x32xf32>,
    %771 = arith.truncf %762 : vector<4x32xf32> to vector<4x32xbf16>
    %cst_149 = arith.constant dense<0.000000e+00> : vector<4x4xf32>
    %772 = tpu.matmul %771, %35, %cst_149 {dimension_numbers = #tpu.dot_dimension_numbers<[1], [0], [0], [1], [0, 0, 1, 1], [], []>} : vector<4x32xbf16>, vector<32x4xbf16>, vector<4x4xf32> -> vector<4x4xf32>
    %773 = vector.broadcast %36 : vector<1x4xf32> to vector<4x4xf32>
    %774 = arith.addf %772, %773 : vector<4x4xf32>
    %775 = vector.extract_strided_slice %774 {offsets = [0, 0], sizes = [2, 4], strides = [1, 1]} : vector<4x4xf32> to vector<2x4xf32>
    %c6_150 = arith.constant 6 : index
    %c0_151 = arith.constant 0 : index
    %c0_152 = arith.constant 0 : index
    %776 = vector.load %arg8[%c6_150, %c0_151, %c0_152] : memref<8x2x4xf32, #tpu.memory_space<vmem>>, vector<1x2x4xf32>
    %777 = vector.shape_cast %776 : vector<1x2x4xf32> to vector<2x4xf32>
    %778 = vector.shape_cast %775 : vector<2x4xf32> to vector<1x2x4xf32>
    tpu.vector_store %arg8[%c6_150, %c0_151, %c0_152], %778 {strides = array<i32>} : memref<8x2x4xf32, #tpu.memory_space<vmem>>, vector<1x2x4xf32>,
    %779 = vector.extract_strided_slice %774 {offsets = [2, 0], sizes = [2, 4], strides = [1, 1]} : vector<4x4xf32> to vector<2x4xf32>
    %c7_153 = arith.constant 7 : index
    %c0_154 = arith.constant 0 : index
    %c0_155 = arith.constant 0 : index
    %780 = vector.load %arg8[%c7_153, %c0_154, %c0_155] : memref<8x2x4xf32, #tpu.memory_space<vmem>>, vector<1x2x4xf32>
    %781 = vector.shape_cast %780 : vector<1x2x4xf32> to vector<2x4xf32>
    %782 = vector.shape_cast %779 : vector<2x4xf32> to vector<1x2x4xf32>
    tpu.vector_store %arg8[%c7_153, %c0_154, %c0_155], %782 {strides = array<i32>} : memref<8x2x4xf32, #tpu.memory_space<vmem>>, vector<1x2x4xf32>,
    return
  }
}

</mosaic_0001>

<bundles_post_ra>
// kernel: my_rnn_forward.1
= control target key start
LH: loop header
LB: loop body
LE: loop exit
PB: predicated region body
PF: predicated region fallthrough
CT: control target
= control target key end

     0   :  { %v3590_v1 = vmov 0.0   ;;  %vm3591_vm0 = vmmov 0   ;;  %vm95_vm1 = vcmask 130048   ;;  %v3592_v5 = vmov 0   ;;  %s4786_s0 = inlined_call_operand.vmem [shape: bf16[16,16], index: 0, kind: input, shape index: {}]   ;;  %s4787_s1 = inlined_call_operand.vmem [shape: f32[8,4,1], index: 1, kind: input, shape index: {}]   ;;  %s4788_s2 = inlined_call_operand.vmem [shape: bf16[16,64], index: 2, kind: input, shape index: {}]   ;;  %s4789_s3 = inlined_call_operand.vmem [shape: bf16[3,64,64], index: 3, kind: input, shape index: {}]   ;;  %s4790_s4 = inlined_call_operand.vmem [shape: bf16[4,32,64], index: 4, kind: input, shape index: {}]   ;;  %s4791_s5 = inlined_call_operand.vmem [shape: f32[4,2,32], index: 5, kind: input, shape index: {}]   ;;  %s4792_s6 = inlined_call_operand.vmem [shape: bf16[32,4], index: 6, kind: input, shape index: {}]   ;;  %s4793_s7 = inlined_call_operand.vmem [shape: f32[1,4], index: 7, kind: input, shape index: {}]   ;;  %s4794_s8 = inlined_call_operand.vmem [shape: f32[8,2,4], index: 8, kind: output, shape index: {0}]   ;;  %s4795_s9 = inlined_call_operand.hbm [shape: f32[8,2,32], index: 9, kind: output, shape index: {1}]  }
   0x1   :  { %v3475_v0 = vld [vmem:[%s4788_s2] sm:$0xff]   ;;  %3076 = vmatprep.subr.bf16.mxu0 %v3590_v1  ;;  %3082 = vmatprep.subr.bf16.mxu1 %v3590_v1  ;;  %v3666_v4 = vld [vmem:[%s4790_s4 + $0x8] sm:$0xff]  }
   0x2   :  { %v3655_v2 = vld [vmem:[%s4790_s4] sm:$0xff]   ;;  %3077 = vmatpush3.bf16.msra.mxu0 %v3475_v0  ;;  %3078 = vmatprep.mubr.msk.bf16.mxu0 %vm3591_vm0, %v3590_v1 }
   0x3   :  { %v3477_v3 = vld [vmem:[%s4786_s0] sm:$0xff]   ;;  %3083 = vmatpush3.bf16.msra.mxu1 %v3655_v2  ;;  %3086 = vmatprep.mubr.msk.bf16.mxu1 %vm3591_vm0, %v3590_v1 }
   0x4   :  { %3084 = vmatprep.subr.bf16.mxu1 %v3590_v1  ;;  %3413 = vset.pattern.permute.xlu1 %v3592_v5  ;;  %v36_v6 = vld [vmem:[%s4787_s1] sm:$0xf] }
   0x5   :  { %3079 = vmatmul.mubr.msk.bf16.vlgmr.msra.gmra.mrb[0].mxu0 %vm95_vm1, %v3477_v3  ;;  %vm37_vm2 = vcmp.gt.f32.partialorder %v36_v6, 0.5  ;;  %3090 = vmatprep.subr.bf16.mxu0 %v3590_v1 }
   0x6   :  { %v258_v7 = vsel %vm37_vm2, 1, %v3592_v5  ;;  %3091 = vmatpush3.bf16.msra.mxu0 %v3655_v2  ;;  %3094 = vmatprep.mubr.msk.bf16.mxu0 %vm3591_vm0, %v3590_v1 }
   0x7   :  { %3085 = vmatpush3.bf16.msra.mxu1 %v3666_v4  ;;  %260 = vperm.xlu1 %3413, %v258_v7  }
   0x8   :  { %3092 = vmatprep.subr.bf16.mxu0 %v3590_v1  ;;  %3098 = vmatprep.subr.bf16.mxu1 %v3590_v1 }
   0x9   :  { %3414 = vset.pattern.permute.xlu0 %v3592_v5 }
   0xa   :  { %3087 = vmatmul.mubr.bf16.vlgmr.msra.gmra.mrb[0].mxu1 %v3592_v5  ;;  %3093 = vmatpush3.bf16.msra.mxu0 %v3666_v4 }
   0xb   :  { %3099 = vmatpush3.bf16.msra.mxu1 %v3655_v2  ;;  %3102 = vmatprep.mubr.msk.bf16.mxu1 %vm3591_vm0, %v3590_v1 }
   0xc   :  { %3100 = vmatprep.subr.bf16.mxu1 %v3590_v1  ;;  %3106 = vmatprep.subr.bf16.mxu0 %v3590_v1 }
   0xf   :  { %3101 = vmatpush3.bf16.msra.mxu1 %v3666_v4 }
  0x10   :  { %3114 = vmatprep.subr.bf16.mxu1 %v3590_v1 }
  0x11   :  { %15 = vsyncpa [#allocation3], 0  ;;  %v2845_v9 = vld [vmem:[%s4787_s1 + $0x4] sm:$0xf]  ;;  %s3593_s19 = smov 96   ;;  %v33_v20 = vlaneseq  ;;  %vm145_vm4 = vcmask 1041408  }
  0x12   :  { %vm40_vm3 = vcmp.gt.f32.partialorder %v2845_v9, 0.5  ;;  %v72_v24 = vld [vmem:[%s4791_s5] sm:$0x3]  ;;  %vm207_vm7 = vcmask 261120   ;;  %v2846_v42 = vld [vmem:[%s4787_s1 + $0x8] sm:$0xf] }
  0x13   :  { %v315_v17 = vsel %vm40_vm3, 1, %v3592_v5  ;;  %v3710_v21 = vshrl.u32 %v33_v20, 7  ;;  %vm43_vm8 = vcmp.gt.f32.partialorder %v2846_v42, 0.5  ;;  %v2847_v55 = vld [vmem:[%s4787_s1 + $0xc] sm:$0xf] }
  0x14   :  { %v372_v43 = vsel %vm43_vm8, 1, %v3592_v5  ;;  %vm46_vm10 = vcmp.gt.f32.partialorder %v2847_v55, 0.5 }
  0x15   :  { %v3713_v22 = vsub.s32 0, %v3710_v21  ;;  %v3716_v23 = vsub.s32 1, %v3710_v21  ;;  %vm35_vm5 = vcmp.lt.s32.totalorder %v3710_v21, 2  ;;  %v429_v56 = vsel %vm46_vm10, 1, %v3592_v5 }
  0x16   :  { %vm4800_vm10 = vcmask 254976  }
  0x17   :  { %v78_v25 = vrot.slane %v72_v24, %v3713_v22  ;;  %v82_v26 = vrot.slane %v72_v24, %v3716_v23 }
  0x19   :  { %v3726_v28 = vsel %vm35_vm5, %v78_v25, %v82_v26 }
  0x86   :  { %v3733_v34 = vpop.permute.xlu1 %260 }
  0x87   :  { %vm262_vm6 = vcmp.eq.s32.totalorder %v3733_v34, 1 }
  0xd8   :  { %v3693_v8 = vpop.f32.mrb[0].mxu0 }
  0xd9   :  { %v3080_v10 = vpop.f32.mrb[1].mxu0  ;;  %v149_v45 = vrot.slane %v3693_v8, 2  ;;  %v157_v63 = vrot.slane %v3693_v8, 4 }
  0xda   :  { %v3698_v11 = vpop.f32.mrb[2].mxu0 }
  0xdb   :  { %v3081_v12 = vpop.f32.mrb[3].mxu0  ;;  %v141_v13 = vrot.slane %v3698_v11, 4  ;;  %v151_v14 = vrot.slane %v3698_v11, 2  ;;  %v166_v61 = vrot.slane %v3698_v11, 6 }
  0xdd   :  { %v245_v15 = vpop.f32.mrb[0].mxu1  ;;  %142 = vrot.lane.b32.xlu0 %v141_v13, %s3593_s19  ;;  %152 = vrot.lane.b32.xlu1 %v151_v14, %s3593_s19 }
  0xde   :  { %v3088_v16 = vpop.f32.mrb[1].mxu1 }
  0xdf   :  { %v248_v18 = vpop.f32.mrb[2].mxu1 }
  0xe0   :  { %v3089_v19 = vpop.f32.mrb[3].mxu1  ;;  %v2848_v18 = vld [vmem:[%s4787_s1 + $0x10] sm:$0xf] }
  0xe1   :  { %252 = vrot.lane.b32.xlu0 %v245_v15, %s3593_s19  ;;  %317 = vperm.xlu1 %3413, %v315_v17   ;;  %vm49_vm12 = vcmp.gt.f32.partialorder %v2848_v18, 0.5 }
  0xe2   :  { %v486_v25 = vsel %vm49_vm12, 1, %v3592_v5  ;;  %vm4796_vm12 = vcmask 257026  }
 0x14f   :  { %v143_v27 = vpop.permute.xlu0 %142  ;;  %v153_v44 = vpop.permute.xlu1 %152 }
 0x150   :  { %v146_v29 = vsel %vm145_vm4, %v3693_v8, %v143_v27  ;;  %v155_v46 = vsel %vm145_vm4, %v149_v45, %v153_v44  ;;  %v164_v27 = vrot.slane %v3693_v8, 6 }
 0x151   :  { %v147_v30 = vadd.f32 %v146_v29, %v3726_v28  ;;  %v156_v47 = vadd.f32 %v155_v46, %v3726_v28 }
 0x153   :  { %v253_v31 = vpop.permute.xlu0 %252 }
 0x154   :  { %v255_v32 = vsel %vm35_vm5, %v245_v15, %v253_v31 }
 0x155   :  { %v256_v33 = vadd.f32 %v255_v32, %v147_v30 }
 0x157   :  { %3499 = vtanh.f32 %v256_v33 }
 0x160   :  { %v3763_v51 = vpop.permute.xlu1 %317 }
 0x161   :  { %v3500_v35 = vpop.eup %3499  ;;  %vm319_vm9 = vcmp.eq.s32.totalorder %v3763_v51, 1 }
 0x162   :  { %v3738_v36 = vsel %vm262_vm6, %v3500_v35, 0.0 }
 0x163   :  { %v264_v37 = vpack.c.bf16 %v3738_v36, %v3738_v36 }
 0x165   :  { %3095 = vmatmul.mubr.msk.bf16.vlgmr.msra.gmra.mrb[4].mxu0 %vm207_vm7, %v264_v37 }
 0x166   :  { %3107 = vmatpush3.bf16.msra.mxu0 %v3655_v2  ;;  %3110 = vmatprep.mubr.msk.bf16.mxu0 %vm3591_vm0, %v3590_v1 }
 0x167   :  { %3108 = vmatprep.subr.bf16.mxu0 %v3590_v1 }
 0x16a   :  { %3109 = vmatpush3.bf16.msra.mxu0 %v3666_v4 }
 0x16b   :  { %3122 = vmatprep.subr.bf16.mxu0 %v3590_v1 }
 0x238   :  { %v302_v38 = vpop.f32.mrb[4].mxu0 }
 0x239   :  { %309 = vrot.lane.b32.xlu0 %v302_v38, %s3593_s19  ;;  %v3096_v39 = vpop.f32.mrb[5].mxu0 }
 0x23a   :  { %v305_v40 = vpop.f32.mrb[6].mxu0 }
 0x23b   :  { %v3097_v41 = vpop.f32.mrb[7].mxu0 }
 0x23c   :  { %v2849_v41 = vld [vmem:[%s4787_s1 + $0x14] sm:$0xf] }
 0x23d   :  { %159 = vrot.lane.b32.xlu0 %v3698_v11, %s3593_s19  ;;  %vm52_vm14 = vcmp.gt.f32.partialorder %v2849_v41, 0.5 }
 0x23e   :  { %v543_v46 = vsel %vm52_vm14, 1, %v3592_v5 }
 0x241   :  { %374 = vperm.xlu0 %3414, %v372_v43  }
 0x245   :  { %431 = vperm.xlu0 %3414, %v429_v56  }
 0x2ab   :  { %v310_v48 = vpop.permute.xlu0 %309 }
 0x2ac   :  { %v312_v49 = vsel %vm35_vm5, %v302_v38, %v310_v48 }
 0x2ad   :  { %v313_v50 = vadd.f32 %v312_v49, %v156_v47 }
 0x2af   :  { %3501 = vtanh.f32 %v313_v50  ;;  %v160_v62 = vpop.permute.xlu0 %159 }
 0x2b0   :  { %v162_v0 = vsel %vm145_vm4, %v157_v63, %v160_v62 }
 0x2b1   :  { %v163_v3 = vadd.f32 %v162_v0, %v3726_v28 }
 0x2b9   :  { %v3502_v52 = vpop.eup %3501 }
 0x2ba   :  { %v3769_v53 = vsel %vm319_vm9, %v3502_v52, %v3738_v36 }
 0x2bb   :  { %v321_v54 = vpack.c.bf16 %v3769_v53, %v3769_v53 }
 0x2bd   :  { %3103 = vmatmul.mubr.msk.bf16.vlgmr.msra.gmra.mrb[4].mxu1 %vm207_vm7, %v321_v54 }
 0x2be   :  { %3115 = vmatpush3.bf16.msra.mxu1 %v3655_v2  ;;  %3118 = vmatprep.mubr.msk.bf16.mxu1 %vm3591_vm0, %v3590_v1 }
 0x2bf   :  { %3116 = vmatprep.subr.bf16.mxu1 %v3590_v1 }
 0x2c0   :  { %v3794_v10 = vpop.permute.xlu0 %374 }
 0x2c1   :  { %vm376_vm11 = vcmp.eq.s32.totalorder %v3794_v10, 1 }
 0x2c2   :  { %3117 = vmatpush3.bf16.msra.mxu1 %v3666_v4 }
 0x2c3   :  { %3130 = vmatprep.subr.bf16.mxu1 %v3590_v1 }
 0x2c4   :  { %v3824_v35 = vpop.permute.xlu0 %431 }
 0x2c5   :  { %vm433_vm13 = vcmp.eq.s32.totalorder %v3824_v35, 1 }
 0x390   :  { %v359_v57 = vpop.f32.mrb[4].mxu1 }
 0x391   :  { %366 = vrot.lane.b32.xlu1 %v359_v57, %s3593_s19  ;;  %v3104_v58 = vpop.f32.mrb[5].mxu1 }
 0x392   :  { %v362_v59 = vpop.f32.mrb[6].mxu1 }
 0x393   :  { %v3105_v60 = vpop.f32.mrb[7].mxu1  ;;  %v2850_v59 = vld [vmem:[%s4787_s1 + $0x18] sm:$0xf] }
 0x394   :  { %vm55_vm1 = vcmp.gt.f32.partialorder %v2850_v59, 0.5  ;;  %v3483_v59 = vld [vmem:[%s4789_s3] sm:$0xff]  }
 0x395   :  { %167 = vrot.lane.b32.xlu1 %v166_v61, %s3593_s19 }
 0x403   :  { %v367_v6 = vpop.permute.xlu1 %366 }
 0x404   :  { %v369_v7 = vsel %vm35_vm5, %v359_v57, %v367_v6 }
 0x405   :  { %v370_v9 = vadd.f32 %v369_v7, %v163_v3 }
 0x407   :  { %3503 = vtanh.f32 %v370_v9  ;;  %v168_v26 = vpop.permute.xlu1 %167 }
 0x408   :  { %v170_v29 = vsel %vm145_vm4, %v164_v27, %v168_v26 }
 0x409   :  { %v171_v30 = vadd.f32 %v170_v29, %v3726_v28 }
 0x411   :  { %v3504_v12 = vpop.eup %3503 }
 0x412   :  { %v3800_v15 = vsel %vm376_vm11, %v3504_v12, %v3769_v53 }
 0x413   :  { %v378_v16 = vpack.c.bf16 %v3800_v15, %v3800_v15 }
 0x415   :  { %3111 = vmatmul.mubr.msk.bf16.vlgmr.msra.gmra.mrb[8].mxu0 %vm207_vm7, %v378_v16 }
 0x416   :  { %3123 = vmatpush3.bf16.msra.mxu0 %v3655_v2  ;;  %3126 = vmatprep.mubr.msk.bf16.mxu0 %vm3591_vm0, %v3590_v1 }
 0x417   :  { %3124 = vmatprep.subr.bf16.mxu0 %v3590_v1 }
 0x41a   :  { %3125 = vmatpush3.bf16.msra.mxu0 %v3666_v4 }
 0x41b   :  { %3138 = vmatprep.subr.bf16.mxu0 %v3590_v1 }
 0x4e8   :  { %v416_v17 = vpop.f32.mrb[8].mxu0 }
 0x4e9   :  { %423 = vrot.lane.b32.xlu1 %v416_v17, %s3593_s19  ;;  %v3112_v19 = vpop.f32.mrb[9].mxu0 }
 0x4ea   :  { %v419_v20 = vpop.f32.mrb[10].mxu0  ;;  %v2851_v19 = vld [vmem:[%s4787_s1 + $0x1c] sm:$0xf]  ;;  %s3594_s1 = smov 32  }
 0x4eb   :  { %v3113_v24 = vpop.f32.mrb[11].mxu0  ;;  %vm58_vm3 = vcmp.gt.f32.partialorder %v2851_v19, 0.5 }
 0x4ec   :  { %v657_v26 = vsel %vm58_vm3, 1, %v3592_v5  ;;  %vm4797_vm3 = vcmask 1045504  }
 0x4ed   :  { %172 = vrot.lane.b32.xlu1 %v157_v63, %s3593_s19 }
 0x4f1   :  { %488 = vperm.xlu1 %3413, %v486_v25  }
 0x55b   :  { %v424_v31 = vpop.permute.xlu1 %423 }
 0x55c   :  { %v426_v32 = vsel %vm35_vm5, %v416_v17, %v424_v31 }
 0x55d   :  { %v427_v33 = vadd.f32 %v426_v32, %v171_v30  ;;  %v772_v30 = vrot.slane %v3769_v53, 2 }
 0x55f   :  { %3505 = vtanh.f32 %v427_v33  ;;  %v173_v47 = vpop.permute.xlu1 %172  ;;  %v778_v33 = vrot.slane %v3738_v36, 2 }
 0x560   :  { %v175_v48 = vsel %vm145_vm4, %v3698_v11, %v173_v47  ;;  %v3933_v47 = vld [vmem:[%s4792_s6] sm:$0xff]   ;;  %v3486_v11 = vld [vmem:[%s4789_s3 + $0x18] sm:$0xff]  }
 0x561   :  { %v176_v49 = vadd.f32 %v175_v48, %v3726_v28  ;;  %v3939_v48 = vld [vmem:[%s4792_s6 + $0x8] sm:$0xff]  }
 0x569   :  { %v3506_v37 = vpop.eup %3505 }
 0x56a   :  { %v3830_v38 = vsel %vm433_vm13, %v3506_v37, %v3800_v15 }
 0x56b   :  { %v435_v39 = vpack.c.bf16 %v3830_v38, %v3830_v38  ;;  %v760_v32 = vrot.slane %v3830_v38, 2 }
 0x56d   :  { %3119 = vmatmul.mubr.msk.bf16.vlgmr.msra.gmra.mrb[8].mxu1 %vm207_vm7, %v435_v39  ;;  %v3430_v37 = vpack.i.bf16 %v778_v33, %v760_v32 }
 0x56e   :  { %3131 = vmatpush3.bf16.msra.mxu1 %v3655_v2  ;;  %3134 = vmatprep.mubr.msk.bf16.mxu1 %vm3591_vm0, %v3590_v1 }
 0x56f   :  { %3132 = vmatprep.subr.bf16.mxu1 %v3590_v1 }
 0x570   :  { %v3854_v55 = vpop.permute.xlu1 %488 }
 0x571   :  { %vm490_vm15 = vcmp.eq.s32.totalorder %v3854_v55, 1 }
 0x572   :  { %3133 = vmatpush3.bf16.msra.mxu1 %v3666_v4 }
 0x573   :  { %3146 = vmatprep.subr.bf16.mxu1 %v3590_v1 }
 0x640   :  { %v473_v40 = vpop.f32.mrb[8].mxu1 }
 0x641   :  { %480 = vrot.lane.b32.xlu0 %v473_v40, %s3593_s19  ;;  %v3120_v42 = vpop.f32.mrb[9].mxu1 }
 0x642   :  { %v476_v43 = vpop.f32.mrb[10].mxu1 }
 0x643   :  { %v3121_v44 = vpop.f32.mrb[11].mxu1 }
 0x645   :  { %178 = vrot.lane.b32.xlu0 %v149_v45, %s3593_s19 }
 0x649   :  { %545 = vperm.xlu0 %3414, %v543_v46  }
 0x6b3   :  { %v481_v50 = vpop.permute.xlu0 %480 }
 0x6b4   :  { %v483_v52 = vsel %vm35_vm5, %v473_v40, %v481_v50 }
 0x6b5   :  { %v484_v54 = vadd.f32 %v483_v52, %v176_v49 }
 0x6b7   :  { %3507 = vtanh.f32 %v484_v54  ;;  %v766_v54 = vrot.slane %v3800_v15, 2 }
 0x6c1   :  { %v3508_v56 = vpop.eup %3507 }
 0x6c2   :  { %v3860_v45 = vsel %vm490_vm15, %v3508_v56, %v3830_v38 }
 0x6c3   :  { %v492_v57 = vpack.c.bf16 %v3860_v45, %v3860_v45 }
 0x6c5   :  { %3127 = vmatmul.mubr.msk.bf16.vlgmr.msra.gmra.mrb[12].mxu0 %vm207_vm7, %v492_v57 }
 0x6c6   :  { %3139 = vmatpush3.bf16.msra.mxu0 %v3655_v2  ;;  %3142 = vmatprep.mubr.msk.bf16.mxu0 %vm3591_vm0, %v3590_v1  ;;  %v600_v2 = vsel %vm55_vm1, 1, %v3592_v5  ;;  %vm4798_vm1 = vcmask 1043456  }
 0x6c7   :  { %3140 = vmatprep.subr.bf16.mxu0 %v3590_v1 }
 0x6ca   :  { %3141 = vmatpush3.bf16.msra.mxu0 %v3666_v4  ;;  %v179_v4 = vpop.permute.xlu0 %178 }
 0x6cb   :  { %3154 = vmatprep.subr.bf16.mxu0 %v3590_v1  ;;  %v181_v0 = vsel %vm145_vm4, %v151_v14, %v179_v4 }
 0x6cc   :  { %v182_v3 = vadd.f32 %v181_v0, %v3726_v28 }
 0x6ce   :  { %v3884_v12 = vpop.permute.xlu0 %545 }
 0x6cf   :  { %vm4802_vm2 = vcmp.eq.s32.totalorder %v3884_v12, 1 }
 0x798   :  { %v530_v58 = vpop.f32.mrb[12].mxu0 }
 0x799   :  { %537 = vrot.lane.b32.xlu1 %v530_v58, %s3593_s19  ;;  %v3128_v60 = vpop.f32.mrb[13].mxu0 }
 0x79a   :  { %v533_v62 = vpop.f32.mrb[14].mxu0  ;;  %v3484_v60 = vld [vmem:[%s4789_s3 + $0x8] sm:$0xff]  }
 0x79b   :  { %v3129_v63 = vpop.f32.mrb[15].mxu0 }
 0x79d   :  { %184 = vrot.lane.b32.xlu1 %v3693_v8, %s3593_s19 }
 0x7a1   :  { %602 = vperm.xlu1 %3413, %v600_v2  }
 0x80b   :  { %v538_v6 = vpop.permute.xlu1 %537 }
 0x80c   :  { %v540_v7 = vsel %vm35_vm5, %v530_v58, %v538_v6  ;;  %v3485_v6 = vld [vmem:[%s4789_s3 + $0x10] sm:$0xff]  }
 0x80d   :  { %v541_v9 = vadd.f32 %v540_v7, %v182_v3 }
 0x80f   :  { %3509 = vtanh.f32 %v541_v9  ;;  %v185_v8 = vpop.permute.xlu1 %184  ;;  %v3979_v9 = vld [vmem:[%s4790_s4 + $0x10] sm:$0xff]  }
 0x819   :  { %v3510_v16 = vpop.eup %3509 }
 0x81a   :  { %v3890_v17 = vsel %vm4802_vm2, %v3510_v16, %v3860_v45 }
 0x81b   :  { %v549_v14 = vpack.c.bf16 %v3890_v17, %v3890_v17  ;;  %v748_v29 = vrot.slane %v3890_v17, 2 }
 0x81d   :  { %3135 = vmatmul.mubr.msk.bf16.vlgmr.msra.gmra.mrb[12].mxu1 %vm207_vm7, %v549_v14  ;;  %v3420_v31 = vpack.i.bf16 %v772_v30, %v748_v29 }
 0x81e   :  { %3150 = vmatprep.mubr.msk.bf16.mxu1 %vm3591_vm0, %v3590_v1  ;;  %3147 = vmatpush3.bf16.msra.mxu1 %v3933_v47 }
 0x81f   :  { %3148 = vmatprep.subr.bf16.mxu1 %v3590_v1 }
 0x820   :  { %v3917_v43 = vpop.permute.xlu1 %602 }
 0x821   :  { %vm4799_vm8 = vcmp.eq.s32.totalorder %v3917_v43, 1 }
 0x822   :  { %3149 = vmatpush3.bf16.msra.mxu1 %v3939_v48 }
 0x823   :  { %3166 = vmatprep.subr.bf16.mxu1 %v3590_v1 }
 0x8f0   :  { %v587_v18 = vpop.f32.mrb[12].mxu1 }
 0x8f1   :  { %594 = vrot.lane.b32.xlu0 %v587_v18, %s3593_s19  ;;  %v3136_v20 = vpop.f32.mrb[13].mxu1 }
 0x8f2   :  { %v590_v24 = vpop.f32.mrb[14].mxu1  ;;  %v3989_v20 = vld [vmem:[%s4790_s4 + $0x18] sm:$0xff]  }
 0x8f3   :  { %v3137_v25 = vpop.f32.mrb[15].mxu1 }
 0x8f5   :  { %190 = vrot.lane.b32.xlu0 %v164_v27, %s3593_s19  ;;  %v187_v27 = vsel %vm145_vm4, %v141_v13, %v185_v8 }
 0x8f6   :  { %v188_v39 = vadd.f32 %v187_v27, %v3726_v28 }
 0x8f9   :  { %659 = vperm.xlu0 %3414, %v657_v26  }
 0x8fd   :  { %3421 = vrot.lane.b32.xlu0 %v3420_v31, %s3594_s1 }
 0x901   :  { %3431 = vrot.lane.b32.xlu0 %v3430_v37, %s3594_s1 }
 0x963   :  { %v595_v40 = vpop.permute.xlu0 %594 }
 0x964   :  { %v597_v41 = vsel %vm35_vm5, %v587_v18, %v595_v40  ;;  %v754_v18 = vrot.slane %v3860_v45, 2 }
 0x965   :  { %v598_v42 = vadd.f32 %v597_v41, %v188_v39 }
 0x967   :  { %3511 = vtanh.f32 %v598_v42  ;;  %v191_v62 = vpop.permute.xlu0 %190 }
 0x968   :  { %v193_v63 = vsel %vm145_vm4, %v166_v61, %v191_v62 }
 0x969   :  { %v194_v2 = vadd.f32 %v193_v63, %v3726_v28 }
 0x971   :  { %v3512_v44 = vpop.eup %3511 }
 0x972   :  { %v3923_v46 = vsel %vm4799_vm8, %v3512_v44, %v3890_v17 }
 0x973   :  { %v606_v13 = vpack.c.bf16 %v3923_v46, %v3923_v46  ;;  %v742_v49 = vrot.slane %v3923_v46, 2 }
 0x975   :  { %3143 = vmatmul.mubr.msk.bf16.vlgmr.msra.gmra.mrb[16].mxu0 %vm207_vm7, %v606_v13  ;;  %v3415_v58 = vpack.i.bf16 %v766_v54, %v742_v49 }
 0x976   :  { %3162 = vmatprep.mubr.msk.bf16.mxu0 %vm3591_vm0, %v3590_v1  ;;  %3155 = vmatpush3.bf16.msra.mxu0 %v3483_v59 }
 0x977   :  { %3156 = vmatprep.subr.bf16.mxu0 %v3590_v1 }
 0x978   :  { %v3969_v61 = vpop.permute.xlu0 %659 }
 0x979   :  { %vm4801_vm14 = vcmp.eq.s32.totalorder %v3969_v61, 1 }
 0x97a   :  { %3157 = vmatpush3.bf16.msra.mxu0 %v3484_v60 }
 0x97b   :  { %3158 = vmatprep.subr.bf16.mxu0 %v3590_v1 }
 0x97c   :  { %v3422_v24 = vpop.permute.xlu0 %3421 }
 0x97d   :  { %v3423_v29 = vunpack.i.l.bf16 %v3422_v24  ;;  %v3424_v33 = vunpack.i.h.bf16 %v3422_v24 }
 0x97e   :  { %3159 = vmatpush3.bf16.msra.mxu0 %v3485_v6 }
 0x97f   :  { %3160 = vmatprep.subr.bf16.mxu0 %v3590_v1  ;;  %v752_v27 = vsel %vm207_vm7, %v3800_v15, %v3423_v29  ;;  %v776_v42 = vsel %vm207_vm7, %v3923_v46, %v3424_v33 }
 0x980   :  { %v3432_v30 = vpop.permute.xlu0 %3431  ;;  %v787_v13 = vrot.slane %v752_v27, 4 }
 0x981   :  { %v3434_v37 = vunpack.i.h.bf16 %v3432_v30  ;;  %v3433_v8 = vunpack.i.l.bf16 %v3432_v30 }
 0x982   :  { %3161 = vmatpush3.bf16.msra.mxu0 %v3486_v11 }
 0x983   :  { %3182 = vmatprep.subr.bf16.mxu0 %v3590_v1 }
 0xa48   :  { %v644_v50 = vpop.f32.mrb[16].mxu0 }
 0xa49   :  { %651 = vrot.lane.b32.xlu1 %v644_v50, %s3593_s19  ;;  %v3144_v52 = vpop.f32.mrb[17].mxu0 }
 0xa4a   :  { %v647_v56 = vpop.f32.mrb[18].mxu0 }
 0xa4b   :  { %v3145_v57 = vpop.f32.mrb[19].mxu0  ;;  %v796_v56 = vrot.slane %v776_v42, 4 }
 0xa4d   :  { %3416 = vrot.lane.b32.xlu1 %v3415_v58, %s3594_s1 }
 0xabb   :  { %v652_v4 = vpop.permute.xlu1 %651 }
 0xabc   :  { %v654_v0 = vsel %vm35_vm5, %v644_v50, %v652_v4 }
 0xabd   :  { %v655_v3 = vadd.f32 %v654_v0, %v194_v2 }
 0xabf   :  { %3513 = vtanh.f32 %v655_v3  ;;  %v3417_v25 = vpop.permute.xlu1 %3416 }
 0xac0   :  { %v3419_v26 = vunpack.i.h.bf16 %v3417_v25  ;;  %v3418_v32 = vunpack.i.l.bf16 %v3417_v25 }
 0xac2   :  { %v770_v31 = vsel %vm207_vm7, %v3890_v17, %v3419_v26  ;;  %v746_v40 = vsel %vm207_vm7, %v3769_v53, %v3418_v32  ;;  %v764_v17 = vsel %vm207_vm7, %v3860_v45, %v3433_v8  ;;  %v2873_v32 = vld [vmem:[%s4791_s5 + $0x2] sm:$0x3] }
 0xac3   :  { %v793_v39 = vrot.slane %v770_v31, 6  ;;  %v784_v15 = vrot.slane %v746_v40, 6  ;;  %v828_v33 = vrot.slane %v2873_v32, %v3713_v22 }
 0xac5   :  { %v806_v52 = vsel %vm145_vm4, %v764_v17, %v793_v39 }
 0xac6   :  { %v807_v45 = vsel %vm4798_vm1, %v806_v52, %v796_v56 }
 0xac9   :  { %v3514_v28 = vpop.eup %3513 }
 0xaca   :  { %v662_v7 = vsel %vm4801_vm14, %v3514_v28, %v3923_v46 }
 0xacb   :  { %v668_v16 = vpack.c.bf16 %v662_v7, %v662_v7  ;;  %v736_v14 = vrot.slane %v662_v7, 2  ;;  %664 = vst.msk [vmem:[#allocation2] sm:$0x3] %vm4800_vm10, %v662_v7  ;;  %v782_v41 = vsel %vm207_vm7, %v662_v7, %v3434_v37  ;;  %v832_v37 = vrot.slane %v2873_v32, %v3716_v23 }
 0xacc   :  { %667 = vst.msk [vmem:[#allocation2] sm:$0xc] %vm4796_vm12, %v662_v7  ;;  %v799_v54 = vrot.slane %v782_v41, 2  ;;  %vm858_vm12 = vcmask 523264  }
 0xacd   :  { %3151 = vmatmul.mubr.msk.bf16.vlgmr.msra.gmra.mrb[16].mxu1 %vm207_vm7, %v668_v16  ;;  %v3425_v19 = vpack.i.bf16 %v754_v18, %v736_v14  ;;  %v4082_v8 = vsel %vm35_vm5, %v828_v33, %v832_v37 }
 0xace   :  { %3167 = vmatpush3.bf16.msra.mxu1 %v3979_v9  ;;  %3170 = vmatprep.mubr.msk.bf16.mxu1 %vm3591_vm0, %v3590_v1  ;;  %v808_v62 = vsel %vm4797_vm3, %v807_v45, %v799_v54 }
 0xacf   :  { %3426 = vrot.lane.b32.xlu1 %v3425_v19, %s3594_s1  ;;  %3168 = vmatprep.subr.bf16.mxu1 %v3590_v1 }
 0xad2   :  { %3169 = vmatpush3.bf16.msra.mxu1 %v3989_v20 }
 0xad3   :  { %3174 = vmatprep.subr.bf16.mxu1 %v3590_v1 }
 0xad5   :  { %3171 = vmatmul.mubr.bf16.vlgmr.msra.gmra.mrb[20].mxu1 %v3592_v5 }
 0xad6   :  { %3175 = vmatpush3.bf16.msra.mxu1 %v3979_v9  ;;  %3178 = vmatprep.mubr.msk.bf16.mxu1 %vm3591_vm0, %v3590_v1 }
 0xad7   :  { %3176 = vmatprep.subr.bf16.mxu1 %v3590_v1 }
 0xada   :  { %3177 = vmatpush3.bf16.msra.mxu1 %v3989_v20 }
 0xadb   :  { %3190 = vmatprep.subr.bf16.mxu1 %v3590_v1 }
 0xb41   :  { %v3427_v44 = vpop.permute.xlu1 %3426 }
 0xb42   :  { %v3429_v49 = vunpack.i.h.bf16 %v3427_v44  ;;  %v3428_v50 = vunpack.i.l.bf16 %v3427_v44 }
 0xb44   :  { %v758_v53 = vsel %vm207_vm7, %v3830_v38, %v3429_v49  ;;  %v740_v46 = vsel %vm207_vm7, %v3738_v36, %v3428_v50  ;;  %v4035_v36 = vld [vmem:[%s4793_s7] ss:$0 sm:$0xff] }
 0xb45   :  { %v790_v57 = vrot.slane %v758_v53, 2  ;;  %v801_v58 = vsel %vm145_vm4, %v740_v46, %v784_v15 }
 0xb46   :  { %v803_v59 = vsel %vm4798_vm1, %v801_v58, %v787_v13  ;;  %vm733_vm1 = vcmask 27650  }
 0xb47   :  { %v805_v60 = vsel %vm4797_vm3, %v803_v59, %v790_v57  ;;  %vm730_vm3 = vcmask 25600  }
 0xb48   :  { %v809_v63 = vpack.c.bf16 %v808_v62, %v805_v60 }
 0xb4a   :  { %3163 = vmatmul.mubr.msk.bf16.vlgmr.msra.gmra.mrb[20].mxu0 %vm858_vm12, %v809_v63 }
 0xb4b   :  { %3183 = vmatpush3.bf16.msra.mxu0 %v3979_v9  ;;  %3186 = vmatprep.mubr.msk.bf16.mxu0 %vm3591_vm0, %v3590_v1 }
 0xb4c   :  { %3184 = vmatprep.subr.bf16.mxu0 %v3590_v1 }
 0xb4f   :  { %3185 = vmatpush3.bf16.msra.mxu0 %v3989_v20 }
 0xb50   :  { %3198 = vmatprep.subr.bf16.mxu0 %v3590_v1 }
 0xba0   :  { %v724_v38 = vpop.f32.mrb[16].mxu1 }
 0xba1   :  { %v725_v2 = vadd.f32 %v4035_v36, %v724_v38  ;;  %v3152_v4 = vpop.f32.mrb[17].mxu1 }
 0xba2   :  { %v727_v0 = vpop.f32.mrb[18].mxu1 }
 0xba3   :  { %731 = vst.msk [vmem:[%s4794_s8] sm:$0x3] %vm730_vm3, %v725_v2  ;;  %v3153_v3 = vpop.f32.mrb[19].mxu1 }
 0xba4   :  { %2868 = vst.msk [vmem:[%s4794_s8] sm:$0xc] %vm733_vm1, %v725_v2 }
 0xba8   :  { %v1003_v6 = vpop.f32.mrb[20].mxu1 }
 0xba9   :  { %1010 = vrot.lane.b32.xlu0 %v1003_v6, %s3593_s19  ;;  %v3172_v11 = vpop.f32.mrb[21].mxu1 }
 0xbaa   :  { %v1006_v28 = vpop.f32.mrb[22].mxu1 }
 0xbab   :  { %v3173_v7 = vpop.f32.mrb[23].mxu1 }
 0xc1b   :  { %v1011_v27 = vpop.permute.xlu0 %1010 }
 0xc1c   :  { %v1013_v42 = vsel %vm35_vm5, %v1003_v6, %v1011_v27 }
 0xc1d   :  { %v4047_v16 = vpop.f32.mrb[20].mxu0 }
 0xc1e   :  { %v3164_v14 = vpop.f32.mrb[21].mxu0  ;;  %v919_v29 = vrot.slane %v4047_v16, 4  ;;  %v911_v30 = vrot.slane %v4047_v16, 2  ;;  %v926_v31 = vrot.slane %v4047_v16, 6 }
 0xc1f   :  { %v4049_v18 = vpop.f32.mrb[22].mxu0 }
 0xc20   :  { %v3165_v19 = vpop.f32.mrb[23].mxu0  ;;  %v904_v24 = vrot.slane %v4049_v18, 4  ;;  %v913_v25 = vrot.slane %v4049_v18, 2  ;;  %v928_v26 = vrot.slane %v4049_v18, 6 }
 0xc22   :  { %905 = vrot.lane.b32.xlu1 %v904_v24, %s3593_s19 }
 0xc26   :  { %914 = vrot.lane.b32.xlu1 %v913_v25, %s3593_s19 }
 0xc2a   :  { %921 = vrot.lane.b32.xlu1 %v4049_v18, %s3593_s19 }
 0xc2e   :  { %929 = vrot.lane.b32.xlu1 %v928_v26, %s3593_s19 }
 0xc32   :  { %934 = vrot.lane.b32.xlu1 %v919_v29, %s3593_s19 }
 0xc36   :  { %940 = vrot.lane.b32.xlu1 %v911_v30, %s3593_s19 }
 0xc3a   :  { %946 = vrot.lane.b32.xlu1 %v4047_v16, %s3593_s19 }
 0xc3e   :  { %952 = vrot.lane.b32.xlu1 %v926_v31, %s3593_s19 }
 0xc94   :  { %v906_v39 = vpop.permute.xlu1 %905 }
 0xc95   :  { %v908_v40 = vsel %vm145_vm4, %v4047_v16, %v906_v39 }
 0xc96   :  { %v909_v41 = vadd.f32 %v908_v40, %v4082_v8 }
 0xc98   :  { %v1014_v44 = vadd.f32 %v1013_v42, %v909_v41  ;;  %v915_v13 = vpop.permute.xlu1 %914 }
 0xc99   :  { %v917_v59 = vsel %vm145_vm4, %v911_v30, %v915_v13 }
 0xc9a   :  { %3515 = vtanh.f32 %v1014_v44  ;;  %v918_v60 = vadd.f32 %v917_v59, %v4082_v8 }
 0xc9c   :  { %v922_v17 = vpop.permute.xlu1 %921 }
 0xc9d   :  { %v924_v7 = vsel %vm145_vm4, %v919_v29, %v922_v17 }
 0xc9e   :  { %v925_v14 = vadd.f32 %v924_v7, %v4082_v8 }
 0xca0   :  { %v930_v49 = vpop.permute.xlu1 %929 }
 0xca1   :  { %v932_v42 = vsel %vm145_vm4, %v926_v31, %v930_v49 }
 0xca2   :  { %v933_v44 = vadd.f32 %v932_v42, %v4082_v8 }
 0xca4   :  { %v3516_v50 = vpop.eup %3515  ;;  %v935_v52 = vpop.permute.xlu1 %934 }
 0xca5   :  { %v937_v15 = vsel %vm145_vm4, %v4049_v18, %v935_v52  ;;  %v4093_v54 = vsel %vm262_vm6, %v3516_v50, 0.0  ;;  %v3492_v18 = vld [vmem:[%s4789_s3 + $0x38] sm:$0xff]  }
 0xca6   :  { %v4096_v56 = vadd.f32 %v937_v15, %v4082_v8  ;;  %v1017_v53 = vpack.c.bf16 %v4093_v54, %v4093_v54 }
 0xca8   :  { %3179 = vmatmul.mubr.msk.bf16.vlgmr.msra.gmra.mrb[24].mxu1 %vm207_vm7, %v1017_v53 }
 0xca9   :  { %3191 = vmatpush3.bf16.msra.mxu1 %v3979_v9  ;;  %3194 = vmatprep.mubr.msk.bf16.mxu1 %vm3591_vm0, %v3590_v1 }
 0xcaa   :  { %3192 = vmatprep.subr.bf16.mxu1 %v3590_v1 }
 0xcad   :  { %3193 = vmatpush3.bf16.msra.mxu1 %v3989_v20 }
 0xcae   :  { %3206 = vmatprep.subr.bf16.mxu1 %v3590_v1 }
 0xd7b   :  { %v1055_v46 = vpop.f32.mrb[24].mxu1 }
 0xd7c   :  { %1062 = vrot.lane.b32.xlu0 %v1055_v46, %s3593_s19  ;;  %v3180_v57 = vpop.f32.mrb[25].mxu1 }
 0xd7d   :  { %v1058_v58 = vpop.f32.mrb[26].mxu1 }
 0xd7e   :  { %v3181_v45 = vpop.f32.mrb[27].mxu1 }
 0xdee   :  { %v1063_v62 = vpop.permute.xlu0 %1062 }
 0xdef   :  { %v1065_v63 = vsel %vm35_vm5, %v1055_v46, %v1063_v62 }
 0xdf0   :  { %v1066_v38 = vadd.f32 %v1065_v63, %v918_v60 }
 0xdf2   :  { %3517 = vtanh.f32 %v1066_v38 }
 0xdfc   :  { %v3518_v2 = vpop.eup %3517 }
 0xdfd   :  { %v4115_v4 = vsel %vm319_vm9, %v3518_v2, %v4093_v54 }
 0xdfe   :  { %v1069_v0 = vpack.c.bf16 %v4115_v4, %v4115_v4 }
 0xe00   :  { %3187 = vmatmul.mubr.msk.bf16.vlgmr.msra.gmra.mrb[24].mxu0 %vm207_vm7, %v1069_v0  ;;  %v941_v0 = vpop.permute.xlu1 %940 }
 0xe01   :  { %3199 = vmatpush3.bf16.msra.mxu0 %v3979_v9  ;;  %3202 = vmatprep.mubr.msk.bf16.mxu0 %vm3591_vm0, %v3590_v1 }
 0xe02   :  { %3200 = vmatprep.subr.bf16.mxu0 %v3590_v1 }
 0xe05   :  { %3201 = vmatpush3.bf16.msra.mxu0 %v3989_v20 }
 0xe06   :  { %3214 = vmatprep.subr.bf16.mxu0 %v3590_v1 }
 0xed3   :  { %v1107_v3 = vpop.f32.mrb[24].mxu0 }
 0xed4   :  { %1114 = vrot.lane.b32.xlu0 %v1107_v3, %s3593_s19  ;;  %v3188_v6 = vpop.f32.mrb[25].mxu0 }
 0xed5   :  { %v1110_v11 = vpop.f32.mrb[26].mxu0 }
 0xed6   :  { %v3189_v28 = vpop.f32.mrb[27].mxu0 }
 0xf46   :  { %v1115_v19 = vpop.permute.xlu0 %1114 }
 0xf47   :  { %v1117_v30 = vsel %vm35_vm5, %v1107_v3, %v1115_v19 }
 0xf48   :  { %v1118_v32 = vadd.f32 %v1117_v30, %v925_v14 }
 0xf4a   :  { %3519 = vtanh.f32 %v1118_v32 }
 0xf54   :  { %v3520_v33 = vpop.eup %3519 }
 0xf55   :  { %v4134_v37 = vsel %vm376_vm11, %v3520_v33, %v4115_v4  ;;  %v947_v33 = vpop.permute.xlu1 %946 }
 0xf56   :  { %v1121_v27 = vpack.c.bf16 %v4134_v37, %v4134_v37 }
 0xf58   :  { %3195 = vmatmul.mubr.msk.bf16.vlgmr.msra.gmra.mrb[28].mxu1 %vm207_vm7, %v1121_v27 }
 0xf59   :  { %3207 = vmatpush3.bf16.msra.mxu1 %v3979_v9  ;;  %3210 = vmatprep.mubr.msk.bf16.mxu1 %vm3591_vm0, %v3590_v1 }
 0xf5a   :  { %3208 = vmatprep.subr.bf16.mxu1 %v3590_v1 }
 0xf5d   :  { %3209 = vmatpush3.bf16.msra.mxu1 %v3989_v20 }
 0xf5e   :  { %3222 = vmatprep.subr.bf16.mxu1 %v3590_v1 }
0x102b   :  { %v1159_v29 = vpop.f32.mrb[28].mxu1 }
0x102c   :  { %1166 = vrot.lane.b32.xlu0 %v1159_v29, %s3593_s19  ;;  %v3196_v39 = vpop.f32.mrb[29].mxu1 }
0x102d   :  { %v1162_v40 = vpop.f32.mrb[30].mxu1 }
0x102e   :  { %v3197_v41 = vpop.f32.mrb[31].mxu1 }
0x109e   :  { %v1167_v13 = vpop.permute.xlu0 %1166 }
0x109f   :  { %v1169_v17 = vsel %vm35_vm5, %v1159_v29, %v1167_v13 }
0x10a0   :  { %v1170_v50 = vadd.f32 %v1169_v17, %v933_v44 }
0x10a2   :  { %3521 = vtanh.f32 %v1170_v50 }
0x10ac   :  { %v3522_v52 = vpop.eup %3521 }
0x10ad   :  { %v4155_v15 = vsel %vm433_vm13, %v3522_v52, %v4134_v37 }
0x10ae   :  { %v1173_v53 = vpack.c.bf16 %v4155_v15, %v4155_v15 }
0x10b0   :  { %3203 = vmatmul.mubr.msk.bf16.vlgmr.msra.gmra.mrb[28].mxu0 %vm207_vm7, %v1173_v53  ;;  %v1470_v53 = vrot.slane %v4115_v4, 2 }
0x10b1   :  { %3215 = vmatpush3.bf16.msra.mxu0 %v3979_v9  ;;  %3218 = vmatprep.mubr.msk.bf16.mxu0 %vm3591_vm0, %v3590_v1 }
0x10b2   :  { %3216 = vmatprep.subr.bf16.mxu0 %v3590_v1 }
0x10b5   :  { %3217 = vmatpush3.bf16.msra.mxu0 %v3989_v20 }
0x10b6   :  { %3230 = vmatprep.subr.bf16.mxu0 %v3590_v1 }
0x1183   :  { %v1211_v16 = vpop.f32.mrb[28].mxu0 }
0x1184   :  { %1218 = vrot.lane.b32.xlu0 %v1211_v16, %s3593_s19  ;;  %v3204_v31 = vpop.f32.mrb[29].mxu0 }
0x1185   :  { %v1214_v49 = vpop.f32.mrb[30].mxu0 }
0x1186   :  { %v3205_v46 = vpop.f32.mrb[31].mxu0 }
0x1187   :  { %v1458_v46 = vrot.slane %v4155_v15, 2 }
0x11f6   :  { %v1219_v57 = vpop.permute.xlu0 %1218 }
0x11f7   :  { %v1221_v58 = vsel %vm35_vm5, %v1211_v16, %v1219_v57  ;;  %v1476_v57 = vrot.slane %v4093_v54, 2 }
0x11f8   :  { %v1222_v45 = vadd.f32 %v1221_v58, %v4096_v56 }
0x11f9   :  { %v3450_v58 = vpack.i.bf16 %v1476_v57, %v1458_v46 }
0x11fa   :  { %3523 = vtanh.f32 %v1222_v45  ;;  %v3489_v45 = vld [vmem:[%s4789_s3 + $0x20] sm:$0xff]  }
0x1204   :  { %v3524_v59 = vpop.eup %3523 }
0x1205   :  { %v4173_v60 = vsel %vm490_vm15, %v3524_v59, %v4155_v15  ;;  %v3490_v59 = vld [vmem:[%s4789_s3 + $0x28] sm:$0xff]  }
0x1206   :  { %v1225_v62 = vpack.c.bf16 %v4173_v60, %v4173_v60 }
0x1208   :  { %3211 = vmatmul.mubr.msk.bf16.vlgmr.msra.gmra.mrb[32].mxu1 %vm207_vm7, %v1225_v62  ;;  %v953_v62 = vpop.permute.xlu1 %952 }
0x1209   :  { %3223 = vmatpush3.bf16.msra.mxu1 %v3979_v9  ;;  %3226 = vmatprep.mubr.msk.bf16.mxu1 %vm3591_vm0, %v3590_v1  ;;  %v943_v9 = vsel %vm145_vm4, %v913_v25, %v941_v0 }
0x120a   :  { %3224 = vmatprep.subr.bf16.mxu1 %v3590_v1  ;;  %v944_v3 = vadd.f32 %v943_v9, %v4082_v8  ;;  %v3491_v9 = vld [vmem:[%s4789_s3 + $0x30] sm:$0xff]  }
0x120d   :  { %3225 = vmatpush3.bf16.msra.mxu1 %v3989_v20 }
0x120e   :  { %3238 = vmatprep.subr.bf16.mxu1 %v3590_v1 }
0x12db   :  { %v1263_v56 = vpop.f32.mrb[32].mxu1 }
0x12dc   :  { %1270 = vrot.lane.b32.xlu0 %v1263_v56, %s3593_s19  ;;  %v3212_v63 = vpop.f32.mrb[33].mxu1 }
0x12dd   :  { %v1266_v38 = vpop.f32.mrb[34].mxu1 }
0x12de   :  { %v3213_v2 = vpop.f32.mrb[35].mxu1 }
0x134e   :  { %v1271_v6 = vpop.permute.xlu0 %1270 }
0x134f   :  { %v1273_v11 = vsel %vm35_vm5, %v1263_v56, %v1271_v6  ;;  %v955_v56 = vsel %vm145_vm4, %v928_v26, %v953_v62 }
0x1350   :  { %v1274_v20 = vadd.f32 %v1273_v11, %v944_v3  ;;  %v956_v63 = vadd.f32 %v955_v56, %v4082_v8  ;;  %v4260_v3 = vld [vmem:[%s4790_s4 + $0x20] sm:$0xff]  }
0x1352   :  { %3525 = vtanh.f32 %v1274_v20  ;;  %v1452_v20 = vrot.slane %v4173_v60, 2 }
0x135c   :  { %v3526_v28 = vpop.eup %3525 }
0x135d   :  { %v4194_v7 = vsel %vm4802_vm2, %v3526_v28, %v4173_v60 }
0x135e   :  { %v1277_v14 = vpack.c.bf16 %v4194_v7, %v4194_v7  ;;  %v1446_v17 = vrot.slane %v4194_v7, 2 }
0x1360   :  { %3219 = vmatmul.mubr.msk.bf16.vlgmr.msra.gmra.mrb[32].mxu0 %vm207_vm7, %v1277_v14  ;;  %v3440_v49 = vpack.i.bf16 %v1470_v53, %v1446_v17  ;;  %v4270_v14 = vld [vmem:[%s4790_s4 + $0x28] sm:$0xff]  }
0x1361   :  { %3231 = vmatpush3.bf16.msra.mxu0 %v3933_v47  ;;  %3234 = vmatprep.mubr.msk.bf16.mxu0 %vm3591_vm0, %v3590_v1  ;;  %v949_v47 = vsel %vm145_vm4, %v904_v24, %v947_v33  ;;  %v1464_v24 = vrot.slane %v4134_v37, 2 }
0x1362   :  { %3232 = vmatprep.subr.bf16.mxu0 %v3590_v1  ;;  %v950_v27 = vadd.f32 %v949_v47, %v4082_v8 }
0x1365   :  { %3233 = vmatpush3.bf16.msra.mxu0 %v3939_v48 }
0x1366   :  { %3250 = vmatprep.subr.bf16.mxu0 %v3590_v1 }
0x1433   :  { %v1315_v25 = vpop.f32.mrb[32].mxu0 }
0x1434   :  { %1322 = vrot.lane.b32.xlu0 %v1315_v25, %s3593_s19  ;;  %v3220_v19 = vpop.f32.mrb[33].mxu0 }
0x1435   :  { %v1318_v30 = vpop.f32.mrb[34].mxu0 }
0x1436   :  { %v3221_v32 = vpop.f32.mrb[35].mxu0 }
0x14a6   :  { %v1323_v29 = vpop.permute.xlu0 %1322 }
0x14a7   :  { %v1325_v39 = vsel %vm35_vm5, %v1315_v25, %v1323_v29 }
0x14a8   :  { %v1326_v48 = vadd.f32 %v1325_v39, %v950_v27 }
0x14aa   :  { %3527 = vtanh.f32 %v1326_v48 }
0x14b4   :  { %v3528_v40 = vpop.eup %3527 }
0x14b5   :  { %v4215_v41 = vsel %vm4799_vm8, %v3528_v40, %v4194_v7  ;;  %vm4803_vm8 = vcmask 257026  }
0x14b6   :  { %v1329_v42 = vpack.c.bf16 %v4215_v41, %v4215_v41  ;;  %v1440_v44 = vrot.slane %v4215_v41, 2 }
0x14b8   :  { %3227 = vmatmul.mubr.msk.bf16.vlgmr.msra.gmra.mrb[36].mxu1 %vm207_vm7, %v1329_v42  ;;  %v3435_v13 = vpack.i.bf16 %v1464_v24, %v1440_v44 }
0x14b9   :  { %3246 = vmatprep.mubr.msk.bf16.mxu1 %vm3591_vm0, %v3590_v1  ;;  %3239 = vmatpush3.bf16.msra.mxu1 %v3489_v45 }
0x14ba   :  { %3436 = vrot.lane.b32.xlu1 %v3435_v13, %s3594_s1  ;;  %3240 = vmatprep.subr.bf16.mxu1 %v3590_v1 }
0x14bd   :  { %3241 = vmatpush3.bf16.msra.mxu1 %v3490_v59 }
0x14be   :  { %3242 = vmatprep.subr.bf16.mxu1 %v3590_v1 }
0x14c1   :  { %3243 = vmatpush3.bf16.msra.mxu1 %v3491_v9 }
0x14c2   :  { %3244 = vmatprep.subr.bf16.mxu1 %v3590_v1 }
0x14c5   :  { %3245 = vmatpush3.bf16.msra.mxu1 %v3492_v18 }
0x14c6   :  { %3266 = vmatprep.subr.bf16.mxu1 %v3590_v1 }
0x152c   :  { %v3437_v19 = vpop.permute.xlu1 %3436 }
0x152d   :  { %v3439_v32 = vunpack.i.h.bf16 %v3437_v19  ;;  %v3438_v33 = vunpack.i.l.bf16 %v3437_v19 }
0x152f   :  { %v1468_v39 = vsel %vm207_vm7, %v4194_v7, %v3439_v32  ;;  %v1444_v40 = vsel %vm207_vm7, %v4115_v4, %v3438_v33  ;;  %v2903_v32 = vld [vmem:[%s4791_s5 + $0x4] sm:$0x3] }
0x1530   :  { %v1491_v24 = vrot.slane %v1468_v39, 6  ;;  %v1482_v7 = vrot.slane %v1444_v40, 6  ;;  %v1525_v33 = vrot.slane %v2903_v32, %v3713_v22 }
0x158b   :  { %v1367_v50 = vpop.f32.mrb[36].mxu1 }
0x158c   :  { %1374 = vrot.lane.b32.xlu0 %v1367_v50, %s3593_s19  ;;  %v3228_v52 = vpop.f32.mrb[37].mxu1 }
0x158d   :  { %v1370_v16 = vpop.f32.mrb[38].mxu1 }
0x158e   :  { %v3229_v31 = vpop.f32.mrb[39].mxu1 }
0x1590   :  { %3441 = vrot.lane.b32.xlu0 %v3440_v49, %s3594_s1 }
0x1594   :  { %3451 = vrot.lane.b32.xlu0 %v3450_v58, %s3594_s1 }
0x15fe   :  { %v1375_v38 = vpop.permute.xlu0 %1374 }
0x15ff   :  { %v1377_v2 = vsel %vm35_vm5, %v1367_v50, %v1375_v38 }
0x1600   :  { %v1378_v0 = vadd.f32 %v1377_v2, %v956_v63 }
0x1602   :  { %3529 = vtanh.f32 %v1378_v0  ;;  %v3442_v25 = vpop.permute.xlu0 %3441 }
0x1603   :  { %v3444_v27 = vunpack.i.h.bf16 %v3442_v25  ;;  %v3443_v29 = vunpack.i.l.bf16 %v3442_v25 }
0x1605   :  { %v1474_v13 = vsel %vm207_vm7, %v4215_v41, %v3444_v27  ;;  %v1450_v17 = vsel %vm207_vm7, %v4134_v37, %v3443_v29 }
0x1606   :  { %v3452_v30 = vpop.permute.xlu0 %3451  ;;  %v1494_v4 = vrot.slane %v1474_v13, 4  ;;  %v1485_v49 = vrot.slane %v1450_v17, 4 }
0x1607   :  { %v3453_v47 = vunpack.i.l.bf16 %v3452_v30  ;;  %v3454_v48 = vunpack.i.h.bf16 %v3452_v30 }
0x1609   :  { %v1462_v44 = vsel %vm207_vm7, %v4173_v60, %v3453_v47  ;;  %v1529_v47 = vrot.slane %v2903_v32, %v3716_v23 }
0x160a   :  { %v1502_v31 = vsel %vm145_vm4, %v1462_v44, %v1491_v24 }
0x160b   :  { %v4358_v27 = vsel %vm35_vm5, %v1525_v33, %v1529_v47 }
0x160c   :  { %v3530_v26 = vpop.eup %3529 }
0x160d   :  { %v1380_v8 = vsel %vm4801_vm14, %v3530_v26, %v4215_v41  ;;  %vm4806_vm14 = vcmask 1045504  }
0x160e   :  { %1382 = vst.msk [vmem:[#allocation2 + $0x4] sm:$0x3] %vm4800_vm10, %v1380_v8  ;;  %v1385_v6 = vpack.c.bf16 %v1380_v8, %v1380_v8  ;;  %v1434_v11 = vrot.slane %v1380_v8, 2  ;;  %v1480_v42 = vsel %vm207_vm7, %v1380_v8, %v3454_v48  ;;  %vm4807_vm2 = vmmov %vm4806_vm14 }
0x160f   :  { %1384 = vst.msk [vmem:[#allocation2 + $0x4] sm:$0xc] %vm4803_vm8, %v1380_v8  ;;  %v1497_v16 = vrot.slane %v1480_v42, 2  ;;  %vm4804_vm8 = vcmask 1043456  }
0x1610   :  { %3235 = vmatmul.mubr.msk.bf16.vlgmr.msra.gmra.mrb[36].mxu0 %vm207_vm7, %v1385_v6  ;;  %v3445_v28 = vpack.i.bf16 %v1452_v20, %v1434_v11  ;;  %v1503_v37 = vsel %vm4804_vm8, %v1502_v31, %v1494_v4  ;;  %vm4805_vm10 = vmmov %vm4804_vm8  ;;  %vm4811_vm8 = vcmask 254976  }
0x1611   :  { %3251 = vmatpush3.bf16.msra.mxu0 %v4260_v3  ;;  %3254 = vmatprep.mubr.msk.bf16.mxu0 %vm3591_vm0, %v3590_v1  ;;  %v1504_v45 = vsel %vm4806_vm14, %v1503_v37, %v1497_v16  ;;  %vm4810_vm14 = vcmp.eq.s32.totalorder %v3969_v61, 1 }
0x1612   :  { %3446 = vrot.lane.b32.xlu1 %v3445_v28, %s3594_s1  ;;  %3252 = vmatprep.subr.bf16.mxu0 %v3590_v1 }
0x1615   :  { %3253 = vmatpush3.bf16.msra.mxu0 %v4270_v14 }
0x1616   :  { %3258 = vmatprep.subr.bf16.mxu0 %v3590_v1 }
0x1618   :  { %3255 = vmatmul.mubr.bf16.vlgmr.msra.gmra.mrb[40].mxu0 %v3592_v5 }
0x1619   :  { %3259 = vmatpush3.bf16.msra.mxu0 %v4260_v3  ;;  %3262 = vmatprep.mubr.msk.bf16.mxu0 %vm3591_vm0, %v3590_v1 }
0x161a   :  { %3260 = vmatprep.subr.bf16.mxu0 %v3590_v1 }
0x161d   :  { %3261 = vmatpush3.bf16.msra.mxu0 %v4270_v14 }
0x161e   :  { %3274 = vmatprep.subr.bf16.mxu0 %v3590_v1 }
0x1684   :  { %v3447_v50 = vpop.permute.xlu1 %3446 }
0x1685   :  { %v3449_v52 = vunpack.i.h.bf16 %v3447_v50  ;;  %v3448_v53 = vunpack.i.l.bf16 %v3447_v50 }
0x1687   :  { %v1456_v46 = vsel %vm207_vm7, %v4155_v15, %v3449_v52  ;;  %v1438_v60 = vsel %vm207_vm7, %v4093_v54, %v3448_v53 }
0x1688   :  { %v1488_v57 = vrot.slane %v1456_v46, 2  ;;  %v1499_v41 = vsel %vm145_vm4, %v1438_v60, %v1482_v7 }
0x1689   :  { %v1500_v58 = vsel %vm4805_vm10, %v1499_v41, %v1485_v49  ;;  %vm4809_vm10 = vcmp.eq.s32.totalorder %v3917_v43, 1 }
0x168a   :  { %v1501_v59 = vsel %vm4807_vm2, %v1500_v58, %v1488_v57  ;;  %vm4808_vm2 = vcmp.eq.s32.totalorder %v3884_v12, 1 }
0x168b   :  { %v1505_v62 = vpack.c.bf16 %v1504_v45, %v1501_v59 }
0x168d   :  { %3247 = vmatmul.mubr.msk.bf16.vlgmr.msra.gmra.mrb[40].mxu1 %vm858_vm12, %v1505_v62 }
0x168e   :  { %3267 = vmatpush3.bf16.msra.mxu1 %v4260_v3  ;;  %3270 = vmatprep.mubr.msk.bf16.mxu1 %vm3591_vm0, %v3590_v1 }
0x168f   :  { %3268 = vmatprep.subr.bf16.mxu1 %v3590_v1 }
0x1692   :  { %3269 = vmatpush3.bf16.msra.mxu1 %v4270_v14 }
0x1693   :  { %3282 = vmatprep.subr.bf16.mxu1 %v3590_v1 }
0x16e3   :  { %v1423_v54 = vpop.f32.mrb[36].mxu0 }
0x16e4   :  { %v1424_v15 = vadd.f32 %v4035_v36, %v1423_v54  ;;  %v3236_v56 = vpop.f32.mrb[37].mxu0 }
0x16e5   :  { %v1426_v63 = vpop.f32.mrb[38].mxu0 }
0x16e6   :  { %2889 = vst.msk [vmem:[%s4794_s8 + $0x4] sm:$0x3] %vm730_vm3, %v1424_v15  ;;  %v3237_v38 = vpop.f32.mrb[39].mxu0 }
0x16e7   :  { %2890 = vst.msk [vmem:[%s4794_s8 + $0x4] sm:$0xc] %vm733_vm1, %v1424_v15 }
0x16eb   :  { %v1699_v2 = vpop.f32.mrb[40].mxu0 }
0x16ec   :  { %1706 = vrot.lane.b32.xlu0 %v1699_v2, %s3593_s19  ;;  %v3256_v0 = vpop.f32.mrb[41].mxu0 }
0x16ed   :  { %v1702_v9 = vpop.f32.mrb[42].mxu0 }
0x16ee   :  { %v3257_v18 = vpop.f32.mrb[43].mxu0 }
0x175e   :  { %v1707_v29 = vpop.permute.xlu0 %1706 }
0x175f   :  { %v1709_v42 = vsel %vm35_vm5, %v1699_v2, %v1707_v29 }
0x1760   :  { %v4323_v36 = vpop.f32.mrb[40].mxu1 }
0x1761   :  { %v3248_v26 = vpop.f32.mrb[41].mxu1  ;;  %v1615_v25 = vrot.slane %v4323_v36, 4  ;;  %v1607_v19 = vrot.slane %v4323_v36, 2  ;;  %v1622_v30 = vrot.slane %v4323_v36, 6 }
0x1762   :  { %v4325_v8 = vpop.f32.mrb[42].mxu1 }
0x1763   :  { %v3249_v6 = vpop.f32.mrb[43].mxu1  ;;  %v1600_v11 = vrot.slane %v4325_v8, 4  ;;  %v1609_v20 = vrot.slane %v4325_v8, 2  ;;  %v1624_v28 = vrot.slane %v4325_v8, 6 }
0x1765   :  { %1601 = vrot.lane.b32.xlu1 %v1600_v11, %s3593_s19 }
0x1769   :  { %1610 = vrot.lane.b32.xlu1 %v1609_v20, %s3593_s19 }
0x176d   :  { %1617 = vrot.lane.b32.xlu1 %v4325_v8, %s3593_s19 }
0x1771   :  { %1625 = vrot.lane.b32.xlu1 %v1624_v28, %s3593_s19 }
0x1775   :  { %1630 = vrot.lane.b32.xlu1 %v1615_v25, %s3593_s19 }
0x1779   :  { %1636 = vrot.lane.b32.xlu1 %v1607_v19, %s3593_s19 }
0x177d   :  { %1642 = vrot.lane.b32.xlu1 %v4323_v36, %s3593_s19 }
0x1781   :  { %1648 = vrot.lane.b32.xlu1 %v1622_v30, %s3593_s19 }
0x17d7   :  { %v1602_v39 = vpop.permute.xlu1 %1601 }
0x17d8   :  { %v1604_v48 = vsel %vm145_vm4, %v4323_v36, %v1602_v39 }
0x17d9   :  { %v1605_v40 = vadd.f32 %v1604_v48, %v4358_v27 }
0x17db   :  { %v1710_v44 = vadd.f32 %v1709_v42, %v1605_v40  ;;  %v1611_v24 = vpop.permute.xlu1 %1610 }
0x17dc   :  { %v1613_v57 = vsel %vm145_vm4, %v1607_v19, %v1611_v24 }
0x17dd   :  { %3531 = vtanh.f32 %v1710_v44  ;;  %v1614_v41 = vadd.f32 %v1613_v57, %v4358_v27 }
0x17df   :  { %v1618_v13 = vpop.permute.xlu1 %1617 }
0x17e0   :  { %v1620_v2 = vsel %vm145_vm4, %v1615_v25, %v1618_v13 }
0x17e1   :  { %v1621_v0 = vadd.f32 %v1620_v2, %v4358_v27 }
0x17e3   :  { %v1626_v17 = vpop.permute.xlu1 %1625 }
0x17e4   :  { %v1628_v39 = vsel %vm145_vm4, %v1622_v30, %v1626_v17 }
0x17e5   :  { %v1629_v48 = vadd.f32 %v1628_v39, %v4358_v27 }
0x17e7   :  { %v3532_v50 = vpop.eup %3531  ;;  %v1631_v52 = vpop.permute.xlu1 %1630 }
0x17e8   :  { %v1633_v53 = vsel %vm145_vm4, %v4325_v8, %v1631_v52  ;;  %v4369_v7 = vsel %vm262_vm6, %v3532_v50, 0.0  ;;  %v3498_v8 = vld [vmem:[%s4789_s3 + $0x58] sm:$0xff]  }
0x17e9   :  { %v4372_v16 = vadd.f32 %v1633_v53, %v4358_v27  ;;  %v1713_v31 = vpack.c.bf16 %v4369_v7, %v4369_v7 }
0x17eb   :  { %3263 = vmatmul.mubr.msk.bf16.vlgmr.msra.gmra.mrb[44].mxu0 %vm207_vm7, %v1713_v31 }
0x17ec   :  { %3275 = vmatpush3.bf16.msra.mxu0 %v4260_v3  ;;  %3278 = vmatprep.mubr.msk.bf16.mxu0 %vm3591_vm0, %v3590_v1 }
0x17ed   :  { %3276 = vmatprep.subr.bf16.mxu0 %v3590_v1 }
0x17f0   :  { %3277 = vmatpush3.bf16.msra.mxu0 %v4270_v14 }
0x17f1   :  { %3290 = vmatprep.subr.bf16.mxu0 %v3590_v1 }
0x18be   :  { %v1751_v4 = vpop.f32.mrb[44].mxu0 }
0x18bf   :  { %1758 = vrot.lane.b32.xlu0 %v1751_v4, %s3593_s19  ;;  %v3264_v49 = vpop.f32.mrb[45].mxu0 }
0x18c0   :  { %v1754_v46 = vpop.f32.mrb[46].mxu0 }
0x18c1   :  { %v3265_v60 = vpop.f32.mrb[47].mxu0 }
0x1931   :  { %v1759_v37 = vpop.permute.xlu0 %1758 }
0x1932   :  { %v1761_v58 = vsel %vm35_vm5, %v1751_v4, %v1759_v37 }
0x1933   :  { %v1762_v45 = vadd.f32 %v1761_v58, %v1614_v41  ;;  %v1637_v58 = vpop.permute.xlu1 %1636 }
0x1935   :  { %3533 = vtanh.f32 %v1762_v45 }
0x193f   :  { %v3534_v59 = vpop.eup %3533 }
0x1940   :  { %v4391_v62 = vsel %vm319_vm9, %v3534_v59, %v4369_v7 }
0x1941   :  { %v1765_v54 = vpack.c.bf16 %v4391_v62, %v4391_v62 }
0x1943   :  { %3271 = vmatmul.mubr.msk.bf16.vlgmr.msra.gmra.mrb[44].mxu1 %vm207_vm7, %v1765_v54 }
0x1944   :  { %3283 = vmatpush3.bf16.msra.mxu1 %v4260_v3  ;;  %3286 = vmatprep.mubr.msk.bf16.mxu1 %vm3591_vm0, %v3590_v1 }
0x1945   :  { %3284 = vmatprep.subr.bf16.mxu1 %v3590_v1 }
0x1948   :  { %3285 = vmatpush3.bf16.msra.mxu1 %v4270_v14 }
0x1949   :  { %3298 = vmatprep.subr.bf16.mxu1 %v3590_v1 }
0x1a16   :  { %v1803_v15 = vpop.f32.mrb[44].mxu1 }
0x1a17   :  { %1810 = vrot.lane.b32.xlu0 %v1803_v15, %s3593_s19  ;;  %v3272_v56 = vpop.f32.mrb[45].mxu1 }
0x1a18   :  { %v1806_v63 = vpop.f32.mrb[46].mxu1 }
0x1a19   :  { %v3273_v38 = vpop.f32.mrb[47].mxu1 }
0x1a1a   :  { %v4487_v38 = vld [vmem:[%s4792_s6 + $0x8] sm:$0xff]  }
0x1a89   :  { %v1811_v9 = vpop.permute.xlu0 %1810 }
0x1a8a   :  { %v1813_v18 = vsel %vm35_vm5, %v1803_v15, %v1811_v9 }
0x1a8b   :  { %v1814_v26 = vadd.f32 %v1813_v18, %v1621_v0 }
0x1a8d   :  { %3535 = vtanh.f32 %v1814_v26  ;;  %v1643_v26 = vpop.permute.xlu1 %1642 }
0x1a97   :  { %v3536_v6 = vpop.eup %3535 }
0x1a98   :  { %v4410_v19 = vsel %vm376_vm11, %v3536_v6, %v4391_v62  ;;  %v1645_v6 = vsel %vm145_vm4, %v1600_v11, %v1643_v26 }
0x1a99   :  { %v1817_v32 = vpack.c.bf16 %v4410_v19, %v4410_v19  ;;  %v2160_v11 = vrot.slane %v4410_v19, 2 }
0x1a9b   :  { %3279 = vmatmul.mubr.msk.bf16.vlgmr.msra.gmra.mrb[48].mxu0 %vm207_vm7, %v1817_v32  ;;  %v1646_v32 = vadd.f32 %v1645_v6, %v4358_v27 }
0x1a9c   :  { %3291 = vmatpush3.bf16.msra.mxu0 %v4260_v3  ;;  %3294 = vmatprep.mubr.msk.bf16.mxu0 %vm3591_vm0, %v3590_v1 }
0x1a9d   :  { %3292 = vmatprep.subr.bf16.mxu0 %v3590_v1 }
0x1aa0   :  { %3293 = vmatpush3.bf16.msra.mxu0 %v4270_v14 }
0x1aa1   :  { %3306 = vmatprep.subr.bf16.mxu0 %v3590_v1 }
0x1b6e   :  { %v1855_v25 = vpop.f32.mrb[48].mxu0 }
0x1b6f   :  { %1862 = vrot.lane.b32.xlu0 %v1855_v25, %s3593_s19  ;;  %v3280_v33 = vpop.f32.mrb[49].mxu0 }
0x1b70   :  { %v1858_v47 = vpop.f32.mrb[50].mxu0 }
0x1b71   :  { %v3281_v29 = vpop.f32.mrb[51].mxu0 }
0x1be1   :  { %v1863_v40 = vpop.permute.xlu0 %1862 }
0x1be2   :  { %v1865_v42 = vsel %vm35_vm5, %v1855_v25, %v1863_v40 }
0x1be3   :  { %v1866_v44 = vadd.f32 %v1865_v42, %v1629_v48 }
0x1be5   :  { %3537 = vtanh.f32 %v1866_v44 }
0x1bef   :  { %v3538_v24 = vpop.eup %3537 }
0x1bf0   :  { %v4431_v13 = vsel %vm433_vm13, %v3538_v24, %v4410_v19 }
0x1bf1   :  { %v1869_v50 = vpack.c.bf16 %v4431_v13, %v4431_v13 }
0x1bf3   :  { %3287 = vmatmul.mubr.msk.bf16.vlgmr.msra.gmra.mrb[48].mxu1 %vm207_vm7, %v1869_v50 }
0x1bf4   :  { %3299 = vmatpush3.bf16.msra.mxu1 %v4260_v3  ;;  %3302 = vmatprep.mubr.msk.bf16.mxu1 %vm3591_vm0, %v3590_v1 }
0x1bf5   :  { %3300 = vmatprep.subr.bf16.mxu1 %v3590_v1 }
0x1bf8   :  { %3301 = vmatpush3.bf16.msra.mxu1 %v4270_v14 }
0x1bf9   :  { %3314 = vmatprep.subr.bf16.mxu1 %v3590_v1 }
0x1cc6   :  { %v1907_v36 = vpop.f32.mrb[48].mxu1 }
0x1cc7   :  { %1914 = vrot.lane.b32.xlu0 %v1907_v36, %s3593_s19  ;;  %v3288_v30 = vpop.f32.mrb[49].mxu1 }
0x1cc8   :  { %v1910_v17 = vpop.f32.mrb[50].mxu1 }
0x1cc9   :  { %v3289_v52 = vpop.f32.mrb[51].mxu1 }
0x1d39   :  { %v1915_v53 = vpop.permute.xlu0 %1914 }
0x1d3a   :  { %v1917_v31 = vsel %vm35_vm5, %v1907_v36, %v1915_v53  ;;  %v2166_v36 = vrot.slane %v4391_v62, 2  ;;  %v2154_v53 = vrot.slane %v4431_v13, 2 }
0x1d3b   :  { %v1918_v4 = vadd.f32 %v1917_v31, %v4372_v16  ;;  %v2172_v31 = vrot.slane %v4369_v7, 2 }
0x1d3d   :  { %3539 = vtanh.f32 %v1918_v4  ;;  %v3470_v4 = vpack.i.bf16 %v2172_v31, %v2154_v53 }
0x1d47   :  { %v3540_v49 = vpop.eup %3539 }
0x1d48   :  { %v4449_v46 = vsel %vm490_vm15, %v3540_v49, %v4431_v13  ;;  %v3495_v49 = vld [vmem:[%s4789_s3 + $0x40] sm:$0xff]  }
0x1d49   :  { %v1921_v60 = vpack.c.bf16 %v4449_v46, %v4449_v46 }
0x1d4b   :  { %3295 = vmatmul.mubr.msk.bf16.vlgmr.msra.gmra.mrb[52].mxu0 %vm207_vm7, %v1921_v60  ;;  %v3496_v60 = vld [vmem:[%s4789_s3 + $0x48] sm:$0xff]  }
0x1d4c   :  { %3307 = vmatpush3.bf16.msra.mxu0 %v4260_v3  ;;  %3310 = vmatprep.mubr.msk.bf16.mxu0 %vm3591_vm0, %v3590_v1  ;;  %v1639_v3 = vsel %vm145_vm4, %v1609_v20, %v1637_v58  ;;  %v4478_v20 = vld [vmem:[%s4792_s6] sm:$0xff]  }
0x1d4d   :  { %3308 = vmatprep.subr.bf16.mxu0 %v3590_v1  ;;  %v1640_v45 = vadd.f32 %v1639_v3, %v4358_v27 }
0x1d50   :  { %3309 = vmatpush3.bf16.msra.mxu0 %v4270_v14 }
0x1d51   :  { %3322 = vmatprep.subr.bf16.mxu0 %v3590_v1 }
0x1e1e   :  { %v1959_v16 = vpop.f32.mrb[52].mxu0 }
0x1e1f   :  { %1966 = vrot.lane.b32.xlu0 %v1959_v16, %s3593_s19  ;;  %v3296_v57 = vpop.f32.mrb[53].mxu0 }
0x1e20   :  { %v1962_v41 = vpop.f32.mrb[54].mxu0 }
0x1e21   :  { %v3297_v37 = vpop.f32.mrb[55].mxu0 }
0x1e91   :  { %v1967_v59 = vpop.permute.xlu0 %1966 }
0x1e92   :  { %v1969_v54 = vsel %vm35_vm5, %v1959_v16, %v1967_v59  ;;  %v1649_v16 = vpop.permute.xlu1 %1648  ;;  %v4546_v59 = vld [vmem:[%s4790_s4 + $0x30] sm:$0xff]  }
0x1e93   :  { %v1970_v14 = vadd.f32 %v1969_v54, %v1640_v45  ;;  %v1651_v57 = vsel %vm145_vm4, %v1624_v28, %v1649_v16  ;;  %v3497_v45 = vld [vmem:[%s4789_s3 + $0x50] sm:$0xff]  }
0x1e94   :  { %v1652_v41 = vadd.f32 %v1651_v57, %v4358_v27 }
0x1e95   :  { %3541 = vtanh.f32 %v1970_v14 }
0x1e9f   :  { %v3542_v15 = vpop.eup %3541 }
0x1ea0   :  { %v4470_v56 = vsel %vm4808_vm2, %v3542_v15, %v4449_v46  ;;  %vm4812_vm2 = vcmask 257026   ;;  %v2148_v15 = vrot.slane %v4449_v46, 2 }
0x1ea1   :  { %v1973_v63 = vpack.c.bf16 %v4470_v56, %v4470_v56  ;;  %v2142_v44 = vrot.slane %v4470_v56, 2 }
0x1ea3   :  { %3303 = vmatmul.mubr.msk.bf16.vlgmr.msra.gmra.mrb[52].mxu1 %vm207_vm7, %v1973_v63  ;;  %v3460_v52 = vpack.i.bf16 %v2166_v36, %v2142_v44 }
0x1ea4   :  { %3315 = vmatpush3.bf16.msra.mxu1 %v4478_v20  ;;  %3318 = vmatprep.mubr.msk.bf16.mxu1 %vm3591_vm0, %v3590_v1 }
0x1ea5   :  { %3316 = vmatprep.subr.bf16.mxu1 %v3590_v1 }
0x1ea8   :  { %3317 = vmatpush3.bf16.msra.mxu1 %v4487_v38 }
0x1ea9   :  { %3334 = vmatprep.subr.bf16.mxu1 %v3590_v1 }
0x1f76   :  { %v2011_v2 = vpop.f32.mrb[52].mxu1 }
0x1f77   :  { %2018 = vrot.lane.b32.xlu0 %v2011_v2, %s3593_s19  ;;  %v3304_v0 = vpop.f32.mrb[53].mxu1 }
0x1f78   :  { %v2014_v9 = vpop.f32.mrb[54].mxu1 }
0x1f79   :  { %v3305_v18 = vpop.f32.mrb[55].mxu1 }
0x1fe9   :  { %v2019_v25 = vpop.permute.xlu0 %2018 }
0x1fea   :  { %v2021_v33 = vsel %vm35_vm5, %v2011_v2, %v2019_v25  ;;  %v4556_v2 = vld [vmem:[%s4790_s4 + $0x38] sm:$0xff]  }
0x1feb   :  { %v2022_v47 = vadd.f32 %v2021_v33, %v1646_v32 }
0x1fed   :  { %3543 = vtanh.f32 %v2022_v47 }
0x1ff7   :  { %v3544_v29 = vpop.eup %3543 }
0x1ff8   :  { %v4501_v39 = vsel %vm4809_vm10, %v3544_v29, %v4470_v56  ;;  %vm4813_vm10 = vcmask 1043456  }
0x1ff9   :  { %v2025_v48 = vpack.c.bf16 %v4501_v39, %v4501_v39  ;;  %v2136_v40 = vrot.slane %v4501_v39, 2 }
0x1ffb   :  { %3311 = vmatmul.mubr.msk.bf16.vlgmr.msra.gmra.mrb[56].mxu0 %vm207_vm7, %v2025_v48  ;;  %v3455_v42 = vpack.i.bf16 %v2160_v11, %v2136_v40 }
0x1ffc   :  { %3330 = vmatprep.mubr.msk.bf16.mxu0 %vm3591_vm0, %v3590_v1  ;;  %3323 = vmatpush3.bf16.msra.mxu0 %v3495_v49 }
0x1ffd   :  { %3456 = vrot.lane.b32.xlu1 %v3455_v42, %s3594_s1  ;;  %3324 = vmatprep.subr.bf16.mxu0 %v3590_v1 }
0x2000   :  { %3325 = vmatpush3.bf16.msra.mxu0 %v3496_v60 }
0x2001   :  { %3326 = vmatprep.subr.bf16.mxu0 %v3590_v1 }
0x2004   :  { %3327 = vmatpush3.bf16.msra.mxu0 %v3497_v45 }
0x2005   :  { %3328 = vmatprep.subr.bf16.mxu0 %v3590_v1 }
0x2008   :  { %3329 = vmatpush3.bf16.msra.mxu0 %v3498_v8 }
0x2009   :  { %3350 = vmatprep.subr.bf16.mxu0 %v3590_v1 }
0x206f   :  { %v3457_v9 = vpop.permute.xlu1 %3456 }
0x2070   :  { %v3459_v26 = vunpack.i.h.bf16 %v3457_v9  ;;  %v3458_v6 = vunpack.i.l.bf16 %v3457_v9 }
0x2072   :  { %v2140_v29 = vsel %vm207_vm7, %v4391_v62, %v3458_v6 }
0x20ce   :  { %v2063_v24 = vpop.f32.mrb[56].mxu0 }
0x20cf   :  { %2070 = vrot.lane.b32.xlu0 %v2063_v24, %s3593_s19  ;;  %v3312_v50 = vpop.f32.mrb[57].mxu0 }
0x20d0   :  { %v2066_v30 = vpop.f32.mrb[58].mxu0 }
0x20d1   :  { %v3313_v17 = vpop.f32.mrb[59].mxu0 }
0x20d3   :  { %3461 = vrot.lane.b32.xlu0 %v3460_v52, %s3594_s1 }
0x20d7   :  { %3471 = vrot.lane.b32.xlu0 %v3470_v4, %s3594_s1 }
0x2141   :  { %v2071_v37 = vpop.permute.xlu0 %2070 }
0x2142   :  { %v2073_v58 = vsel %vm35_vm5, %v2063_v24, %v2071_v37 }
0x2143   :  { %v2074_v3 = vadd.f32 %v2073_v58, %v1652_v41 }
0x2145   :  { %3545 = vtanh.f32 %v2074_v3  ;;  %v3462_v0 = vpop.permute.xlu0 %3461 }
0x2146   :  { %v3464_v25 = vunpack.i.h.bf16 %v3462_v0  ;;  %v3463_v33 = vunpack.i.l.bf16 %v3462_v0 }
0x2148   :  { %v2170_v42 = vsel %vm207_vm7, %v4501_v39, %v3464_v25  ;;  %v2146_v44 = vsel %vm207_vm7, %v4410_v19, %v3463_v33 }
0x2149   :  { %v3472_v18 = vpop.permute.xlu0 %3471  ;;  %v2190_v62 = vrot.slane %v2170_v42, 4  ;;  %v2181_v52 = vrot.slane %v2146_v44, 4 }
0x214a   :  { %v3473_v32 = vunpack.i.l.bf16 %v3472_v18  ;;  %v3474_v47 = vunpack.i.h.bf16 %v3472_v18 }
0x214c   :  { %v2158_v40 = vsel %vm207_vm7, %v4449_v46, %v3473_v32  ;;  %v2933_v32 = vld [vmem:[%s4791_s5 + $0x6] sm:$0x3]  ;;  %s3595_s5 = smov [#allocation2]  }
0x214d   :  { %v2221_v25 = vrot.slane %v2933_v32, %v3713_v22  ;;  %v2225_v33 = vrot.slane %v2933_v32, %v3716_v23 }
0x214f   :  { %v3546_v28 = vpop.eup %3545 }
0x2150   :  { %v2076_v27 = vsel %vm4810_vm14, %v3546_v28, %v4501_v39  ;;  %vm4814_vm14 = vmmov %vm4813_vm10 }
0x2151   :  { %2078 = vst.msk [vmem:[#allocation2 + $0x8] sm:$0x3] %vm4811_vm8, %v2076_v27  ;;  %v2081_v54 = vpack.c.bf16 %v2076_v27, %v2076_v27  ;;  %v2130_v14 = vrot.slane %v2076_v27, 2  ;;  %v2176_v48 = vsel %vm207_vm7, %v2076_v27, %v3474_v47  ;;  %vm4815_vm8 = vcmask 1045504  }
0x2152   :  { %2080 = vst.msk [vmem:[#allocation2 + $0x8] sm:$0xc] %vm4812_vm2, %v2076_v27  ;;  %v2193_v30 = vrot.slane %v2176_v48, 2  ;;  %vm4816_vm2 = vmmov %vm4815_vm8 }
0x2153   :  { %3319 = vmatmul.mubr.msk.bf16.vlgmr.msra.gmra.mrb[56].mxu1 %vm207_vm7, %v2081_v54  ;;  %v3465_v63 = vpack.i.bf16 %v2148_v15, %v2130_v14 }
0x2154   :  { %3335 = vmatpush3.bf16.msra.mxu1 %v4546_v59  ;;  %3338 = vmatprep.mubr.msk.bf16.mxu1 %vm3591_vm0, %v3590_v1 }
0x2155   :  { %3466 = vrot.lane.b32.xlu1 %v3465_v63, %s3594_s1  ;;  %3336 = vmatprep.subr.bf16.mxu1 %v3590_v1 }
0x2158   :  { %3337 = vmatpush3.bf16.msra.mxu1 %v4556_v2 }
0x2159   :  { %3342 = vmatprep.subr.bf16.mxu1 %v3590_v1 }
0x215b   :  { %3339 = vmatmul.mubr.bf16.vlgmr.msra.gmra.mrb[60].mxu1 %v3592_v5  ;;  %v2164_v5 = vsel %vm207_vm7, %v4470_v56, %v3459_v26  ;;  %v2178_v56 = vrot.slane %v2140_v29, 6 }
0x215c   :  { %3343 = vmatpush3.bf16.msra.mxu1 %v4546_v59  ;;  %3346 = vmatprep.mubr.msk.bf16.mxu1 %vm3591_vm0, %v3590_v1  ;;  %v2187_v11 = vrot.slane %v2164_v5, 6  ;;  %v4649_v5 = vsel %vm35_vm5, %v2221_v25, %v2225_v33 }
0x215d   :  { %3344 = vmatprep.subr.bf16.mxu1 %v3590_v1 }
0x215e   :  { %v2198_v17 = vsel %vm145_vm4, %v2158_v40, %v2187_v11 }
0x215f   :  { %v2199_v19 = vsel %vm4813_vm10, %v2198_v17, %v2190_v62 }
0x2160   :  { %3345 = vmatpush3.bf16.msra.mxu1 %v4556_v2  ;;  %v2200_v49 = vsel %vm4815_vm8, %v2199_v19, %v2193_v30 }
0x2161   :  { %3358 = vmatprep.subr.bf16.mxu1 %v3590_v1 }
0x21c7   :  { %v3467_v24 = vpop.permute.xlu1 %3466 }
0x21c8   :  { %v3469_v50 = vunpack.i.h.bf16 %v3467_v24  ;;  %v3468_v36 = vunpack.i.l.bf16 %v3467_v24 }
0x21ca   :  { %v2152_v53 = vsel %vm207_vm7, %v4431_v13, %v3469_v50  ;;  %v2134_v46 = vsel %vm207_vm7, %v4369_v7, %v3468_v36  ;;  %v4602_v13 = vld [vmem:[%s4793_s7] ss:$0 sm:$0xff] }
0x21cb   :  { %v2184_v31 = vrot.slane %v2152_v53, 2  ;;  %v2195_v39 = vsel %vm145_vm4, %v2134_v46, %v2178_v56 }
0x21cc   :  { %v2196_v4 = vsel %vm4814_vm14, %v2195_v39, %v2181_v52 }
0x21cd   :  { %v2197_v60 = vsel %vm4816_vm2, %v2196_v4, %v2184_v31 }
0x21ce   :  { %v2201_v16 = vpack.c.bf16 %v2200_v49, %v2197_v60 }
0x21d0   :  { %3331 = vmatmul.mubr.msk.bf16.vlgmr.msra.gmra.mrb[60].mxu0 %vm858_vm12, %v2201_v16 }
0x21d1   :  { %3351 = vmatpush3.bf16.msra.mxu0 %v4546_v59  ;;  %3354 = vmatprep.mubr.msk.bf16.mxu0 %vm3591_vm0, %v3590_v1 }
0x21d2   :  { %3352 = vmatprep.subr.bf16.mxu0 %v3590_v1 }
0x21d5   :  { %3353 = vmatpush3.bf16.msra.mxu0 %v4556_v2 }
0x21d6   :  { %3366 = vmatprep.subr.bf16.mxu0 %v3590_v1 }
0x2226   :  { %v2119_v7 = vpop.f32.mrb[56].mxu1 }
0x2227   :  { %v2120_v57 = vadd.f32 %v4602_v13, %v2119_v7  ;;  %v3320_v41 = vpop.f32.mrb[57].mxu1 }
0x2228   :  { %v2122_v37 = vpop.f32.mrb[58].mxu1 }
0x2229   :  { %2919 = vst.msk [vmem:[%s4794_s8 + $0x8] sm:$0x3] %vm730_vm3, %v2120_v57  ;;  %v3321_v58 = vpop.f32.mrb[59].mxu1 }
0x222a   :  { %2920 = vst.msk [vmem:[%s4794_s8 + $0x8] sm:$0xc] %vm733_vm1, %v2120_v57 }
0x222e   :  { %v2395_v3 = vpop.f32.mrb[60].mxu1 }
0x222f   :  { %2402 = vrot.lane.b32.xlu0 %v2395_v3, %s3593_s19  ;;  %v3340_v45 = vpop.f32.mrb[61].mxu1 }
0x2230   :  { %v2398_v8 = vpop.f32.mrb[62].mxu1 }
0x2231   :  { %v3341_v28 = vpop.f32.mrb[63].mxu1 }
0x22a1   :  { %v2403_v47 = vpop.permute.xlu0 %2402 }
0x22a2   :  { %v2405_v11 = vsel %vm35_vm5, %v2395_v3, %v2403_v47 }
0x22a3   :  { %v4614_v27 = vpop.f32.mrb[60].mxu0 }
0x22a4   :  { %v3332_v54 = vpop.f32.mrb[61].mxu0  ;;  %v2311_v18 = vrot.slane %v4614_v27, 4  ;;  %v2303_v26 = vrot.slane %v4614_v27, 2  ;;  %v2318_v6 = vrot.slane %v4614_v27, 6 }
0x22a5   :  { %v4616_v14 = vpop.f32.mrb[62].mxu0 }
0x22a6   :  { %v3333_v15 = vpop.f32.mrb[63].mxu0  ;;  %v2296_v63 = vrot.slane %v4616_v14, 4  ;;  %v2305_v0 = vrot.slane %v4616_v14, 2  ;;  %v2320_v9 = vrot.slane %v4616_v14, 6 }
0x22a8   :  { %2297 = vrot.lane.b32.xlu1 %v2296_v63, %s3593_s19 }
0x22ac   :  { %2306 = vrot.lane.b32.xlu1 %v2305_v0, %s3593_s19 }
0x22b0   :  { %2313 = vrot.lane.b32.xlu1 %v4616_v14, %s3593_s19 }
0x22b4   :  { %2321 = vrot.lane.b32.xlu1 %v2320_v9, %s3593_s19 }
0x22b8   :  { %2326 = vrot.lane.b32.xlu1 %v2311_v18, %s3593_s19 }
0x22bc   :  { %2332 = vrot.lane.b32.xlu1 %v2303_v26, %s3593_s19 }
0x22c0   :  { %2338 = vrot.lane.b32.xlu1 %v4614_v27, %s3593_s19 }
0x22c4   :  { %2344 = vrot.lane.b32.xlu1 %v2318_v6, %s3593_s19 }
0x231a   :  { %v2298_v29 = vpop.permute.xlu1 %2297 }
0x231b   :  { %v2300_v48 = vsel %vm145_vm4, %v4614_v27, %v2298_v29 }
0x231c   :  { %v2301_v40 = vadd.f32 %v2300_v48, %v4649_v5 }
0x231e   :  { %v2406_v42 = vadd.f32 %v2405_v11, %v2301_v40  ;;  %v2307_v44 = vpop.permute.xlu1 %2306 }
0x231f   :  { %v2309_v46 = vsel %vm145_vm4, %v2303_v26, %v2307_v44 }
0x2320   :  { %3547 = vtanh.f32 %v2406_v42  ;;  %v2310_v31 = vadd.f32 %v2309_v46, %v4649_v5 }
0x2322   :  { %v2314_v22 = vpop.permute.xlu1 %2313 }
0x2323   :  { %v2316_v37 = vsel %vm145_vm4, %v2311_v18, %v2314_v22 }
0x2324   :  { %v2317_v58 = vadd.f32 %v2316_v37, %v4649_v5 }
0x2326   :  { %v2322_v24 = vpop.permute.xlu1 %2321 }
0x2327   :  { %v2324_v25 = vsel %vm145_vm4, %v2318_v6, %v2322_v24 }
0x2328   :  { %v2325_v33 = vadd.f32 %v2324_v25, %v4649_v5 }
0x232a   :  { %v3548_v23 = vpop.eup %3547  ;;  %v2327_v50 = vpop.permute.xlu1 %2326 }
0x232b   :  { %v2329_v36 = vsel %vm145_vm4, %v4616_v14, %v2327_v50  ;;  %v2408_v56 = vsel %vm262_vm6, %v3548_v23, 0.0  ;;  %vm4817_vm6 = vcmp.eq.s32.totalorder %v3884_v12, 1 }
0x232c   :  { %v4661_v30 = vadd.f32 %v2329_v36, %v4649_v5  ;;  %v2409_v17 = vpack.c.bf16 %v2408_v56, %v2408_v56 }
0x232e   :  { %3347 = vmatmul.mubr.msk.bf16.vlgmr.msra.gmra.mrb[64].mxu1 %vm207_vm7, %v2409_v17  ;;  %v2333_v55 = vpop.permute.xlu1 %2332 }
0x232f   :  { %3359 = vmatpush3.bf16.msra.mxu1 %v4546_v59  ;;  %3362 = vmatprep.mubr.msk.bf16.mxu1 %vm3591_vm0, %v3590_v1 }
0x2330   :  { %3360 = vmatprep.subr.bf16.mxu1 %v3590_v1 }
0x2332   :  { %v2339_v12 = vpop.permute.xlu1 %2338 }
0x2333   :  { %3361 = vmatpush3.bf16.msra.mxu1 %v4556_v2 }
0x2334   :  { %3374 = vmatprep.subr.bf16.mxu1 %v3590_v1 }
0x2401   :  { %v2447_v62 = vpop.f32.mrb[64].mxu1 }
0x2402   :  { %2454 = vrot.lane.b32.xlu0 %v2447_v62, %s3593_s19  ;;  %v3348_v34 = vpop.f32.mrb[65].mxu1 }
0x2403   :  { %v2450_v52 = vpop.f32.mrb[66].mxu1 }
0x2404   :  { %v3349_v53 = vpop.f32.mrb[67].mxu1  ;;  %v2335_v52 = vsel %vm145_vm4, %v2305_v0, %v2333_v55 }
0x2474   :  { %v2455_v39 = vpop.permute.xlu0 %2454 }
0x2475   :  { %v2457_v19 = vsel %vm35_vm5, %v2447_v62, %v2455_v39 }
0x2476   :  { %v2458_v4 = vadd.f32 %v2457_v19, %v2310_v31 }
0x2478   :  { %3549 = vtanh.f32 %v2458_v4 }
0x2482   :  { %v3550_v49 = vpop.eup %3549 }
0x2483   :  { %v2460_v60 = vsel %vm319_vm9, %v3550_v49, %v2408_v56  ;;  %vm4819_vm9 = vcmp.eq.s32.totalorder %v3969_v61, 1 }
0x2484   :  { %v2461_v16 = vpack.c.bf16 %v2460_v60, %v2460_v60 }
0x2486   :  { %3355 = vmatmul.mubr.msk.bf16.vlgmr.msra.gmra.mrb[64].mxu0 %vm207_vm7, %v2461_v16  ;;  %v2341_v16 = vsel %vm145_vm4, %v2296_v63, %v2339_v12 }
0x2487   :  { %3367 = vmatpush3.bf16.msra.mxu0 %v4546_v59  ;;  %3370 = vmatprep.mubr.msk.bf16.mxu0 %vm3591_vm0, %v3590_v1 }
0x2488   :  { %3368 = vmatprep.subr.bf16.mxu0 %v3590_v1 }
0x248b   :  { %3369 = vmatpush3.bf16.msra.mxu0 %v4556_v2 }
0x248c   :  { %3382 = vmatprep.subr.bf16.mxu0 %v3590_v1 }
0x2559   :  { %v2499_v7 = vpop.f32.mrb[64].mxu0 }
0x255a   :  { %2506 = vrot.lane.b32.xlu0 %v2499_v7, %s3593_s19  ;;  %v3356_v57 = vpop.f32.mrb[65].mxu0 }
0x255b   :  { %v2502_v51 = vpop.f32.mrb[66].mxu0 }
0x255c   :  { %v3357_v41 = vpop.f32.mrb[67].mxu0 }
0x25cc   :  { %v2507_v3 = vpop.permute.xlu0 %2506 }
0x25cd   :  { %v2509_v45 = vsel %vm35_vm5, %v2499_v7, %v2507_v3 }
0x25ce   :  { %v2510_v8 = vadd.f32 %v2509_v45, %v2317_v58  ;;  %v2345_v45 = vpop.permute.xlu1 %2344 }
0x25d0   :  { %3551 = vtanh.f32 %v2510_v8  ;;  %v2347_v8 = vsel %vm145_vm4, %v2320_v9, %v2345_v45 }
0x25da   :  { %v3552_v28 = vpop.eup %3551 }
0x25db   :  { %v2512_v54 = vsel %vm376_vm11, %v3552_v28, %v2460_v60  ;;  %v2348_v28 = vadd.f32 %v2347_v8, %v4649_v5  ;;  %vm4820_vm11 = vcmask 254976  }
0x25dc   :  { %v2513_v15 = vpack.c.bf16 %v2512_v54, %v2512_v54 }
0x25de   :  { %3363 = vmatmul.mubr.msk.bf16.vlgmr.msra.gmra.mrb[68].mxu1 %vm207_vm7, %v2513_v15 }
0x25df   :  { %3375 = vmatpush3.bf16.msra.mxu1 %v4546_v59  ;;  %3378 = vmatprep.mubr.msk.bf16.mxu1 %vm3591_vm0, %v3590_v1 }
0x25e0   :  { %3376 = vmatprep.subr.bf16.mxu1 %v3590_v1 }
0x25e3   :  { %3377 = vmatpush3.bf16.msra.mxu1 %v4556_v2 }
0x25e4   :  { %3390 = vmatprep.subr.bf16.mxu1 %v3590_v1 }
0x26b1   :  { %v2551_v18 = vpop.f32.mrb[68].mxu1 }
0x26b2   :  { %2558 = vrot.lane.b32.xlu0 %v2551_v18, %s3593_s19  ;;  %v3364_v26 = vpop.f32.mrb[69].mxu1 }
0x26b3   :  { %v2554_v10 = vpop.f32.mrb[70].mxu1 }
0x26b4   :  { %v3365_v32 = vpop.f32.mrb[71].mxu1 }
0x2724   :  { %v2559_v47 = vpop.permute.xlu0 %2558 }
0x2725   :  { %v2561_v29 = vsel %vm35_vm5, %v2551_v18, %v2559_v47 }
0x2726   :  { %v2562_v48 = vadd.f32 %v2561_v29, %v2325_v33 }
0x2728   :  { %3553 = vtanh.f32 %v2562_v48 }
0x2732   :  { %v3554_v40 = vpop.eup %3553 }
0x2733   :  { %v2564_v11 = vsel %vm433_vm13, %v3554_v40, %v2512_v54  ;;  %vm4821_vm13 = vcmask 257026  }
0x2734   :  { %v2565_v42 = vpack.c.bf16 %v2564_v11, %v2564_v11 }
0x2736   :  { %3371 = vmatmul.mubr.msk.bf16.vlgmr.msra.gmra.mrb[68].mxu0 %vm207_vm7, %v2565_v42 }
0x2737   :  { %3383 = vmatpush3.bf16.msra.mxu0 %v4546_v59  ;;  %3386 = vmatprep.mubr.msk.bf16.mxu0 %vm3591_vm0, %v3590_v1 }
0x2738   :  { %3384 = vmatprep.subr.bf16.mxu0 %v3590_v1 }
0x273b   :  { %3385 = vmatpush3.bf16.msra.mxu0 %v4556_v2 }
0x273c   :  { %3398 = vmatprep.subr.bf16.mxu0 %v3590_v1 }
0x2809   :  { %v2603_v27 = vpop.f32.mrb[68].mxu0 }
0x280a   :  { %2610 = vrot.lane.b32.xlu0 %v2603_v27, %s3593_s19  ;;  %v3372_v6 = vpop.f32.mrb[69].mxu0 }
0x280b   :  { %v2606_v35 = vpop.f32.mrb[70].mxu0 }
0x280c   :  { %v3373_v44 = vpop.f32.mrb[71].mxu0 }
0x287c   :  { %v2611_v22 = vpop.permute.xlu0 %2610 }
0x287d   :  { %v2613_v24 = vsel %vm35_vm5, %v2603_v27, %v2611_v22 }
0x287e   :  { %v2614_v23 = vadd.f32 %v2613_v24, %v4661_v30 }
0x2880   :  { %3555 = vtanh.f32 %v2614_v23 }
0x288a   :  { %v3556_v50 = vpop.eup %3555 }
0x288b   :  { %v2616_v36 = vsel %vm490_vm15, %v3556_v50, %v2564_v11 }
0x288c   :  { %v2617_v56 = vpack.c.bf16 %v2616_v36, %v2616_v36 }
0x288e   :  { %3379 = vmatmul.mubr.msk.bf16.vlgmr.msra.gmra.mrb[72].mxu1 %vm207_vm7, %v2617_v56 }
0x288f   :  { %3391 = vmatpush3.bf16.msra.mxu1 %v4546_v59  ;;  %3394 = vmatprep.mubr.msk.bf16.mxu1 %vm3591_vm0, %v3590_v1  ;;  %v2336_v59 = vadd.f32 %v2335_v52, %v4649_v5 }
0x2890   :  { %3392 = vmatprep.subr.bf16.mxu1 %v3590_v1 }
0x2893   :  { %3393 = vmatpush3.bf16.msra.mxu1 %v4556_v2 }
0x2961   :  { %v2655_v17 = vpop.f32.mrb[72].mxu1 }
0x2962   :  { %2662 = vrot.lane.b32.xlu0 %v2655_v17, %s3593_s19  ;;  %v3380_v30 = vpop.f32.mrb[73].mxu1 }
0x2963   :  { %v2658_v62 = vpop.f32.mrb[74].mxu1 }
0x2964   :  { %v3381_v34 = vpop.f32.mrb[75].mxu1 }
0x29d4   :  { %v2663_v53 = vpop.permute.xlu0 %2662 }
0x29d5   :  { %v2665_v46 = vsel %vm35_vm5, %v2655_v17, %v2663_v53 }
0x29d6   :  { %v2666_v31 = vadd.f32 %v2665_v46, %v2336_v59 }
0x29d8   :  { %3557 = vtanh.f32 %v2666_v31 }
0x29e2   :  { %v3558_v2 = vpop.eup %3557 }
0x29e3   :  { %v2668_v39 = vsel %vm4817_vm6, %v3558_v2, %v2616_v36 }
0x29e4   :  { %v2669_v19 = vpack.c.bf16 %v2668_v39, %v2668_v39 }
0x29e6   :  { %3387 = vmatmul.mubr.msk.bf16.vlgmr.msra.gmra.mrb[72].mxu0 %vm207_vm7, %v2669_v19 }
0x29e7   :  { %3399 = vmatpush3.bf16.msra.mxu0 %v4478_v20  ;;  %3402 = vmatprep.mubr.msk.bf16.mxu0 %vm3591_vm0, %v3590_v1  ;;  %v2342_v20 = vadd.f32 %v2341_v16, %v4649_v5  ;;  %vm4818_vm0 = vcmp.eq.s32.totalorder %v3917_v43, 1 }
0x29e8   :  { %3400 = vmatprep.subr.bf16.mxu0 %v3590_v1 }
0x29eb   :  { %3401 = vmatpush3.bf16.msra.mxu0 %v4487_v38 }
0x2ab9   :  { %v2707_v0 = vpop.f32.mrb[72].mxu0 }
0x2aba   :  { %2714 = vrot.lane.b32.xlu0 %v2707_v0, %s3593_s19  ;;  %v3388_v4 = vpop.f32.mrb[73].mxu0 }
0x2abb   :  { %v2710_v49 = vpop.f32.mrb[74].mxu0 }
0x2abc   :  { %v3389_v60 = vpop.f32.mrb[75].mxu0 }
0x2b2c   :  { %v2715_v7 = vpop.permute.xlu0 %2714 }
0x2b2d   :  { %v2717_v57 = vsel %vm35_vm5, %v2707_v0, %v2715_v7 }
0x2b2e   :  { %v2718_v1 = vadd.f32 %v2717_v57, %v2342_v20 }
0x2b30   :  { %3559 = vtanh.f32 %v2718_v1 }
0x2b3a   :  { %v3560_v38 = vpop.eup %3559 }
0x2b3b   :  { %v2720_v51 = vsel %vm4818_vm0, %v3560_v38, %v2668_v39 }
0x2b3c   :  { %v2721_v41 = vpack.c.bf16 %v2720_v51, %v2720_v51 }
0x2b3e   :  { %3395 = vmatmul.mubr.msk.bf16.vlgmr.msra.gmra.mrb[76].mxu1 %vm207_vm7, %v2721_v41 }
0x2c11   :  { %v2759_v37 = vpop.f32.mrb[76].mxu1 }
0x2c12   :  { %2766 = vrot.lane.b32.xlu0 %v2759_v37, %s3593_s19  ;;  %v3396_v58 = vpop.f32.mrb[77].mxu1  ;;  %s2832_s19 = sshll.u32 %s3595_s5, 4  ;;  %s2833_s19 = int_to_ptr.vmem [resolvable:$true] %s2832_s19 }
0x2c13   :  { %v2762_v63 = vpop.f32.mrb[78].mxu1  ;;  %s3566_s30 = scalar_lea.vmem %s2833_s19, 256  ;;  %p3571_p1 = scmp.lt.s32.totalorder %s2833_s19, %s2833_s19 }
0x2c14   :  { %v3397_v3 = vpop.f32.mrb[79].mxu1  ;;  %p3567_p0 = scmp.ne.s32.totalorder %s2833_s19, %s3566_s30  ;;  %p3572_p2 = scmp.lt.s32.totalorder %s3566_s30, %s3566_s30 }
0x2c16   :  { %p3573_p3 = por %p3572_p2, %p3571_p1 }
0x2c18   :  { %p3574_p4 = pnand %p3573_p3, %p3567_p0 }
0x2c84   :  { %v2767_v54 = vpop.permute.xlu0 %2766 }
0x2c85   :  { %v2769_v43 = vsel %vm35_vm5, %v2759_v37, %v2767_v54 }
0x2c86   :  { %v2770_v15 = vadd.f32 %v2769_v43, %v2348_v28 }
0x2c88   :  { %3561 = vtanh.f32 %v2770_v15 }
0x2c92   :  { %v3562_v18 = vpop.eup %3561 }
0x2c93   :  { %v2772_v26 = vsel %vm4819_vm9, %v3562_v18, %v2720_v51 }
0x2c94   :  { %2774 = vst.msk [vmem:[#allocation2 + $0xc] sm:$0x3] %vm4820_vm11, %v2772_v26  ;;  %v2777_v10 = vpack.c.bf16 %v2772_v26, %v2772_v26 }
0x2c95   :  { %2776 = vst.msk [vmem:[#allocation2 + $0xc] sm:$0xc] %vm4821_vm13, %v2772_v26 }
0x2c96   :  { %3403 = vmatmul.mubr.msk.bf16.vlgmr.msra.gmra.mrb[76].mxu0 %vm207_vm7, %v2777_v10 }
0x2c97   :  { %3577 = shalt.err (!%p3574_p4)
}
0x2c98   :  { %s3578_s12 = scalar_lea.hbm %s4795_s9, 256 }
0x2c99   :  { %p3579_p5 = scmp.ne.s32.totalorder %s4795_s9, %s3578_s12  ;;  %p3582_p6 = scmp.lt.u32.totalorder %s3578_s12, %s4795_s9 }
0x2c9b   :  { %p3584_p7 = pnand %p3582_p6, %p3579_p5 }
0x2c9d   :  { %3587 = shalt.err (!%p3584_p7)
}
0x2c9e   :  { %s3596_s15 = smov 2  }
0x2c9f   :  { %2838 = dma.vmem_to_hbm [thread:$0]  %s2833_s19, 256, %s4795_s9, [#allocation3], %s3594_s1, %s3594_s1, %s3596_s15  }
0x2d69   :  { %v2815_v21 = vpop.f32.mrb[76].mxu0 }
0x2d6a   :  { %v2816_v61 = vadd.f32 %v4602_v13, %v2815_v21  ;;  %v3404_v14 = vpop.f32.mrb[77].mxu0 }
0x2d6b   :  { %v2818_v9 = vpop.f32.mrb[78].mxu0 }
0x2d6c   :  { %2949 = vst.msk [vmem:[%s4794_s8 + $0xc] sm:$0x3] %vm730_vm3, %v2816_v61  ;;  %v3405_v5 = vpop.f32.mrb[79].mxu0 }
0x2d6d   :  { %2950 = vst.msk [vmem:[%s4794_s8 + $0xc] sm:$0xc] %vm733_vm1, %v2816_v61 }
0x2d6e   :  { %3588 = dma.done.wait [#allocation3], 256  }
0x2d6f   :  { %3589 = vsyncadd [#allocation3], 4294967040 }
0x2d70   :  { %2844 = vsyncpa [#allocation3], 1 }

</bundles_post_ra>
